<compile_context>
chip_gen: v6e
topology: v6e:2x2x1
jax: 0.10.0
libtpu: 0.0.40
codegen_flags: <defaults>
</compile_context>

<pallas_src>
import functools

import jax
import jax.numpy as jnp
import numpy as np
from jax import lax
from jax.experimental import pallas as pl
from jax.experimental.pallas import tpu as pltpu


# Set to 3 to request a third input DMA buffer (pl.Buffered) once VMEM
# headroom exists; kept at 2 by default for maximum lowering safety.
_INPUT_BUFFER_COUNT = 2


def _pad_up(n, m):
    return ((n + m - 1) // m) * m


def _divisors_desc(n):
    return [d for d in range(n, 0, -1) if n % d == 0]


def _spatial_attention_kernel(x_ref, w_ref, mask_ref, o_ref,
                              sum_ref, max_ref, pad_ref, *,
                              W, K, P, NB, HW, C_total,
                              CCHUNK, NCHUNKS, OFF, S, UNROLL):
    # x_ref    : (NB, CC, HW)        VMEM  lane-dense input block
    # w_ref    : (2*K*K,)            SMEM  flattened conv weights (scalars)
    # mask_ref : (K, HW)             VMEM  per-dx column-validity masks (0/1)
    # o_ref    : (NB, 1, HW)         VMEM  lane-dense output block
    # sum_ref  : (NB, HW)            VMEM  running channel sum (f32)
    # max_ref  : (NB, HW)            VMEM  running channel max (f32)
    # pad_ref  : (2, NB, OFF+HW+S)   VMEM  flat zero-padded [avg; max] maps
    c_idx = pl.program_id(1)
    nc = pl.num_programs(1)

    # ---- per-batch-block init (once per output block, not per grid step).
    # Gated on the channel index, NOT program_id(0)==0, so it stays correct
    # under megacore sharding of the parallel batch axis (per-core scratch).
    # Only the borders of pad_ref need zeroing; the interior is fully
    # rewritten in the finalize step.
    @pl.when(c_idx == 0)
    def _init():
        sum_ref[...] = jnp.zeros_like(sum_ref)
        max_ref[...] = jnp.full_like(max_ref, -jnp.inf)
        pad_ref[:, :, OFF - S:OFF] = jnp.zeros((2, NB, S), jnp.float32)
        pad_ref[:, :, OFF + HW:OFF + HW + S] = jnp.zeros((2, NB, S), jnp.float32)

    # ---- running channel reduction for this channel tile.  The channel dim
    # sits in sublanes and HW in lanes -> lane-dense XLU sublane reduce.
    # Chunked (sublane-aligned) so large tiles never become one huge f32
    # temporary; the chunk loop is unrolled for VLIW co-issue.
    if NCHUNKS == 1:
        xc = x_ref[...].astype(jnp.float32)
        psum = jnp.sum(xc, axis=1)
        pmax = jnp.max(xc, axis=1)
    else:
        def body(i, carry):
            s0, m0 = carry
            start = pl.multiple_of(i * CCHUNK, CCHUNK)
            xck = x_ref[:, pl.ds(start, CCHUNK), :].astype(jnp.float32)
            return (s0 + jnp.sum(xck, axis=1),
                    jnp.maximum(m0, jnp.max(xck, axis=1)))
        psum, pmax = lax.fori_loop(
            0, NCHUNKS, body,
            (jnp.zeros((NB, HW), jnp.float32),
             jnp.full((NB, HW), -jnp.inf, jnp.float32)),
            unroll=UNROLL)

    sum_ref[...] = sum_ref[...] + psum
    max_ref[...] = jnp.maximum(max_ref[...], pmax)

    # ---- finalize on the last channel tile: flat padded [avg; max] maps ->
    # 2*K*K static lane-shifted taps with per-dx column masks -> sigmoid ->
    # one batch-vectorized, lane-dense output store.
    @pl.when(c_idx == nc - 1)
    def _finalize():
        pad_ref[0, :, OFF:OFF + HW] = sum_ref[...] * (1.0 / C_total)   # mean map
        pad_ref[1, :, OFF:OFF + HW] = max_ref[...]                     # max map

        acc = jnp.zeros((NB, HW), jnp.float32)
        for dx in range(K):
            wm = mask_ref[dx:dx + 1, :]                       # (1, HW), 0/1 f32
            for ci in range(2):
                for dy in range(K):
                    sh = (dy - P) * W + (dx - P)              # flat tap shift
                    wv = w_ref[ci * K * K + dy * K + dx]      # SMEM scalar
                    win = pad_ref[ci, :, OFF + sh:OFF + sh + HW]   # (NB, HW)
                    acc = acc + (wv * wm) * win
        o_ref[:, 0, :] = jax.nn.sigmoid(acc).astype(o_ref.dtype)


def spatial_attention(x, weight, *, kernel_size=7):
    """x: (N, C, H, W); weight: (1, 2, K, K) -> sigmoid(conv2d([mean_c; max_c]))."""
    assert kernel_size in (3, 7), "kernel size must be 3 or 7"
    K = kernel_size
    P = 3 if K == 7 else 1
    N, C, H, W = x.shape
    assert weight.shape == (1, 2, K, K), weight.shape

    HW = H * W
    S = P * W + P                    # max |tap shift| in the flat layout
    OFF = _pad_up(S, 128)            # lane-aligned interior offset in pad scratch
    PADLEN = OFF + HW + S

    itemsize = jnp.dtype(x.dtype).itemsize
    sub = max(8, 32 // max(itemsize, 1))     # sublane multiple for x/out dtype
    HWpad = _pad_up(HW, 128)

    # ---- per-chip VMEM budget using padded (sublane, 128)-tile accounting ----
    try:
        vmem_cap = int(pltpu.get_tpu_info().vmem_capacity_bytes)
        if vmem_cap <= 0:
            raise ValueError(vmem_cap)
    except Exception:
        vmem_cap = 64 * 1024 * 1024          # v7x per-core floor; safe everywhere
    vmem_limit = int(min((vmem_cap * 3) // 4, 100 * 1024 * 1024))
    usable = vmem_limit - 2 * 1024 * 1024    # headroom for compiler scratch

    def in_block_bytes(nb, cc):
        return nb * _pad_up(cc, sub) * HWpad * itemsize

    def working_set_bytes(nb, cc, n_in_buf):
        b = n_in_buf * in_block_bytes(nb, cc)                  # input (multi-buffered)
        b += 2 * nb * sub * HWpad * itemsize                   # output block (x2)
        b += 2 * _pad_up(K, 8) * HWpad * 4                     # mask input (x2)
        b += 2 * _pad_up(nb, 8) * HWpad * 4                    # sum + max scratch
        b += 2 * _pad_up(nb, 8) * _pad_up(PADLEN, 128) * 4     # flat padded maps
        return b

    TARGET_BLOCK = 4 * 1024 * 1024           # ~2-4 MiB per buffered input block

    # channel tile: a divisor of C that is sublane-aligned (multiple of 8) or C itself
    cc_cands = [d for d in _divisors_desc(C) if d == C or d % 8 == 0]
    CC = cc_cands[-1]
    for d in cc_cands:
        if in_block_bytes(1, d) <= TARGET_BLOCK:
            CC = d
            break

    # batch tile: keep >= 2 iterations on the leading "parallel" axis so both
    # v7x TensorCores get work.
    # TODO(synk): for N == 1 a halo-aware spatial parallel axis would be
    # needed to occupy the second v7x core; not implemented.
    nb_cap = N // 2 if N >= 2 else 1
    nb_cands = [d for d in _divisors_desc(N) if d <= nb_cap] or [1]
    NB = 1
    for d in nb_cands:
        if (in_block_bytes(d, CC) <= TARGET_BLOCK
                and working_set_bytes(d, CC, 2) <= usable):
            NB = d
            break

    # chunking of the per-step channel reduction (sublane-aligned, <= ~512 KiB f32)
    NCHUNKS = None
    for n in sorted(d for d in range(1, CC + 1) if CC % d == 0):
        ck = CC // n
        if (n == 1 or ck % 8 == 0) and NB * ck * HWpad * 4 <= 512 * 1024:
            NCHUNKS = n
            break
    if NCHUNKS is None:
        NCHUNKS = max(n for n in range(1, CC + 1)
                      if CC % n == 0 and (n == 1 or (CC // n) % 8 == 0))
    CCHUNK = CC // NCHUNKS
    UNROLL = True if NCHUNKS <= 8 else False

    kernel = functools.partial(
        _spatial_attention_kernel,
        W=W, K=K, P=P, NB=NB, HW=HW, C_total=C,
        CCHUNK=CCHUNK, NCHUNKS=NCHUNKS, OFF=OFF, S=S, UNROLL=UNROLL)

    # lane-dense views: collapse (H, W) into the last (lane) dim; free
    # row-major reshapes outside the kernel.
    x_flat = x.reshape(N, C, HW)
    w_flat = weight.reshape(-1).astype(jnp.float32)            # (2*K*K,) -> SMEM

    # per-dx column-validity masks for the flat-layout conv taps (constants)
    col = np.arange(HW, dtype=np.int64) % W
    dxs = np.arange(K, dtype=np.int64)[:, None]
    masks_np = ((col[None, :] + dxs - P >= 0) & (col[None, :] + dxs - P < W))
    masks = jnp.asarray(masks_np.astype(np.float32))           # (K, HW)

    # input spec (optional triple-buffering to hide the long finalize step)
    x_index_map = lambda n, c: (n, c, 0)
    x_spec = pl.BlockSpec((NB, CC, HW), x_index_map)
    n_in_buf = 2
    if _INPUT_BUFFER_COUNT >= 3 and working_set_bytes(NB, CC, 3) <= usable:
        try:
            x_spec = pl.BlockSpec((NB, CC, HW), x_index_map,
                                  pipeline_mode=pl.Buffered(3))
            n_in_buf = 3
        except TypeError:      # BlockSpec without pipeline_mode support
            pass

    cost = pl.CostEstimate(
        flops=2 * N * C * HW + 2 * N * HW * 2 * K * K,
        transcendentals=N * HW,
        bytes_accessed=(N * C * HW + N * HW) * itemsize + (K * HW + 2 * K * K) * 4,
    )

    out_flat = pl.pallas_call(
        kernel,
        out_shape=jax.ShapeDtypeStruct((N, 1, HW), x.dtype),
        grid_spec=pltpu.PrefetchScalarGridSpec(
            num_scalar_prefetch=0,
            grid=(N // NB, C // CC),
            in_specs=[
                x_spec,
                pl.BlockSpec(memory_space=pltpu.MemorySpace.SMEM),
                pl.BlockSpec((K, HW), lambda n, c: (0, 0)),
            ],
            out_specs=pl.BlockSpec((NB, 1, HW), lambda n, c: (n, 0, 0)),
            scratch_shapes=[
                pltpu.VMEM((NB, HW), jnp.float32),             # running channel sum
                pltpu.VMEM((NB, HW), jnp.float32),             # running channel max
                pltpu.VMEM((2, NB, PADLEN), jnp.float32),      # flat padded [avg; max]
            ],
        ),
        compiler_params=pltpu.CompilerParams(
            dimension_semantics=("parallel", "arbitrary"),
            vmem_limit_bytes=vmem_limit,
        ),
        cost_estimate=cost,
    )(x_flat, w_flat, masks)

    return out_flat.reshape(N, 1, H, W)


def _reference(x, weight, *, kernel_size=7):
    pad = 3 if kernel_size == 7 else 1
    avg_out = jnp.mean(x, axis=1, keepdims=True)
    max_out = jnp.max(x, axis=1, keepdims=True)
    cat = jnp.concatenate([avg_out, max_out], axis=1)          # (N, 2, H, W)
    y = jax.lax.conv_general_dilated(
        cat, weight,
        window_strides=(1, 1),
        padding=[(pad, pad), (pad, pad)],
        dimension_numbers=("NCHW", "OIHW", "NCHW"),
    )
    return jax.nn.sigmoid(y)


if __name__ == "__main__":
    key = jax.random.PRNGKey(0)
    kx, kw = jax.random.split(key)

    N, C, H, W = 2, 4, 16, 16
    K = 7
    x = jax.random.normal(kx, (N, C, H, W), dtype=jnp.float32)

    # Deterministic Conv2d(2, 1, 7, bias=False) init (kaiming-uniform style):
    fan_in = 2 * K * K
    bound = 1.0 / float(np.sqrt(fan_in))
    weight = jax.random.uniform(kw, (1, 2, K, K), dtype=jnp.float32,
                                minval=-bound, maxval=bound)

    out = spatial_attention(x, weight, kernel_size=K)
    out = jax.block_until_ready(out)

    ref = _reference(x, weight, kernel_size=K)
    assert out.shape == (N, 1, H, W)
    assert jnp.allclose(out, ref, atol=1e-5, rtol=1e-5), "mismatch vs reference"

    print("KERNEL_OK")
</pallas_src>

<mosaic_0001>
module attributes {stable_mosaic.version = 11 : i64} {
  func.func @_spatial_attention_kernel(%arg0: i32, %arg1: i32, %arg2: memref<1x4x256xf32, #tpu.memory_space<vmem>>, %arg3: memref<98xf32, #tpu.memory_space<smem>>, %arg4: memref<7x256xf32, #tpu.memory_space<vmem>>, %arg5: memref<1x1x256xf32, #tpu.memory_space<vmem>>, %arg6: memref<1x256xf32, #tpu.memory_space<vmem>>, %arg7: memref<1x256xf32, #tpu.memory_space<vmem>>, %arg8: memref<2x1x435xf32, #tpu.memory_space<vmem>>) attributes {dimension_semantics = [#tpu.dimension_semantics<parallel>, #tpu.dimension_semantics<arbitrary>], iteration_bounds = array<i64: 2, 1>, scalar_prefetch = 0 : i64, scratch_operands = 3 : i64, tpu.core_type = #tpu.core_type<tc>, window_params = [{transform_indices = @transform_0, window_bounds = array<i64: 1, 4, 256>}, {transform_indices = @transform_1, window_bounds = array<i64: 98>}, {pipeline_mode = #tpu.pipeline_mode<synchronous>, transform_indices = @transform_2, window_bounds = array<i64: 7, 256>}, {transform_indices = @transform_3, window_bounds = array<i64: 1, 1, 256>}]} {
    %c0_i32 = arith.constant 0 : i32
    %0 = arith.cmpi eq, %arg1, %c0_i32 : i32
    %1 = arith.extui %0 : i1 to i32
    %c0_i32_0 = arith.constant 0 : i32
    %2 = arith.cmpi ne, %1, %c0_i32_0 : i32
    scf.if %2 {
      %cst_14 = arith.constant 0.000000e+00 : f32
      %15 = vector.broadcast %cst_14 : f32 to vector<1x256xf32>
      %c0_15 = arith.constant 0 : index
      %c0_16 = arith.constant 0 : index
      %16 = vector.load %arg6[%c0_15, %c0_16] : memref<1x256xf32, #tpu.memory_space<vmem>>, vector<1x256xf32>
      tpu.vector_store %arg6[%c0_15, %c0_16], %15 {strides = array<i32>} : memref<1x256xf32, #tpu.memory_space<vmem>>, vector<1x256xf32>,
      %cst_17 = arith.constant 0xFF800000 : f32
      %17 = vector.broadcast %cst_17 : f32 to vector<1x256xf32>
      %c0_18 = arith.constant 0 : index
      %c0_19 = arith.constant 0 : index
      %18 = vector.load %arg7[%c0_18, %c0_19] : memref<1x256xf32, #tpu.memory_space<vmem>>, vector<1x256xf32>
      tpu.vector_store %arg7[%c0_18, %c0_19], %17 {strides = array<i32>} : memref<1x256xf32, #tpu.memory_space<vmem>>, vector<1x256xf32>,
      %cst_20 = arith.constant 0.000000e+00 : f32
      %19 = vector.broadcast %cst_20 : f32 to vector<2x1x51xf32>
      %c0_21 = arith.constant 0 : index
      %c0_22 = arith.constant 0 : index
      %c77 = arith.constant 77 : index
      %20 = vector.load %arg8[%c0_21, %c0_22, %c77] : memref<2x1x435xf32, #tpu.memory_space<vmem>>, vector<2x1x51xf32>
      tpu.vector_store %arg8[%c0_21, %c0_22, %c77], %19 {strides = array<i32>} : memref<2x1x435xf32, #tpu.memory_space<vmem>>, vector<2x1x51xf32>,
      %cst_23 = arith.constant 0.000000e+00 : f32
      %21 = vector.broadcast %cst_23 : f32 to vector<2x1x51xf32>
      %c0_24 = arith.constant 0 : index
      %c0_25 = arith.constant 0 : index
      %c384 = arith.constant 384 : index
      %22 = vector.load %arg8[%c0_24, %c0_25, %c384] : memref<2x1x435xf32, #tpu.memory_space<vmem>>, vector<2x1x51xf32>
      tpu.vector_store %arg8[%c0_24, %c0_25, %c384], %21 {strides = array<i32>} : memref<2x1x435xf32, #tpu.memory_space<vmem>>, vector<2x1x51xf32>,
    } else {
    }
    %c0 = arith.constant 0 : index
    %c0_1 = arith.constant 0 : index
    %c0_2 = arith.constant 0 : index
    %3 = vector.load %arg2[%c0, %c0_1, %c0_2] : memref<1x4x256xf32, #tpu.memory_space<vmem>>, vector<1x4x256xf32>
    %cst = arith.constant dense<0.000000e+00> : vector<1x256xf32>
    %4 = vector.multi_reduction <add>, %3, %cst [1] : vector<1x4x256xf32> to vector<1x256xf32>
    %cst_3 = arith.constant dense<0xFF800000> : vector<1x256xf32>
    %5 = vector.multi_reduction <maximumf>, %3, %cst_3 [1] : vector<1x4x256xf32> to vector<1x256xf32>
    %c0_4 = arith.constant 0 : index
    %c0_5 = arith.constant 0 : index
    %6 = vector.load %arg6[%c0_4, %c0_5] : memref<1x256xf32, #tpu.memory_space<vmem>>, vector<1x256xf32>
    %7 = arith.addf %6, %4 : vector<1x256xf32>
    %c0_6 = arith.constant 0 : index
    %c0_7 = arith.constant 0 : index
    %8 = vector.load %arg6[%c0_6, %c0_7] : memref<1x256xf32, #tpu.memory_space<vmem>>, vector<1x256xf32>
    tpu.vector_store %arg6[%c0_6, %c0_7], %7 {strides = array<i32>} : memref<1x256xf32, #tpu.memory_space<vmem>>, vector<1x256xf32>,
    %c0_8 = arith.constant 0 : index
    %c0_9 = arith.constant 0 : index
    %9 = vector.load %arg7[%c0_8, %c0_9] : memref<1x256xf32, #tpu.memory_space<vmem>>, vector<1x256xf32>
    %10 = arith.maximumf %9, %5 : vector<1x256xf32>
    %c0_10 = arith.constant 0 : index
    %c0_11 = arith.constant 0 : index
    %11 = vector.load %arg7[%c0_10, %c0_11] : memref<1x256xf32, #tpu.memory_space<vmem>>, vector<1x256xf32>
    tpu.vector_store %arg7[%c0_10, %c0_11], %10 {strides = array<i32>} : memref<1x256xf32, #tpu.memory_space<vmem>>, vector<1x256xf32>,
    %c0_i32_12 = arith.constant 0 : i32
    %12 = arith.cmpi eq, %arg1, %c0_i32_12 : i32
    %13 = arith.extui %12 : i1 to i32
    %c0_i32_13 = arith.constant 0 : i32
    %14 = arith.cmpi ne, %13, %c0_i32_13 : i32
    scf.if %14 {
      %c0_14 = arith.constant 0 : index
      %c0_15 = arith.constant 0 : index
      %15 = vector.load %arg6[%c0_14, %c0_15] : memref<1x256xf32, #tpu.memory_space<vmem>>, vector<1x256xf32>
      %cst_16 = arith.constant 2.500000e-01 : f32
      %16 = vector.broadcast %cst_16 : f32 to vector<1x256xf32>
      %17 = arith.mulf %15, %16 : vector<1x256xf32>
      %c0_17 = arith.constant 0 : index
      %c0_18 = arith.constant 0 : index
      %c128 = arith.constant 128 : index
      %18 = vector.load %arg8[%c0_17, %c0_18, %c128] : memref<2x1x435xf32, #tpu.memory_space<vmem>>, vector<1x1x256xf32>
      %19 = vector.shape_cast %18 : vector<1x1x256xf32> to vector<1x256xf32>
      %20 = vector.shape_cast %17 : vector<1x256xf32> to vector<1x1x256xf32>
      tpu.vector_store %arg8[%c0_17, %c0_18, %c128], %20 {strides = array<i32>} : memref<2x1x435xf32, #tpu.memory_space<vmem>>, vector<1x1x256xf32>,
      %c0_19 = arith.constant 0 : index
      %c0_20 = arith.constant 0 : index
      %21 = vector.load %arg7[%c0_19, %c0_20] : memref<1x256xf32, #tpu.memory_space<vmem>>, vector<1x256xf32>
      %c1 = arith.constant 1 : index
      %c0_21 = arith.constant 0 : index
      %c128_22 = arith.constant 128 : index
      %22 = vector.load %arg8[%c1, %c0_21, %c128_22] : memref<2x1x435xf32, #tpu.memory_space<vmem>>, vector<1x1x256xf32>
      %23 = vector.shape_cast %22 : vector<1x1x256xf32> to vector<1x256xf32>
      %24 = vector.shape_cast %21 : vector<1x256xf32> to vector<1x1x256xf32>
      tpu.vector_store %arg8[%c1, %c0_21, %c128_22], %24 {strides = array<i32>} : memref<2x1x435xf32, #tpu.memory_space<vmem>>, vector<1x1x256xf32>,
      %cst_23 = arith.constant 0.000000e+00 : f32
      %25 = vector.broadcast %cst_23 : f32 to vector<1x256xf32>
      %c0_24 = arith.constant 0 : index
      %c0_25 = arith.constant 0 : index
      %26 = vector.load %arg4[%c0_24, %c0_25] : memref<7x256xf32, #tpu.memory_space<vmem>>, vector<1x256xf32>
      %c0_26 = arith.constant 0 : index
      %27 = memref.load %arg3[%c0_26] : memref<98xf32, #tpu.memory_space<smem>>
      %c0_27 = arith.constant 0 : index
      %c0_28 = arith.constant 0 : index
      %c77 = arith.constant 77 : index
      %28 = vector.load %arg8[%c0_27, %c0_28, %c77] : memref<2x1x435xf32, #tpu.memory_space<vmem>>, vector<1x1x256xf32>
      %29 = vector.shape_cast %28 : vector<1x1x256xf32> to vector<1x256xf32>
      %30 = vector.broadcast %27 : f32 to vector<1x256xf32>
      %31 = arith.mulf %30, %26 : vector<1x256xf32>
      %32 = arith.mulf %31, %29 : vector<1x256xf32>
      %33 = arith.addf %25, %32 : vector<1x256xf32>
      %c7 = arith.constant 7 : index
      %34 = memref.load %arg3[%c7] : memref<98xf32, #tpu.memory_space<smem>>
      %c0_29 = arith.constant 0 : index
      %c0_30 = arith.constant 0 : index
      %c93 = arith.constant 93 : index
      %35 = vector.load %arg8[%c0_29, %c0_30, %c93] : memref<2x1x435xf32, #tpu.memory_space<vmem>>, vector<1x1x256xf32>
      %36 = vector.shape_cast %35 : vector<1x1x256xf32> to vector<1x256xf32>
      %37 = vector.broadcast %34 : f32 to vector<1x256xf32>
      %38 = arith.mulf %37, %26 : vector<1x256xf32>
      %39 = arith.mulf %38, %36 : vector<1x256xf32>
      %40 = arith.addf %33, %39 : vector<1x256xf32>
      %c14 = arith.constant 14 : index
      %41 = memref.load %arg3[%c14] : memref<98xf32, #tpu.memory_space<smem>>
      %c0_31 = arith.constant 0 : index
      %c0_32 = arith.constant 0 : index
      %c109 = arith.constant 109 : index
      %42 = vector.load %arg8[%c0_31, %c0_32, %c109] : memref<2x1x435xf32, #tpu.memory_space<vmem>>, vector<1x1x256xf32>
      %43 = vector.shape_cast %42 : vector<1x1x256xf32> to vector<1x256xf32>
      %44 = vector.broadcast %41 : f32 to vector<1x256xf32>
      %45 = arith.mulf %44, %26 : vector<1x256xf32>
      %46 = arith.mulf %45, %43 : vector<1x256xf32>
      %47 = arith.addf %40, %46 : vector<1x256xf32>
      %c21 = arith.constant 21 : index
      %48 = memref.load %arg3[%c21] : memref<98xf32, #tpu.memory_space<smem>>
      %c0_33 = arith.constant 0 : index
      %c0_34 = arith.constant 0 : index
      %c125 = arith.constant 125 : index
      %49 = vector.load %arg8[%c0_33, %c0_34, %c125] : memref<2x1x435xf32, #tpu.memory_space<vmem>>, vector<1x1x256xf32>
      %50 = vector.shape_cast %49 : vector<1x1x256xf32> to vector<1x256xf32>
      %51 = vector.broadcast %48 : f32 to vector<1x256xf32>
      %52 = arith.mulf %51, %26 : vector<1x256xf32>
      %53 = arith.mulf %52, %50 : vector<1x256xf32>
      %54 = arith.addf %47, %53 : vector<1x256xf32>
      %c28 = arith.constant 28 : index
      %55 = memref.load %arg3[%c28] : memref<98xf32, #tpu.memory_space<smem>>
      %c0_35 = arith.constant 0 : index
      %c0_36 = arith.constant 0 : index
      %c141 = arith.constant 141 : index
      %56 = vector.load %arg8[%c0_35, %c0_36, %c141] : memref<2x1x435xf32, #tpu.memory_space<vmem>>, vector<1x1x256xf32>
      %57 = vector.shape_cast %56 : vector<1x1x256xf32> to vector<1x256xf32>
      %58 = vector.broadcast %55 : f32 to vector<1x256xf32>
      %59 = arith.mulf %58, %26 : vector<1x256xf32>
      %60 = arith.mulf %59, %57 : vector<1x256xf32>
      %61 = arith.addf %54, %60 : vector<1x256xf32>
      %c35 = arith.constant 35 : index
      %62 = memref.load %arg3[%c35] : memref<98xf32, #tpu.memory_space<smem>>
      %c0_37 = arith.constant 0 : index
      %c0_38 = arith.constant 0 : index
      %c157 = arith.constant 157 : index
      %63 = vector.load %arg8[%c0_37, %c0_38, %c157] : memref<2x1x435xf32, #tpu.memory_space<vmem>>, vector<1x1x256xf32>
      %64 = vector.shape_cast %63 : vector<1x1x256xf32> to vector<1x256xf32>
      %65 = vector.broadcast %62 : f32 to vector<1x256xf32>
      %66 = arith.mulf %65, %26 : vector<1x256xf32>
      %67 = arith.mulf %66, %64 : vector<1x256xf32>
      %68 = arith.addf %61, %67 : vector<1x256xf32>
      %c42 = arith.constant 42 : index
      %69 = memref.load %arg3[%c42] : memref<98xf32, #tpu.memory_space<smem>>
      %c0_39 = arith.constant 0 : index
      %c0_40 = arith.constant 0 : index
      %c173 = arith.constant 173 : index
      %70 = vector.load %arg8[%c0_39, %c0_40, %c173] : memref<2x1x435xf32, #tpu.memory_space<vmem>>, vector<1x1x256xf32>
      %71 = vector.shape_cast %70 : vector<1x1x256xf32> to vector<1x256xf32>
      %72 = vector.broadcast %69 : f32 to vector<1x256xf32>
      %73 = arith.mulf %72, %26 : vector<1x256xf32>
      %74 = arith.mulf %73, %71 : vector<1x256xf32>
      %75 = arith.addf %68, %74 : vector<1x256xf32>
      %c49 = arith.constant 49 : index
      %76 = memref.load %arg3[%c49] : memref<98xf32, #tpu.memory_space<smem>>
      %c1_41 = arith.constant 1 : index
      %c0_42 = arith.constant 0 : index
      %c77_43 = arith.constant 77 : index
      %77 = vector.load %arg8[%c1_41, %c0_42, %c77_43] : memref<2x1x435xf32, #tpu.memory_space<vmem>>, vector<1x1x256xf32>
      %78 = vector.shape_cast %77 : vector<1x1x256xf32> to vector<1x256xf32>
      %79 = vector.broadcast %76 : f32 to vector<1x256xf32>
      %80 = arith.mulf %79, %26 : vector<1x256xf32>
      %81 = arith.mulf %80, %78 : vector<1x256xf32>
      %82 = arith.addf %75, %81 : vector<1x256xf32>
      %c56 = arith.constant 56 : index
      %83 = memref.load %arg3[%c56] : memref<98xf32, #tpu.memory_space<smem>>
      %c1_44 = arith.constant 1 : index
      %c0_45 = arith.constant 0 : index
      %c93_46 = arith.constant 93 : index
      %84 = vector.load %arg8[%c1_44, %c0_45, %c93_46] : memref<2x1x435xf32, #tpu.memory_space<vmem>>, vector<1x1x256xf32>
      %85 = vector.shape_cast %84 : vector<1x1x256xf32> to vector<1x256xf32>
      %86 = vector.broadcast %83 : f32 to vector<1x256xf32>
      %87 = arith.mulf %86, %26 : vector<1x256xf32>
      %88 = arith.mulf %87, %85 : vector<1x256xf32>
      %89 = arith.addf %82, %88 : vector<1x256xf32>
      %c63 = arith.constant 63 : index
      %90 = memref.load %arg3[%c63] : memref<98xf32, #tpu.memory_space<smem>>
      %c1_47 = arith.constant 1 : index
      %c0_48 = arith.constant 0 : index
      %c109_49 = arith.constant 109 : index
      %91 = vector.load %arg8[%c1_47, %c0_48, %c109_49] : memref<2x1x435xf32, #tpu.memory_space<vmem>>, vector<1x1x256xf32>
      %92 = vector.shape_cast %91 : vector<1x1x256xf32> to vector<1x256xf32>
      %93 = vector.broadcast %90 : f32 to vector<1x256xf32>
      %94 = arith.mulf %93, %26 : vector<1x256xf32>
      %95 = arith.mulf %94, %92 : vector<1x256xf32>
      %96 = arith.addf %89, %95 : vector<1x256xf32>
      %c70 = arith.constant 70 : index
      %97 = memref.load %arg3[%c70] : memref<98xf32, #tpu.memory_space<smem>>
      %c1_50 = arith.constant 1 : index
      %c0_51 = arith.constant 0 : index
      %c125_52 = arith.constant 125 : index
      %98 = vector.load %arg8[%c1_50, %c0_51, %c125_52] : memref<2x1x435xf32, #tpu.memory_space<vmem>>, vector<1x1x256xf32>
      %99 = vector.shape_cast %98 : vector<1x1x256xf32> to vector<1x256xf32>
      %100 = vector.broadcast %97 : f32 to vector<1x256xf32>
      %101 = arith.mulf %100, %26 : vector<1x256xf32>
      %102 = arith.mulf %101, %99 : vector<1x256xf32>
      %103 = arith.addf %96, %102 : vector<1x256xf32>
      %c77_53 = arith.constant 77 : index
      %104 = memref.load %arg3[%c77_53] : memref<98xf32, #tpu.memory_space<smem>>
      %c1_54 = arith.constant 1 : index
      %c0_55 = arith.constant 0 : index
      %c141_56 = arith.constant 141 : index
      %105 = vector.load %arg8[%c1_54, %c0_55, %c141_56] : memref<2x1x435xf32, #tpu.memory_space<vmem>>, vector<1x1x256xf32>
      %106 = vector.shape_cast %105 : vector<1x1x256xf32> to vector<1x256xf32>
      %107 = vector.broadcast %104 : f32 to vector<1x256xf32>
      %108 = arith.mulf %107, %26 : vector<1x256xf32>
      %109 = arith.mulf %108, %106 : vector<1x256xf32>
      %110 = arith.addf %103, %109 : vector<1x256xf32>
      %c84 = arith.constant 84 : index
      %111 = memref.load %arg3[%c84] : memref<98xf32, #tpu.memory_space<smem>>
      %c1_57 = arith.constant 1 : index
      %c0_58 = arith.constant 0 : index
      %c157_59 = arith.constant 157 : index
      %112 = vector.load %arg8[%c1_57, %c0_58, %c157_59] : memref<2x1x435xf32, #tpu.memory_space<vmem>>, vector<1x1x256xf32>
      %113 = vector.shape_cast %112 : vector<1x1x256xf32> to vector<1x256xf32>
      %114 = vector.broadcast %111 : f32 to vector<1x256xf32>
      %115 = arith.mulf %114, %26 : vector<1x256xf32>
      %116 = arith.mulf %115, %113 : vector<1x256xf32>
      %117 = arith.addf %110, %116 : vector<1x256xf32>
      %c91 = arith.constant 91 : index
      %118 = memref.load %arg3[%c91] : memref<98xf32, #tpu.memory_space<smem>>
      %c1_60 = arith.constant 1 : index
      %c0_61 = arith.constant 0 : index
      %c173_62 = arith.constant 173 : index
      %119 = vector.load %arg8[%c1_60, %c0_61, %c173_62] : memref<2x1x435xf32, #tpu.memory_space<vmem>>, vector<1x1x256xf32>
      %120 = vector.shape_cast %119 : vector<1x1x256xf32> to vector<1x256xf32>
      %121 = vector.broadcast %118 : f32 to vector<1x256xf32>
      %122 = arith.mulf %121, %26 : vector<1x256xf32>
      %123 = arith.mulf %122, %120 : vector<1x256xf32>
      %124 = arith.addf %117, %123 : vector<1x256xf32>
      %c1_63 = arith.constant 1 : index
      %c0_64 = arith.constant 0 : index
      %125 = vector.load %arg4[%c1_63, %c0_64] : memref<7x256xf32, #tpu.memory_space<vmem>>, vector<1x256xf32>
      %c1_65 = arith.constant 1 : index
      %126 = memref.load %arg3[%c1_65] : memref<98xf32, #tpu.memory_space<smem>>
      %c0_66 = arith.constant 0 : index
      %c0_67 = arith.constant 0 : index
      %c78 = arith.constant 78 : index
      %127 = vector.load %arg8[%c0_66, %c0_67, %c78] : memref<2x1x435xf32, #tpu.memory_space<vmem>>, vector<1x1x256xf32>
      %128 = vector.shape_cast %127 : vector<1x1x256xf32> to vector<1x256xf32>
      %129 = vector.broadcast %126 : f32 to vector<1x256xf32>
      %130 = arith.mulf %129, %125 : vector<1x256xf32>
      %131 = arith.mulf %130, %128 : vector<1x256xf32>
      %132 = arith.addf %124, %131 : vector<1x256xf32>
      %c8 = arith.constant 8 : index
      %133 = memref.load %arg3[%c8] : memref<98xf32, #tpu.memory_space<smem>>
      %c0_68 = arith.constant 0 : index
      %c0_69 = arith.constant 0 : index
      %c94 = arith.constant 94 : index
      %134 = vector.load %arg8[%c0_68, %c0_69, %c94] : memref<2x1x435xf32, #tpu.memory_space<vmem>>, vector<1x1x256xf32>
      %135 = vector.shape_cast %134 : vector<1x1x256xf32> to vector<1x256xf32>
      %136 = vector.broadcast %133 : f32 to vector<1x256xf32>
      %137 = arith.mulf %136, %125 : vector<1x256xf32>
      %138 = arith.mulf %137, %135 : vector<1x256xf32>
      %139 = arith.addf %132, %138 : vector<1x256xf32>
      %c15 = arith.constant 15 : index
      %140 = memref.load %arg3[%c15] : memref<98xf32, #tpu.memory_space<smem>>
      %c0_70 = arith.constant 0 : index
      %c0_71 = arith.constant 0 : index
      %c110 = arith.constant 110 : index
      %141 = vector.load %arg8[%c0_70, %c0_71, %c110] : memref<2x1x435xf32, #tpu.memory_space<vmem>>, vector<1x1x256xf32>
      %142 = vector.shape_cast %141 : vector<1x1x256xf32> to vector<1x256xf32>
      %143 = vector.broadcast %140 : f32 to vector<1x256xf32>
      %144 = arith.mulf %143, %125 : vector<1x256xf32>
      %145 = arith.mulf %144, %142 : vector<1x256xf32>
      %146 = arith.addf %139, %145 : vector<1x256xf32>
      %c22 = arith.constant 22 : index
      %147 = memref.load %arg3[%c22] : memref<98xf32, #tpu.memory_space<smem>>
      %c0_72 = arith.constant 0 : index
      %c0_73 = arith.constant 0 : index
      %c126 = arith.constant 126 : index
      %148 = vector.load %arg8[%c0_72, %c0_73, %c126] : memref<2x1x435xf32, #tpu.memory_space<vmem>>, vector<1x1x256xf32>
      %149 = vector.shape_cast %148 : vector<1x1x256xf32> to vector<1x256xf32>
      %150 = vector.broadcast %147 : f32 to vector<1x256xf32>
      %151 = arith.mulf %150, %125 : vector<1x256xf32>
      %152 = arith.mulf %151, %149 : vector<1x256xf32>
      %153 = arith.addf %146, %152 : vector<1x256xf32>
      %c29 = arith.constant 29 : index
      %154 = memref.load %arg3[%c29] : memref<98xf32, #tpu.memory_space<smem>>
      %c0_74 = arith.constant 0 : index
      %c0_75 = arith.constant 0 : index
      %c142 = arith.constant 142 : index
      %155 = vector.load %arg8[%c0_74, %c0_75, %c142] : memref<2x1x435xf32, #tpu.memory_space<vmem>>, vector<1x1x256xf32>
      %156 = vector.shape_cast %155 : vector<1x1x256xf32> to vector<1x256xf32>
      %157 = vector.broadcast %154 : f32 to vector<1x256xf32>
      %158 = arith.mulf %157, %125 : vector<1x256xf32>
      %159 = arith.mulf %158, %156 : vector<1x256xf32>
      %160 = arith.addf %153, %159 : vector<1x256xf32>
      %c36 = arith.constant 36 : index
      %161 = memref.load %arg3[%c36] : memref<98xf32, #tpu.memory_space<smem>>
      %c0_76 = arith.constant 0 : index
      %c0_77 = arith.constant 0 : index
      %c158 = arith.constant 158 : index
      %162 = vector.load %arg8[%c0_76, %c0_77, %c158] : memref<2x1x435xf32, #tpu.memory_space<vmem>>, vector<1x1x256xf32>
      %163 = vector.shape_cast %162 : vector<1x1x256xf32> to vector<1x256xf32>
      %164 = vector.broadcast %161 : f32 to vector<1x256xf32>
      %165 = arith.mulf %164, %125 : vector<1x256xf32>
      %166 = arith.mulf %165, %163 : vector<1x256xf32>
      %167 = arith.addf %160, %166 : vector<1x256xf32>
      %c43 = arith.constant 43 : index
      %168 = memref.load %arg3[%c43] : memref<98xf32, #tpu.memory_space<smem>>
      %c0_78 = arith.constant 0 : index
      %c0_79 = arith.constant 0 : index
      %c174 = arith.constant 174 : index
      %169 = vector.load %arg8[%c0_78, %c0_79, %c174] : memref<2x1x435xf32, #tpu.memory_space<vmem>>, vector<1x1x256xf32>
      %170 = vector.shape_cast %169 : vector<1x1x256xf32> to vector<1x256xf32>
      %171 = vector.broadcast %168 : f32 to vector<1x256xf32>
      %172 = arith.mulf %171, %125 : vector<1x256xf32>
      %173 = arith.mulf %172, %170 : vector<1x256xf32>
      %174 = arith.addf %167, %173 : vector<1x256xf32>
      %c50 = arith.constant 50 : index
      %175 = memref.load %arg3[%c50] : memref<98xf32, #tpu.memory_space<smem>>
      %c1_80 = arith.constant 1 : index
      %c0_81 = arith.constant 0 : index
      %c78_82 = arith.constant 78 : index
      %176 = vector.load %arg8[%c1_80, %c0_81, %c78_82] : memref<2x1x435xf32, #tpu.memory_space<vmem>>, vector<1x1x256xf32>
      %177 = vector.shape_cast %176 : vector<1x1x256xf32> to vector<1x256xf32>
      %178 = vector.broadcast %175 : f32 to vector<1x256xf32>
      %179 = arith.mulf %178, %125 : vector<1x256xf32>
      %180 = arith.mulf %179, %177 : vector<1x256xf32>
      %181 = arith.addf %174, %180 : vector<1x256xf32>
      %c57 = arith.constant 57 : index
      %182 = memref.load %arg3[%c57] : memref<98xf32, #tpu.memory_space<smem>>
      %c1_83 = arith.constant 1 : index
      %c0_84 = arith.constant 0 : index
      %c94_85 = arith.constant 94 : index
      %183 = vector.load %arg8[%c1_83, %c0_84, %c94_85] : memref<2x1x435xf32, #tpu.memory_space<vmem>>, vector<1x1x256xf32>
      %184 = vector.shape_cast %183 : vector<1x1x256xf32> to vector<1x256xf32>
      %185 = vector.broadcast %182 : f32 to vector<1x256xf32>
      %186 = arith.mulf %185, %125 : vector<1x256xf32>
      %187 = arith.mulf %186, %184 : vector<1x256xf32>
      %188 = arith.addf %181, %187 : vector<1x256xf32>
      %c64 = arith.constant 64 : index
      %189 = memref.load %arg3[%c64] : memref<98xf32, #tpu.memory_space<smem>>
      %c1_86 = arith.constant 1 : index
      %c0_87 = arith.constant 0 : index
      %c110_88 = arith.constant 110 : index
      %190 = vector.load %arg8[%c1_86, %c0_87, %c110_88] : memref<2x1x435xf32, #tpu.memory_space<vmem>>, vector<1x1x256xf32>
      %191 = vector.shape_cast %190 : vector<1x1x256xf32> to vector<1x256xf32>
      %192 = vector.broadcast %189 : f32 to vector<1x256xf32>
      %193 = arith.mulf %192, %125 : vector<1x256xf32>
      %194 = arith.mulf %193, %191 : vector<1x256xf32>
      %195 = arith.addf %188, %194 : vector<1x256xf32>
      %c71 = arith.constant 71 : index
      %196 = memref.load %arg3[%c71] : memref<98xf32, #tpu.memory_space<smem>>
      %c1_89 = arith.constant 1 : index
      %c0_90 = arith.constant 0 : index
      %c126_91 = arith.constant 126 : index
      %197 = vector.load %arg8[%c1_89, %c0_90, %c126_91] : memref<2x1x435xf32, #tpu.memory_space<vmem>>, vector<1x1x256xf32>
      %198 = vector.shape_cast %197 : vector<1x1x256xf32> to vector<1x256xf32>
      %199 = vector.broadcast %196 : f32 to vector<1x256xf32>
      %200 = arith.mulf %199, %125 : vector<1x256xf32>
      %201 = arith.mulf %200, %198 : vector<1x256xf32>
      %202 = arith.addf %195, %201 : vector<1x256xf32>
      %c78_92 = arith.constant 78 : index
      %203 = memref.load %arg3[%c78_92] : memref<98xf32, #tpu.memory_space<smem>>
      %c1_93 = arith.constant 1 : index
      %c0_94 = arith.constant 0 : index
      %c142_95 = arith.constant 142 : index
      %204 = vector.load %arg8[%c1_93, %c0_94, %c142_95] : memref<2x1x435xf32, #tpu.memory_space<vmem>>, vector<1x1x256xf32>
      %205 = vector.shape_cast %204 : vector<1x1x256xf32> to vector<1x256xf32>
      %206 = vector.broadcast %203 : f32 to vector<1x256xf32>
      %207 = arith.mulf %206, %125 : vector<1x256xf32>
      %208 = arith.mulf %207, %205 : vector<1x256xf32>
      %209 = arith.addf %202, %208 : vector<1x256xf32>
      %c85 = arith.constant 85 : index
      %210 = memref.load %arg3[%c85] : memref<98xf32, #tpu.memory_space<smem>>
      %c1_96 = arith.constant 1 : index
      %c0_97 = arith.constant 0 : index
      %c158_98 = arith.constant 158 : index
      %211 = vector.load %arg8[%c1_96, %c0_97, %c158_98] : memref<2x1x435xf32, #tpu.memory_space<vmem>>, vector<1x1x256xf32>
      %212 = vector.shape_cast %211 : vector<1x1x256xf32> to vector<1x256xf32>
      %213 = vector.broadcast %210 : f32 to vector<1x256xf32>
      %214 = arith.mulf %213, %125 : vector<1x256xf32>
      %215 = arith.mulf %214, %212 : vector<1x256xf32>
      %216 = arith.addf %209, %215 : vector<1x256xf32>
      %c92 = arith.constant 92 : index
      %217 = memref.load %arg3[%c92] : memref<98xf32, #tpu.memory_space<smem>>
      %c1_99 = arith.constant 1 : index
      %c0_100 = arith.constant 0 : index
      %c174_101 = arith.constant 174 : index
      %218 = vector.load %arg8[%c1_99, %c0_100, %c174_101] : memref<2x1x435xf32, #tpu.memory_space<vmem>>, vector<1x1x256xf32>
      %219 = vector.shape_cast %218 : vector<1x1x256xf32> to vector<1x256xf32>
      %220 = vector.broadcast %217 : f32 to vector<1x256xf32>
      %221 = arith.mulf %220, %125 : vector<1x256xf32>
      %222 = arith.mulf %221, %219 : vector<1x256xf32>
      %223 = arith.addf %216, %222 : vector<1x256xf32>
      %c2 = arith.constant 2 : index
      %c0_102 = arith.constant 0 : index
      %224 = vector.load %arg4[%c2, %c0_102] : memref<7x256xf32, #tpu.memory_space<vmem>>, vector<1x256xf32>
      %c2_103 = arith.constant 2 : index
      %225 = memref.load %arg3[%c2_103] : memref<98xf32, #tpu.memory_space<smem>>
      %c0_104 = arith.constant 0 : index
      %c0_105 = arith.constant 0 : index
      %c79 = arith.constant 79 : index
      %226 = vector.load %arg8[%c0_104, %c0_105, %c79] : memref<2x1x435xf32, #tpu.memory_space<vmem>>, vector<1x1x256xf32>
      %227 = vector.shape_cast %226 : vector<1x1x256xf32> to vector<1x256xf32>
      %228 = vector.broadcast %225 : f32 to vector<1x256xf32>
      %229 = arith.mulf %228, %224 : vector<1x256xf32>
      %230 = arith.mulf %229, %227 : vector<1x256xf32>
      %231 = arith.addf %223, %230 : vector<1x256xf32>
      %c9 = arith.constant 9 : index
      %232 = memref.load %arg3[%c9] : memref<98xf32, #tpu.memory_space<smem>>
      %c0_106 = arith.constant 0 : index
      %c0_107 = arith.constant 0 : index
      %c95 = arith.constant 95 : index
      %233 = vector.load %arg8[%c0_106, %c0_107, %c95] : memref<2x1x435xf32, #tpu.memory_space<vmem>>, vector<1x1x256xf32>
      %234 = vector.shape_cast %233 : vector<1x1x256xf32> to vector<1x256xf32>
      %235 = vector.broadcast %232 : f32 to vector<1x256xf32>
      %236 = arith.mulf %235, %224 : vector<1x256xf32>
      %237 = arith.mulf %236, %234 : vector<1x256xf32>
      %238 = arith.addf %231, %237 : vector<1x256xf32>
      %c16 = arith.constant 16 : index
      %239 = memref.load %arg3[%c16] : memref<98xf32, #tpu.memory_space<smem>>
      %c0_108 = arith.constant 0 : index
      %c0_109 = arith.constant 0 : index
      %c111 = arith.constant 111 : index
      %240 = vector.load %arg8[%c0_108, %c0_109, %c111] : memref<2x1x435xf32, #tpu.memory_space<vmem>>, vector<1x1x256xf32>
      %241 = vector.shape_cast %240 : vector<1x1x256xf32> to vector<1x256xf32>
      %242 = vector.broadcast %239 : f32 to vector<1x256xf32>
      %243 = arith.mulf %242, %224 : vector<1x256xf32>
      %244 = arith.mulf %243, %241 : vector<1x256xf32>
      %245 = arith.addf %238, %244 : vector<1x256xf32>
      %c23 = arith.constant 23 : index
      %246 = memref.load %arg3[%c23] : memref<98xf32, #tpu.memory_space<smem>>
      %c0_110 = arith.constant 0 : index
      %c0_111 = arith.constant 0 : index
      %c127 = arith.constant 127 : index
      %247 = vector.load %arg8[%c0_110, %c0_111, %c127] : memref<2x1x435xf32, #tpu.memory_space<vmem>>, vector<1x1x256xf32>
      %248 = vector.shape_cast %247 : vector<1x1x256xf32> to vector<1x256xf32>
      %249 = vector.broadcast %246 : f32 to vector<1x256xf32>
      %250 = arith.mulf %249, %224 : vector<1x256xf32>
      %251 = arith.mulf %250, %248 : vector<1x256xf32>
      %252 = arith.addf %245, %251 : vector<1x256xf32>
      %c30 = arith.constant 30 : index
      %253 = memref.load %arg3[%c30] : memref<98xf32, #tpu.memory_space<smem>>
      %c0_112 = arith.constant 0 : index
      %c0_113 = arith.constant 0 : index
      %c143 = arith.constant 143 : index
      %254 = vector.load %arg8[%c0_112, %c0_113, %c143] : memref<2x1x435xf32, #tpu.memory_space<vmem>>, vector<1x1x256xf32>
      %255 = vector.shape_cast %254 : vector<1x1x256xf32> to vector<1x256xf32>
      %256 = vector.broadcast %253 : f32 to vector<1x256xf32>
      %257 = arith.mulf %256, %224 : vector<1x256xf32>
      %258 = arith.mulf %257, %255 : vector<1x256xf32>
      %259 = arith.addf %252, %258 : vector<1x256xf32>
      %c37 = arith.constant 37 : index
      %260 = memref.load %arg3[%c37] : memref<98xf32, #tpu.memory_space<smem>>
      %c0_114 = arith.constant 0 : index
      %c0_115 = arith.constant 0 : index
      %c159 = arith.constant 159 : index
      %261 = vector.load %arg8[%c0_114, %c0_115, %c159] : memref<2x1x435xf32, #tpu.memory_space<vmem>>, vector<1x1x256xf32>
      %262 = vector.shape_cast %261 : vector<1x1x256xf32> to vector<1x256xf32>
      %263 = vector.broadcast %260 : f32 to vector<1x256xf32>
      %264 = arith.mulf %263, %224 : vector<1x256xf32>
      %265 = arith.mulf %264, %262 : vector<1x256xf32>
      %266 = arith.addf %259, %265 : vector<1x256xf32>
      %c44 = arith.constant 44 : index
      %267 = memref.load %arg3[%c44] : memref<98xf32, #tpu.memory_space<smem>>
      %c0_116 = arith.constant 0 : index
      %c0_117 = arith.constant 0 : index
      %c175 = arith.constant 175 : index
      %268 = vector.load %arg8[%c0_116, %c0_117, %c175] : memref<2x1x435xf32, #tpu.memory_space<vmem>>, vector<1x1x256xf32>
      %269 = vector.shape_cast %268 : vector<1x1x256xf32> to vector<1x256xf32>
      %270 = vector.broadcast %267 : f32 to vector<1x256xf32>
      %271 = arith.mulf %270, %224 : vector<1x256xf32>
      %272 = arith.mulf %271, %269 : vector<1x256xf32>
      %273 = arith.addf %266, %272 : vector<1x256xf32>
      %c51 = arith.constant 51 : index
      %274 = memref.load %arg3[%c51] : memref<98xf32, #tpu.memory_space<smem>>
      %c1_118 = arith.constant 1 : index
      %c0_119 = arith.constant 0 : index
      %c79_120 = arith.constant 79 : index
      %275 = vector.load %arg8[%c1_118, %c0_119, %c79_120] : memref<2x1x435xf32, #tpu.memory_space<vmem>>, vector<1x1x256xf32>
      %276 = vector.shape_cast %275 : vector<1x1x256xf32> to vector<1x256xf32>
      %277 = vector.broadcast %274 : f32 to vector<1x256xf32>
      %278 = arith.mulf %277, %224 : vector<1x256xf32>
      %279 = arith.mulf %278, %276 : vector<1x256xf32>
      %280 = arith.addf %273, %279 : vector<1x256xf32>
      %c58 = arith.constant 58 : index
      %281 = memref.load %arg3[%c58] : memref<98xf32, #tpu.memory_space<smem>>
      %c1_121 = arith.constant 1 : index
      %c0_122 = arith.constant 0 : index
      %c95_123 = arith.constant 95 : index
      %282 = vector.load %arg8[%c1_121, %c0_122, %c95_123] : memref<2x1x435xf32, #tpu.memory_space<vmem>>, vector<1x1x256xf32>
      %283 = vector.shape_cast %282 : vector<1x1x256xf32> to vector<1x256xf32>
      %284 = vector.broadcast %281 : f32 to vector<1x256xf32>
      %285 = arith.mulf %284, %224 : vector<1x256xf32>
      %286 = arith.mulf %285, %283 : vector<1x256xf32>
      %287 = arith.addf %280, %286 : vector<1x256xf32>
      %c65 = arith.constant 65 : index
      %288 = memref.load %arg3[%c65] : memref<98xf32, #tpu.memory_space<smem>>
      %c1_124 = arith.constant 1 : index
      %c0_125 = arith.constant 0 : index
      %c111_126 = arith.constant 111 : index
      %289 = vector.load %arg8[%c1_124, %c0_125, %c111_126] : memref<2x1x435xf32, #tpu.memory_space<vmem>>, vector<1x1x256xf32>
      %290 = vector.shape_cast %289 : vector<1x1x256xf32> to vector<1x256xf32>
      %291 = vector.broadcast %288 : f32 to vector<1x256xf32>
      %292 = arith.mulf %291, %224 : vector<1x256xf32>
      %293 = arith.mulf %292, %290 : vector<1x256xf32>
      %294 = arith.addf %287, %293 : vector<1x256xf32>
      %c72 = arith.constant 72 : index
      %295 = memref.load %arg3[%c72] : memref<98xf32, #tpu.memory_space<smem>>
      %c1_127 = arith.constant 1 : index
      %c0_128 = arith.constant 0 : index
      %c127_129 = arith.constant 127 : index
      %296 = vector.load %arg8[%c1_127, %c0_128, %c127_129] : memref<2x1x435xf32, #tpu.memory_space<vmem>>, vector<1x1x256xf32>
      %297 = vector.shape_cast %296 : vector<1x1x256xf32> to vector<1x256xf32>
      %298 = vector.broadcast %295 : f32 to vector<1x256xf32>
      %299 = arith.mulf %298, %224 : vector<1x256xf32>
      %300 = arith.mulf %299, %297 : vector<1x256xf32>
      %301 = arith.addf %294, %300 : vector<1x256xf32>
      %c79_130 = arith.constant 79 : index
      %302 = memref.load %arg3[%c79_130] : memref<98xf32, #tpu.memory_space<smem>>
      %c1_131 = arith.constant 1 : index
      %c0_132 = arith.constant 0 : index
      %c143_133 = arith.constant 143 : index
      %303 = vector.load %arg8[%c1_131, %c0_132, %c143_133] : memref<2x1x435xf32, #tpu.memory_space<vmem>>, vector<1x1x256xf32>
      %304 = vector.shape_cast %303 : vector<1x1x256xf32> to vector<1x256xf32>
      %305 = vector.broadcast %302 : f32 to vector<1x256xf32>
      %306 = arith.mulf %305, %224 : vector<1x256xf32>
      %307 = arith.mulf %306, %304 : vector<1x256xf32>
      %308 = arith.addf %301, %307 : vector<1x256xf32>
      %c86 = arith.constant 86 : index
      %309 = memref.load %arg3[%c86] : memref<98xf32, #tpu.memory_space<smem>>
      %c1_134 = arith.constant 1 : index
      %c0_135 = arith.constant 0 : index
      %c159_136 = arith.constant 159 : index
      %310 = vector.load %arg8[%c1_134, %c0_135, %c159_136] : memref<2x1x435xf32, #tpu.memory_space<vmem>>, vector<1x1x256xf32>
      %311 = vector.shape_cast %310 : vector<1x1x256xf32> to vector<1x256xf32>
      %312 = vector.broadcast %309 : f32 to vector<1x256xf32>
      %313 = arith.mulf %312, %224 : vector<1x256xf32>
      %314 = arith.mulf %313, %311 : vector<1x256xf32>
      %315 = arith.addf %308, %314 : vector<1x256xf32>
      %c93_137 = arith.constant 93 : index
      %316 = memref.load %arg3[%c93_137] : memref<98xf32, #tpu.memory_space<smem>>
      %c1_138 = arith.constant 1 : index
      %c0_139 = arith.constant 0 : index
      %c175_140 = arith.constant 175 : index
      %317 = vector.load %arg8[%c1_138, %c0_139, %c175_140] : memref<2x1x435xf32, #tpu.memory_space<vmem>>, vector<1x1x256xf32>
      %318 = vector.shape_cast %317 : vector<1x1x256xf32> to vector<1x256xf32>
      %319 = vector.broadcast %316 : f32 to vector<1x256xf32>
      %320 = arith.mulf %319, %224 : vector<1x256xf32>
      %321 = arith.mulf %320, %318 : vector<1x256xf32>
      %322 = arith.addf %315, %321 : vector<1x256xf32>
      %c3 = arith.constant 3 : index
      %c0_141 = arith.constant 0 : index
      %323 = vector.load %arg4[%c3, %c0_141] : memref<7x256xf32, #tpu.memory_space<vmem>>, vector<1x256xf32>
      %c3_142 = arith.constant 3 : index
      %324 = memref.load %arg3[%c3_142] : memref<98xf32, #tpu.memory_space<smem>>
      %c0_143 = arith.constant 0 : index
      %c0_144 = arith.constant 0 : index
      %c80 = arith.constant 80 : index
      %325 = vector.load %arg8[%c0_143, %c0_144, %c80] : memref<2x1x435xf32, #tpu.memory_space<vmem>>, vector<1x1x256xf32>
      %326 = vector.shape_cast %325 : vector<1x1x256xf32> to vector<1x256xf32>
      %327 = vector.broadcast %324 : f32 to vector<1x256xf32>
      %328 = arith.mulf %327, %323 : vector<1x256xf32>
      %329 = arith.mulf %328, %326 : vector<1x256xf32>
      %330 = arith.addf %322, %329 : vector<1x256xf32>
      %c10 = arith.constant 10 : index
      %331 = memref.load %arg3[%c10] : memref<98xf32, #tpu.memory_space<smem>>
      %c0_145 = arith.constant 0 : index
      %c0_146 = arith.constant 0 : index
      %c96 = arith.constant 96 : index
      %332 = vector.load %arg8[%c0_145, %c0_146, %c96] : memref<2x1x435xf32, #tpu.memory_space<vmem>>, vector<1x1x256xf32>
      %333 = vector.shape_cast %332 : vector<1x1x256xf32> to vector<1x256xf32>
      %334 = vector.broadcast %331 : f32 to vector<1x256xf32>
      %335 = arith.mulf %334, %323 : vector<1x256xf32>
      %336 = arith.mulf %335, %333 : vector<1x256xf32>
      %337 = arith.addf %330, %336 : vector<1x256xf32>
      %c17 = arith.constant 17 : index
      %338 = memref.load %arg3[%c17] : memref<98xf32, #tpu.memory_space<smem>>
      %c0_147 = arith.constant 0 : index
      %c0_148 = arith.constant 0 : index
      %c112 = arith.constant 112 : index
      %339 = vector.load %arg8[%c0_147, %c0_148, %c112] : memref<2x1x435xf32, #tpu.memory_space<vmem>>, vector<1x1x256xf32>
      %340 = vector.shape_cast %339 : vector<1x1x256xf32> to vector<1x256xf32>
      %341 = vector.broadcast %338 : f32 to vector<1x256xf32>
      %342 = arith.mulf %341, %323 : vector<1x256xf32>
      %343 = arith.mulf %342, %340 : vector<1x256xf32>
      %344 = arith.addf %337, %343 : vector<1x256xf32>
      %c24 = arith.constant 24 : index
      %345 = memref.load %arg3[%c24] : memref<98xf32, #tpu.memory_space<smem>>
      %c0_149 = arith.constant 0 : index
      %c0_150 = arith.constant 0 : index
      %c128_151 = arith.constant 128 : index
      %346 = vector.load %arg8[%c0_149, %c0_150, %c128_151] : memref<2x1x435xf32, #tpu.memory_space<vmem>>, vector<1x1x256xf32>
      %347 = vector.shape_cast %346 : vector<1x1x256xf32> to vector<1x256xf32>
      %348 = vector.broadcast %345 : f32 to vector<1x256xf32>
      %349 = arith.mulf %348, %323 : vector<1x256xf32>
      %350 = arith.mulf %349, %347 : vector<1x256xf32>
      %351 = arith.addf %344, %350 : vector<1x256xf32>
      %c31 = arith.constant 31 : index
      %352 = memref.load %arg3[%c31] : memref<98xf32, #tpu.memory_space<smem>>
      %c0_152 = arith.constant 0 : index
      %c0_153 = arith.constant 0 : index
      %c144 = arith.constant 144 : index
      %353 = vector.load %arg8[%c0_152, %c0_153, %c144] : memref<2x1x435xf32, #tpu.memory_space<vmem>>, vector<1x1x256xf32>
      %354 = vector.shape_cast %353 : vector<1x1x256xf32> to vector<1x256xf32>
      %355 = vector.broadcast %352 : f32 to vector<1x256xf32>
      %356 = arith.mulf %355, %323 : vector<1x256xf32>
      %357 = arith.mulf %356, %354 : vector<1x256xf32>
      %358 = arith.addf %351, %357 : vector<1x256xf32>
      %c38 = arith.constant 38 : index
      %359 = memref.load %arg3[%c38] : memref<98xf32, #tpu.memory_space<smem>>
      %c0_154 = arith.constant 0 : index
      %c0_155 = arith.constant 0 : index
      %c160 = arith.constant 160 : index
      %360 = vector.load %arg8[%c0_154, %c0_155, %c160] : memref<2x1x435xf32, #tpu.memory_space<vmem>>, vector<1x1x256xf32>
      %361 = vector.shape_cast %360 : vector<1x1x256xf32> to vector<1x256xf32>
      %362 = vector.broadcast %359 : f32 to vector<1x256xf32>
      %363 = arith.mulf %362, %323 : vector<1x256xf32>
      %364 = arith.mulf %363, %361 : vector<1x256xf32>
      %365 = arith.addf %358, %364 : vector<1x256xf32>
      %c45 = arith.constant 45 : index
      %366 = memref.load %arg3[%c45] : memref<98xf32, #tpu.memory_space<smem>>
      %c0_156 = arith.constant 0 : index
      %c0_157 = arith.constant 0 : index
      %c176 = arith.constant 176 : index
      %367 = vector.load %arg8[%c0_156, %c0_157, %c176] : memref<2x1x435xf32, #tpu.memory_space<vmem>>, vector<1x1x256xf32>
      %368 = vector.shape_cast %367 : vector<1x1x256xf32> to vector<1x256xf32>
      %369 = vector.broadcast %366 : f32 to vector<1x256xf32>
      %370 = arith.mulf %369, %323 : vector<1x256xf32>
      %371 = arith.mulf %370, %368 : vector<1x256xf32>
      %372 = arith.addf %365, %371 : vector<1x256xf32>
      %c52 = arith.constant 52 : index
      %373 = memref.load %arg3[%c52] : memref<98xf32, #tpu.memory_space<smem>>
      %c1_158 = arith.constant 1 : index
      %c0_159 = arith.constant 0 : index
      %c80_160 = arith.constant 80 : index
      %374 = vector.load %arg8[%c1_158, %c0_159, %c80_160] : memref<2x1x435xf32, #tpu.memory_space<vmem>>, vector<1x1x256xf32>
      %375 = vector.shape_cast %374 : vector<1x1x256xf32> to vector<1x256xf32>
      %376 = vector.broadcast %373 : f32 to vector<1x256xf32>
      %377 = arith.mulf %376, %323 : vector<1x256xf32>
      %378 = arith.mulf %377, %375 : vector<1x256xf32>
      %379 = arith.addf %372, %378 : vector<1x256xf32>
      %c59 = arith.constant 59 : index
      %380 = memref.load %arg3[%c59] : memref<98xf32, #tpu.memory_space<smem>>
      %c1_161 = arith.constant 1 : index
      %c0_162 = arith.constant 0 : index
      %c96_163 = arith.constant 96 : index
      %381 = vector.load %arg8[%c1_161, %c0_162, %c96_163] : memref<2x1x435xf32, #tpu.memory_space<vmem>>, vector<1x1x256xf32>
      %382 = vector.shape_cast %381 : vector<1x1x256xf32> to vector<1x256xf32>
      %383 = vector.broadcast %380 : f32 to vector<1x256xf32>
      %384 = arith.mulf %383, %323 : vector<1x256xf32>
      %385 = arith.mulf %384, %382 : vector<1x256xf32>
      %386 = arith.addf %379, %385 : vector<1x256xf32>
      %c66 = arith.constant 66 : index
      %387 = memref.load %arg3[%c66] : memref<98xf32, #tpu.memory_space<smem>>
      %c1_164 = arith.constant 1 : index
      %c0_165 = arith.constant 0 : index
      %c112_166 = arith.constant 112 : index
      %388 = vector.load %arg8[%c1_164, %c0_165, %c112_166] : memref<2x1x435xf32, #tpu.memory_space<vmem>>, vector<1x1x256xf32>
      %389 = vector.shape_cast %388 : vector<1x1x256xf32> to vector<1x256xf32>
      %390 = vector.broadcast %387 : f32 to vector<1x256xf32>
      %391 = arith.mulf %390, %323 : vector<1x256xf32>
      %392 = arith.mulf %391, %389 : vector<1x256xf32>
      %393 = arith.addf %386, %392 : vector<1x256xf32>
      %c73 = arith.constant 73 : index
      %394 = memref.load %arg3[%c73] : memref<98xf32, #tpu.memory_space<smem>>
      %c1_167 = arith.constant 1 : index
      %c0_168 = arith.constant 0 : index
      %c128_169 = arith.constant 128 : index
      %395 = vector.load %arg8[%c1_167, %c0_168, %c128_169] : memref<2x1x435xf32, #tpu.memory_space<vmem>>, vector<1x1x256xf32>
      %396 = vector.shape_cast %395 : vector<1x1x256xf32> to vector<1x256xf32>
      %397 = vector.broadcast %394 : f32 to vector<1x256xf32>
      %398 = arith.mulf %397, %323 : vector<1x256xf32>
      %399 = arith.mulf %398, %396 : vector<1x256xf32>
      %400 = arith.addf %393, %399 : vector<1x256xf32>
      %c80_170 = arith.constant 80 : index
      %401 = memref.load %arg3[%c80_170] : memref<98xf32, #tpu.memory_space<smem>>
      %c1_171 = arith.constant 1 : index
      %c0_172 = arith.constant 0 : index
      %c144_173 = arith.constant 144 : index
      %402 = vector.load %arg8[%c1_171, %c0_172, %c144_173] : memref<2x1x435xf32, #tpu.memory_space<vmem>>, vector<1x1x256xf32>
      %403 = vector.shape_cast %402 : vector<1x1x256xf32> to vector<1x256xf32>
      %404 = vector.broadcast %401 : f32 to vector<1x256xf32>
      %405 = arith.mulf %404, %323 : vector<1x256xf32>
      %406 = arith.mulf %405, %403 : vector<1x256xf32>
      %407 = arith.addf %400, %406 : vector<1x256xf32>
      %c87 = arith.constant 87 : index
      %408 = memref.load %arg3[%c87] : memref<98xf32, #tpu.memory_space<smem>>
      %c1_174 = arith.constant 1 : index
      %c0_175 = arith.constant 0 : index
      %c160_176 = arith.constant 160 : index
      %409 = vector.load %arg8[%c1_174, %c0_175, %c160_176] : memref<2x1x435xf32, #tpu.memory_space<vmem>>, vector<1x1x256xf32>
      %410 = vector.shape_cast %409 : vector<1x1x256xf32> to vector<1x256xf32>
      %411 = vector.broadcast %408 : f32 to vector<1x256xf32>
      %412 = arith.mulf %411, %323 : vector<1x256xf32>
      %413 = arith.mulf %412, %410 : vector<1x256xf32>
      %414 = arith.addf %407, %413 : vector<1x256xf32>
      %c94_177 = arith.constant 94 : index
      %415 = memref.load %arg3[%c94_177] : memref<98xf32, #tpu.memory_space<smem>>
      %c1_178 = arith.constant 1 : index
      %c0_179 = arith.constant 0 : index
      %c176_180 = arith.constant 176 : index
      %416 = vector.load %arg8[%c1_178, %c0_179, %c176_180] : memref<2x1x435xf32, #tpu.memory_space<vmem>>, vector<1x1x256xf32>
      %417 = vector.shape_cast %416 : vector<1x1x256xf32> to vector<1x256xf32>
      %418 = vector.broadcast %415 : f32 to vector<1x256xf32>
      %419 = arith.mulf %418, %323 : vector<1x256xf32>
      %420 = arith.mulf %419, %417 : vector<1x256xf32>
      %421 = arith.addf %414, %420 : vector<1x256xf32>
      %c4 = arith.constant 4 : index
      %c0_181 = arith.constant 0 : index
      %422 = vector.load %arg4[%c4, %c0_181] : memref<7x256xf32, #tpu.memory_space<vmem>>, vector<1x256xf32>
      %c4_182 = arith.constant 4 : index
      %423 = memref.load %arg3[%c4_182] : memref<98xf32, #tpu.memory_space<smem>>
      %c0_183 = arith.constant 0 : index
      %c0_184 = arith.constant 0 : index
      %c81 = arith.constant 81 : index
      %424 = vector.load %arg8[%c0_183, %c0_184, %c81] : memref<2x1x435xf32, #tpu.memory_space<vmem>>, vector<1x1x256xf32>
      %425 = vector.shape_cast %424 : vector<1x1x256xf32> to vector<1x256xf32>
      %426 = vector.broadcast %423 : f32 to vector<1x256xf32>
      %427 = arith.mulf %426, %422 : vector<1x256xf32>
      %428 = arith.mulf %427, %425 : vector<1x256xf32>
      %429 = arith.addf %421, %428 : vector<1x256xf32>
      %c11 = arith.constant 11 : index
      %430 = memref.load %arg3[%c11] : memref<98xf32, #tpu.memory_space<smem>>
      %c0_185 = arith.constant 0 : index
      %c0_186 = arith.constant 0 : index
      %c97 = arith.constant 97 : index
      %431 = vector.load %arg8[%c0_185, %c0_186, %c97] : memref<2x1x435xf32, #tpu.memory_space<vmem>>, vector<1x1x256xf32>
      %432 = vector.shape_cast %431 : vector<1x1x256xf32> to vector<1x256xf32>
      %433 = vector.broadcast %430 : f32 to vector<1x256xf32>
      %434 = arith.mulf %433, %422 : vector<1x256xf32>
      %435 = arith.mulf %434, %432 : vector<1x256xf32>
      %436 = arith.addf %429, %435 : vector<1x256xf32>
      %c18 = arith.constant 18 : index
      %437 = memref.load %arg3[%c18] : memref<98xf32, #tpu.memory_space<smem>>
      %c0_187 = arith.constant 0 : index
      %c0_188 = arith.constant 0 : index
      %c113 = arith.constant 113 : index
      %438 = vector.load %arg8[%c0_187, %c0_188, %c113] : memref<2x1x435xf32, #tpu.memory_space<vmem>>, vector<1x1x256xf32>
      %439 = vector.shape_cast %438 : vector<1x1x256xf32> to vector<1x256xf32>
      %440 = vector.broadcast %437 : f32 to vector<1x256xf32>
      %441 = arith.mulf %440, %422 : vector<1x256xf32>
      %442 = arith.mulf %441, %439 : vector<1x256xf32>
      %443 = arith.addf %436, %442 : vector<1x256xf32>
      %c25 = arith.constant 25 : index
      %444 = memref.load %arg3[%c25] : memref<98xf32, #tpu.memory_space<smem>>
      %c0_189 = arith.constant 0 : index
      %c0_190 = arith.constant 0 : index
      %c129 = arith.constant 129 : index
      %445 = vector.load %arg8[%c0_189, %c0_190, %c129] : memref<2x1x435xf32, #tpu.memory_space<vmem>>, vector<1x1x256xf32>
      %446 = vector.shape_cast %445 : vector<1x1x256xf32> to vector<1x256xf32>
      %447 = vector.broadcast %444 : f32 to vector<1x256xf32>
      %448 = arith.mulf %447, %422 : vector<1x256xf32>
      %449 = arith.mulf %448, %446 : vector<1x256xf32>
      %450 = arith.addf %443, %449 : vector<1x256xf32>
      %c32 = arith.constant 32 : index
      %451 = memref.load %arg3[%c32] : memref<98xf32, #tpu.memory_space<smem>>
      %c0_191 = arith.constant 0 : index
      %c0_192 = arith.constant 0 : index
      %c145 = arith.constant 145 : index
      %452 = vector.load %arg8[%c0_191, %c0_192, %c145] : memref<2x1x435xf32, #tpu.memory_space<vmem>>, vector<1x1x256xf32>
      %453 = vector.shape_cast %452 : vector<1x1x256xf32> to vector<1x256xf32>
      %454 = vector.broadcast %451 : f32 to vector<1x256xf32>
      %455 = arith.mulf %454, %422 : vector<1x256xf32>
      %456 = arith.mulf %455, %453 : vector<1x256xf32>
      %457 = arith.addf %450, %456 : vector<1x256xf32>
      %c39 = arith.constant 39 : index
      %458 = memref.load %arg3[%c39] : memref<98xf32, #tpu.memory_space<smem>>
      %c0_193 = arith.constant 0 : index
      %c0_194 = arith.constant 0 : index
      %c161 = arith.constant 161 : index
      %459 = vector.load %arg8[%c0_193, %c0_194, %c161] : memref<2x1x435xf32, #tpu.memory_space<vmem>>, vector<1x1x256xf32>
      %460 = vector.shape_cast %459 : vector<1x1x256xf32> to vector<1x256xf32>
      %461 = vector.broadcast %458 : f32 to vector<1x256xf32>
      %462 = arith.mulf %461, %422 : vector<1x256xf32>
      %463 = arith.mulf %462, %460 : vector<1x256xf32>
      %464 = arith.addf %457, %463 : vector<1x256xf32>
      %c46 = arith.constant 46 : index
      %465 = memref.load %arg3[%c46] : memref<98xf32, #tpu.memory_space<smem>>
      %c0_195 = arith.constant 0 : index
      %c0_196 = arith.constant 0 : index
      %c177 = arith.constant 177 : index
      %466 = vector.load %arg8[%c0_195, %c0_196, %c177] : memref<2x1x435xf32, #tpu.memory_space<vmem>>, vector<1x1x256xf32>
      %467 = vector.shape_cast %466 : vector<1x1x256xf32> to vector<1x256xf32>
      %468 = vector.broadcast %465 : f32 to vector<1x256xf32>
      %469 = arith.mulf %468, %422 : vector<1x256xf32>
      %470 = arith.mulf %469, %467 : vector<1x256xf32>
      %471 = arith.addf %464, %470 : vector<1x256xf32>
      %c53 = arith.constant 53 : index
      %472 = memref.load %arg3[%c53] : memref<98xf32, #tpu.memory_space<smem>>
      %c1_197 = arith.constant 1 : index
      %c0_198 = arith.constant 0 : index
      %c81_199 = arith.constant 81 : index
      %473 = vector.load %arg8[%c1_197, %c0_198, %c81_199] : memref<2x1x435xf32, #tpu.memory_space<vmem>>, vector<1x1x256xf32>
      %474 = vector.shape_cast %473 : vector<1x1x256xf32> to vector<1x256xf32>
      %475 = vector.broadcast %472 : f32 to vector<1x256xf32>
      %476 = arith.mulf %475, %422 : vector<1x256xf32>
      %477 = arith.mulf %476, %474 : vector<1x256xf32>
      %478 = arith.addf %471, %477 : vector<1x256xf32>
      %c60 = arith.constant 60 : index
      %479 = memref.load %arg3[%c60] : memref<98xf32, #tpu.memory_space<smem>>
      %c1_200 = arith.constant 1 : index
      %c0_201 = arith.constant 0 : index
      %c97_202 = arith.constant 97 : index
      %480 = vector.load %arg8[%c1_200, %c0_201, %c97_202] : memref<2x1x435xf32, #tpu.memory_space<vmem>>, vector<1x1x256xf32>
      %481 = vector.shape_cast %480 : vector<1x1x256xf32> to vector<1x256xf32>
      %482 = vector.broadcast %479 : f32 to vector<1x256xf32>
      %483 = arith.mulf %482, %422 : vector<1x256xf32>
      %484 = arith.mulf %483, %481 : vector<1x256xf32>
      %485 = arith.addf %478, %484 : vector<1x256xf32>
      %c67 = arith.constant 67 : index
      %486 = memref.load %arg3[%c67] : memref<98xf32, #tpu.memory_space<smem>>
      %c1_203 = arith.constant 1 : index
      %c0_204 = arith.constant 0 : index
      %c113_205 = arith.constant 113 : index
      %487 = vector.load %arg8[%c1_203, %c0_204, %c113_205] : memref<2x1x435xf32, #tpu.memory_space<vmem>>, vector<1x1x256xf32>
      %488 = vector.shape_cast %487 : vector<1x1x256xf32> to vector<1x256xf32>
      %489 = vector.broadcast %486 : f32 to vector<1x256xf32>
      %490 = arith.mulf %489, %422 : vector<1x256xf32>
      %491 = arith.mulf %490, %488 : vector<1x256xf32>
      %492 = arith.addf %485, %491 : vector<1x256xf32>
      %c74 = arith.constant 74 : index
      %493 = memref.load %arg3[%c74] : memref<98xf32, #tpu.memory_space<smem>>
      %c1_206 = arith.constant 1 : index
      %c0_207 = arith.constant 0 : index
      %c129_208 = arith.constant 129 : index
      %494 = vector.load %arg8[%c1_206, %c0_207, %c129_208] : memref<2x1x435xf32, #tpu.memory_space<vmem>>, vector<1x1x256xf32>
      %495 = vector.shape_cast %494 : vector<1x1x256xf32> to vector<1x256xf32>
      %496 = vector.broadcast %493 : f32 to vector<1x256xf32>
      %497 = arith.mulf %496, %422 : vector<1x256xf32>
      %498 = arith.mulf %497, %495 : vector<1x256xf32>
      %499 = arith.addf %492, %498 : vector<1x256xf32>
      %c81_209 = arith.constant 81 : index
      %500 = memref.load %arg3[%c81_209] : memref<98xf32, #tpu.memory_space<smem>>
      %c1_210 = arith.constant 1 : index
      %c0_211 = arith.constant 0 : index
      %c145_212 = arith.constant 145 : index
      %501 = vector.load %arg8[%c1_210, %c0_211, %c145_212] : memref<2x1x435xf32, #tpu.memory_space<vmem>>, vector<1x1x256xf32>
      %502 = vector.shape_cast %501 : vector<1x1x256xf32> to vector<1x256xf32>
      %503 = vector.broadcast %500 : f32 to vector<1x256xf32>
      %504 = arith.mulf %503, %422 : vector<1x256xf32>
      %505 = arith.mulf %504, %502 : vector<1x256xf32>
      %506 = arith.addf %499, %505 : vector<1x256xf32>
      %c88 = arith.constant 88 : index
      %507 = memref.load %arg3[%c88] : memref<98xf32, #tpu.memory_space<smem>>
      %c1_213 = arith.constant 1 : index
      %c0_214 = arith.constant 0 : index
      %c161_215 = arith.constant 161 : index
      %508 = vector.load %arg8[%c1_213, %c0_214, %c161_215] : memref<2x1x435xf32, #tpu.memory_space<vmem>>, vector<1x1x256xf32>
      %509 = vector.shape_cast %508 : vector<1x1x256xf32> to vector<1x256xf32>
      %510 = vector.broadcast %507 : f32 to vector<1x256xf32>
      %511 = arith.mulf %510, %422 : vector<1x256xf32>
      %512 = arith.mulf %511, %509 : vector<1x256xf32>
      %513 = arith.addf %506, %512 : vector<1x256xf32>
      %c95_216 = arith.constant 95 : index
      %514 = memref.load %arg3[%c95_216] : memref<98xf32, #tpu.memory_space<smem>>
      %c1_217 = arith.constant 1 : index
      %c0_218 = arith.constant 0 : index
      %c177_219 = arith.constant 177 : index
      %515 = vector.load %arg8[%c1_217, %c0_218, %c177_219] : memref<2x1x435xf32, #tpu.memory_space<vmem>>, vector<1x1x256xf32>
      %516 = vector.shape_cast %515 : vector<1x1x256xf32> to vector<1x256xf32>
      %517 = vector.broadcast %514 : f32 to vector<1x256xf32>
      %518 = arith.mulf %517, %422 : vector<1x256xf32>
      %519 = arith.mulf %518, %516 : vector<1x256xf32>
      %520 = arith.addf %513, %519 : vector<1x256xf32>
      %c5 = arith.constant 5 : index
      %c0_220 = arith.constant 0 : index
      %521 = vector.load %arg4[%c5, %c0_220] : memref<7x256xf32, #tpu.memory_space<vmem>>, vector<1x256xf32>
      %c5_221 = arith.constant 5 : index
      %522 = memref.load %arg3[%c5_221] : memref<98xf32, #tpu.memory_space<smem>>
      %c0_222 = arith.constant 0 : index
      %c0_223 = arith.constant 0 : index
      %c82 = arith.constant 82 : index
      %523 = vector.load %arg8[%c0_222, %c0_223, %c82] : memref<2x1x435xf32, #tpu.memory_space<vmem>>, vector<1x1x256xf32>
      %524 = vector.shape_cast %523 : vector<1x1x256xf32> to vector<1x256xf32>
      %525 = vector.broadcast %522 : f32 to vector<1x256xf32>
      %526 = arith.mulf %525, %521 : vector<1x256xf32>
      %527 = arith.mulf %526, %524 : vector<1x256xf32>
      %528 = arith.addf %520, %527 : vector<1x256xf32>
      %c12 = arith.constant 12 : index
      %529 = memref.load %arg3[%c12] : memref<98xf32, #tpu.memory_space<smem>>
      %c0_224 = arith.constant 0 : index
      %c0_225 = arith.constant 0 : index
      %c98 = arith.constant 98 : index
      %530 = vector.load %arg8[%c0_224, %c0_225, %c98] : memref<2x1x435xf32, #tpu.memory_space<vmem>>, vector<1x1x256xf32>
      %531 = vector.shape_cast %530 : vector<1x1x256xf32> to vector<1x256xf32>
      %532 = vector.broadcast %529 : f32 to vector<1x256xf32>
      %533 = arith.mulf %532, %521 : vector<1x256xf32>
      %534 = arith.mulf %533, %531 : vector<1x256xf32>
      %535 = arith.addf %528, %534 : vector<1x256xf32>
      %c19 = arith.constant 19 : index
      %536 = memref.load %arg3[%c19] : memref<98xf32, #tpu.memory_space<smem>>
      %c0_226 = arith.constant 0 : index
      %c0_227 = arith.constant 0 : index
      %c114 = arith.constant 114 : index
      %537 = vector.load %arg8[%c0_226, %c0_227, %c114] : memref<2x1x435xf32, #tpu.memory_space<vmem>>, vector<1x1x256xf32>
      %538 = vector.shape_cast %537 : vector<1x1x256xf32> to vector<1x256xf32>
      %539 = vector.broadcast %536 : f32 to vector<1x256xf32>
      %540 = arith.mulf %539, %521 : vector<1x256xf32>
      %541 = arith.mulf %540, %538 : vector<1x256xf32>
      %542 = arith.addf %535, %541 : vector<1x256xf32>
      %c26 = arith.constant 26 : index
      %543 = memref.load %arg3[%c26] : memref<98xf32, #tpu.memory_space<smem>>
      %c0_228 = arith.constant 0 : index
      %c0_229 = arith.constant 0 : index
      %c130 = arith.constant 130 : index
      %544 = vector.load %arg8[%c0_228, %c0_229, %c130] : memref<2x1x435xf32, #tpu.memory_space<vmem>>, vector<1x1x256xf32>
      %545 = vector.shape_cast %544 : vector<1x1x256xf32> to vector<1x256xf32>
      %546 = vector.broadcast %543 : f32 to vector<1x256xf32>
      %547 = arith.mulf %546, %521 : vector<1x256xf32>
      %548 = arith.mulf %547, %545 : vector<1x256xf32>
      %549 = arith.addf %542, %548 : vector<1x256xf32>
      %c33 = arith.constant 33 : index
      %550 = memref.load %arg3[%c33] : memref<98xf32, #tpu.memory_space<smem>>
      %c0_230 = arith.constant 0 : index
      %c0_231 = arith.constant 0 : index
      %c146 = arith.constant 146 : index
      %551 = vector.load %arg8[%c0_230, %c0_231, %c146] : memref<2x1x435xf32, #tpu.memory_space<vmem>>, vector<1x1x256xf32>
      %552 = vector.shape_cast %551 : vector<1x1x256xf32> to vector<1x256xf32>
      %553 = vector.broadcast %550 : f32 to vector<1x256xf32>
      %554 = arith.mulf %553, %521 : vector<1x256xf32>
      %555 = arith.mulf %554, %552 : vector<1x256xf32>
      %556 = arith.addf %549, %555 : vector<1x256xf32>
      %c40 = arith.constant 40 : index
      %557 = memref.load %arg3[%c40] : memref<98xf32, #tpu.memory_space<smem>>
      %c0_232 = arith.constant 0 : index
      %c0_233 = arith.constant 0 : index
      %c162 = arith.constant 162 : index
      %558 = vector.load %arg8[%c0_232, %c0_233, %c162] : memref<2x1x435xf32, #tpu.memory_space<vmem>>, vector<1x1x256xf32>
      %559 = vector.shape_cast %558 : vector<1x1x256xf32> to vector<1x256xf32>
      %560 = vector.broadcast %557 : f32 to vector<1x256xf32>
      %561 = arith.mulf %560, %521 : vector<1x256xf32>
      %562 = arith.mulf %561, %559 : vector<1x256xf32>
      %563 = arith.addf %556, %562 : vector<1x256xf32>
      %c47 = arith.constant 47 : index
      %564 = memref.load %arg3[%c47] : memref<98xf32, #tpu.memory_space<smem>>
      %c0_234 = arith.constant 0 : index
      %c0_235 = arith.constant 0 : index
      %c178 = arith.constant 178 : index
      %565 = vector.load %arg8[%c0_234, %c0_235, %c178] : memref<2x1x435xf32, #tpu.memory_space<vmem>>, vector<1x1x256xf32>
      %566 = vector.shape_cast %565 : vector<1x1x256xf32> to vector<1x256xf32>
      %567 = vector.broadcast %564 : f32 to vector<1x256xf32>
      %568 = arith.mulf %567, %521 : vector<1x256xf32>
      %569 = arith.mulf %568, %566 : vector<1x256xf32>
      %570 = arith.addf %563, %569 : vector<1x256xf32>
      %c54 = arith.constant 54 : index
      %571 = memref.load %arg3[%c54] : memref<98xf32, #tpu.memory_space<smem>>
      %c1_236 = arith.constant 1 : index
      %c0_237 = arith.constant 0 : index
      %c82_238 = arith.constant 82 : index
      %572 = vector.load %arg8[%c1_236, %c0_237, %c82_238] : memref<2x1x435xf32, #tpu.memory_space<vmem>>, vector<1x1x256xf32>
      %573 = vector.shape_cast %572 : vector<1x1x256xf32> to vector<1x256xf32>
      %574 = vector.broadcast %571 : f32 to vector<1x256xf32>
      %575 = arith.mulf %574, %521 : vector<1x256xf32>
      %576 = arith.mulf %575, %573 : vector<1x256xf32>
      %577 = arith.addf %570, %576 : vector<1x256xf32>
      %c61 = arith.constant 61 : index
      %578 = memref.load %arg3[%c61] : memref<98xf32, #tpu.memory_space<smem>>
      %c1_239 = arith.constant 1 : index
      %c0_240 = arith.constant 0 : index
      %c98_241 = arith.constant 98 : index
      %579 = vector.load %arg8[%c1_239, %c0_240, %c98_241] : memref<2x1x435xf32, #tpu.memory_space<vmem>>, vector<1x1x256xf32>
      %580 = vector.shape_cast %579 : vector<1x1x256xf32> to vector<1x256xf32>
      %581 = vector.broadcast %578 : f32 to vector<1x256xf32>
      %582 = arith.mulf %581, %521 : vector<1x256xf32>
      %583 = arith.mulf %582, %580 : vector<1x256xf32>
      %584 = arith.addf %577, %583 : vector<1x256xf32>
      %c68 = arith.constant 68 : index
      %585 = memref.load %arg3[%c68] : memref<98xf32, #tpu.memory_space<smem>>
      %c1_242 = arith.constant 1 : index
      %c0_243 = arith.constant 0 : index
      %c114_244 = arith.constant 114 : index
      %586 = vector.load %arg8[%c1_242, %c0_243, %c114_244] : memref<2x1x435xf32, #tpu.memory_space<vmem>>, vector<1x1x256xf32>
      %587 = vector.shape_cast %586 : vector<1x1x256xf32> to vector<1x256xf32>
      %588 = vector.broadcast %585 : f32 to vector<1x256xf32>
      %589 = arith.mulf %588, %521 : vector<1x256xf32>
      %590 = arith.mulf %589, %587 : vector<1x256xf32>
      %591 = arith.addf %584, %590 : vector<1x256xf32>
      %c75 = arith.constant 75 : index
      %592 = memref.load %arg3[%c75] : memref<98xf32, #tpu.memory_space<smem>>
      %c1_245 = arith.constant 1 : index
      %c0_246 = arith.constant 0 : index
      %c130_247 = arith.constant 130 : index
      %593 = vector.load %arg8[%c1_245, %c0_246, %c130_247] : memref<2x1x435xf32, #tpu.memory_space<vmem>>, vector<1x1x256xf32>
      %594 = vector.shape_cast %593 : vector<1x1x256xf32> to vector<1x256xf32>
      %595 = vector.broadcast %592 : f32 to vector<1x256xf32>
      %596 = arith.mulf %595, %521 : vector<1x256xf32>
      %597 = arith.mulf %596, %594 : vector<1x256xf32>
      %598 = arith.addf %591, %597 : vector<1x256xf32>
      %c82_248 = arith.constant 82 : index
      %599 = memref.load %arg3[%c82_248] : memref<98xf32, #tpu.memory_space<smem>>
      %c1_249 = arith.constant 1 : index
      %c0_250 = arith.constant 0 : index
      %c146_251 = arith.constant 146 : index
      %600 = vector.load %arg8[%c1_249, %c0_250, %c146_251] : memref<2x1x435xf32, #tpu.memory_space<vmem>>, vector<1x1x256xf32>
      %601 = vector.shape_cast %600 : vector<1x1x256xf32> to vector<1x256xf32>
      %602 = vector.broadcast %599 : f32 to vector<1x256xf32>
      %603 = arith.mulf %602, %521 : vector<1x256xf32>
      %604 = arith.mulf %603, %601 : vector<1x256xf32>
      %605 = arith.addf %598, %604 : vector<1x256xf32>
      %c89 = arith.constant 89 : index
      %606 = memref.load %arg3[%c89] : memref<98xf32, #tpu.memory_space<smem>>
      %c1_252 = arith.constant 1 : index
      %c0_253 = arith.constant 0 : index
      %c162_254 = arith.constant 162 : index
      %607 = vector.load %arg8[%c1_252, %c0_253, %c162_254] : memref<2x1x435xf32, #tpu.memory_space<vmem>>, vector<1x1x256xf32>
      %608 = vector.shape_cast %607 : vector<1x1x256xf32> to vector<1x256xf32>
      %609 = vector.broadcast %606 : f32 to vector<1x256xf32>
      %610 = arith.mulf %609, %521 : vector<1x256xf32>
      %611 = arith.mulf %610, %608 : vector<1x256xf32>
      %612 = arith.addf %605, %611 : vector<1x256xf32>
      %c96_255 = arith.constant 96 : index
      %613 = memref.load %arg3[%c96_255] : memref<98xf32, #tpu.memory_space<smem>>
      %c1_256 = arith.constant 1 : index
      %c0_257 = arith.constant 0 : index
      %c178_258 = arith.constant 178 : index
      %614 = vector.load %arg8[%c1_256, %c0_257, %c178_258] : memref<2x1x435xf32, #tpu.memory_space<vmem>>, vector<1x1x256xf32>
      %615 = vector.shape_cast %614 : vector<1x1x256xf32> to vector<1x256xf32>
      %616 = vector.broadcast %613 : f32 to vector<1x256xf32>
      %617 = arith.mulf %616, %521 : vector<1x256xf32>
      %618 = arith.mulf %617, %615 : vector<1x256xf32>
      %619 = arith.addf %612, %618 : vector<1x256xf32>
      %c6 = arith.constant 6 : index
      %c0_259 = arith.constant 0 : index
      %620 = vector.load %arg4[%c6, %c0_259] : memref<7x256xf32, #tpu.memory_space<vmem>>, vector<1x256xf32>
      %c6_260 = arith.constant 6 : index
      %621 = memref.load %arg3[%c6_260] : memref<98xf32, #tpu.memory_space<smem>>
      %c0_261 = arith.constant 0 : index
      %c0_262 = arith.constant 0 : index
      %c83 = arith.constant 83 : index
      %622 = vector.load %arg8[%c0_261, %c0_262, %c83] : memref<2x1x435xf32, #tpu.memory_space<vmem>>, vector<1x1x256xf32>
      %623 = vector.shape_cast %622 : vector<1x1x256xf32> to vector<1x256xf32>
      %624 = vector.broadcast %621 : f32 to vector<1x256xf32>
      %625 = arith.mulf %624, %620 : vector<1x256xf32>
      %626 = arith.mulf %625, %623 : vector<1x256xf32>
      %627 = arith.addf %619, %626 : vector<1x256xf32>
      %c13 = arith.constant 13 : index
      %628 = memref.load %arg3[%c13] : memref<98xf32, #tpu.memory_space<smem>>
      %c0_263 = arith.constant 0 : index
      %c0_264 = arith.constant 0 : index
      %c99 = arith.constant 99 : index
      %629 = vector.load %arg8[%c0_263, %c0_264, %c99] : memref<2x1x435xf32, #tpu.memory_space<vmem>>, vector<1x1x256xf32>
      %630 = vector.shape_cast %629 : vector<1x1x256xf32> to vector<1x256xf32>
      %631 = vector.broadcast %628 : f32 to vector<1x256xf32>
      %632 = arith.mulf %631, %620 : vector<1x256xf32>
      %633 = arith.mulf %632, %630 : vector<1x256xf32>
      %634 = arith.addf %627, %633 : vector<1x256xf32>
      %c20 = arith.constant 20 : index
      %635 = memref.load %arg3[%c20] : memref<98xf32, #tpu.memory_space<smem>>
      %c0_265 = arith.constant 0 : index
      %c0_266 = arith.constant 0 : index
      %c115 = arith.constant 115 : index
      %636 = vector.load %arg8[%c0_265, %c0_266, %c115] : memref<2x1x435xf32, #tpu.memory_space<vmem>>, vector<1x1x256xf32>
      %637 = vector.shape_cast %636 : vector<1x1x256xf32> to vector<1x256xf32>
      %638 = vector.broadcast %635 : f32 to vector<1x256xf32>
      %639 = arith.mulf %638, %620 : vector<1x256xf32>
      %640 = arith.mulf %639, %637 : vector<1x256xf32>
      %641 = arith.addf %634, %640 : vector<1x256xf32>
      %c27 = arith.constant 27 : index
      %642 = memref.load %arg3[%c27] : memref<98xf32, #tpu.memory_space<smem>>
      %c0_267 = arith.constant 0 : index
      %c0_268 = arith.constant 0 : index
      %c131 = arith.constant 131 : index
      %643 = vector.load %arg8[%c0_267, %c0_268, %c131] : memref<2x1x435xf32, #tpu.memory_space<vmem>>, vector<1x1x256xf32>
      %644 = vector.shape_cast %643 : vector<1x1x256xf32> to vector<1x256xf32>
      %645 = vector.broadcast %642 : f32 to vector<1x256xf32>
      %646 = arith.mulf %645, %620 : vector<1x256xf32>
      %647 = arith.mulf %646, %644 : vector<1x256xf32>
      %648 = arith.addf %641, %647 : vector<1x256xf32>
      %c34 = arith.constant 34 : index
      %649 = memref.load %arg3[%c34] : memref<98xf32, #tpu.memory_space<smem>>
      %c0_269 = arith.constant 0 : index
      %c0_270 = arith.constant 0 : index
      %c147 = arith.constant 147 : index
      %650 = vector.load %arg8[%c0_269, %c0_270, %c147] : memref<2x1x435xf32, #tpu.memory_space<vmem>>, vector<1x1x256xf32>
      %651 = vector.shape_cast %650 : vector<1x1x256xf32> to vector<1x256xf32>
      %652 = vector.broadcast %649 : f32 to vector<1x256xf32>
      %653 = arith.mulf %652, %620 : vector<1x256xf32>
      %654 = arith.mulf %653, %651 : vector<1x256xf32>
      %655 = arith.addf %648, %654 : vector<1x256xf32>
      %c41 = arith.constant 41 : index
      %656 = memref.load %arg3[%c41] : memref<98xf32, #tpu.memory_space<smem>>
      %c0_271 = arith.constant 0 : index
      %c0_272 = arith.constant 0 : index
      %c163 = arith.constant 163 : index
      %657 = vector.load %arg8[%c0_271, %c0_272, %c163] : memref<2x1x435xf32, #tpu.memory_space<vmem>>, vector<1x1x256xf32>
      %658 = vector.shape_cast %657 : vector<1x1x256xf32> to vector<1x256xf32>
      %659 = vector.broadcast %656 : f32 to vector<1x256xf32>
      %660 = arith.mulf %659, %620 : vector<1x256xf32>
      %661 = arith.mulf %660, %658 : vector<1x256xf32>
      %662 = arith.addf %655, %661 : vector<1x256xf32>
      %c48 = arith.constant 48 : index
      %663 = memref.load %arg3[%c48] : memref<98xf32, #tpu.memory_space<smem>>
      %c0_273 = arith.constant 0 : index
      %c0_274 = arith.constant 0 : index
      %c179 = arith.constant 179 : index
      %664 = vector.load %arg8[%c0_273, %c0_274, %c179] : memref<2x1x435xf32, #tpu.memory_space<vmem>>, vector<1x1x256xf32>
      %665 = vector.shape_cast %664 : vector<1x1x256xf32> to vector<1x256xf32>
      %666 = vector.broadcast %663 : f32 to vector<1x256xf32>
      %667 = arith.mulf %666, %620 : vector<1x256xf32>
      %668 = arith.mulf %667, %665 : vector<1x256xf32>
      %669 = arith.addf %662, %668 : vector<1x256xf32>
      %c55 = arith.constant 55 : index
      %670 = memref.load %arg3[%c55] : memref<98xf32, #tpu.memory_space<smem>>
      %c1_275 = arith.constant 1 : index
      %c0_276 = arith.constant 0 : index
      %c83_277 = arith.constant 83 : index
      %671 = vector.load %arg8[%c1_275, %c0_276, %c83_277] : memref<2x1x435xf32, #tpu.memory_space<vmem>>, vector<1x1x256xf32>
      %672 = vector.shape_cast %671 : vector<1x1x256xf32> to vector<1x256xf32>
      %673 = vector.broadcast %670 : f32 to vector<1x256xf32>
      %674 = arith.mulf %673, %620 : vector<1x256xf32>
      %675 = arith.mulf %674, %672 : vector<1x256xf32>
      %676 = arith.addf %669, %675 : vector<1x256xf32>
      %c62 = arith.constant 62 : index
      %677 = memref.load %arg3[%c62] : memref<98xf32, #tpu.memory_space<smem>>
      %c1_278 = arith.constant 1 : index
      %c0_279 = arith.constant 0 : index
      %c99_280 = arith.constant 99 : index
      %678 = vector.load %arg8[%c1_278, %c0_279, %c99_280] : memref<2x1x435xf32, #tpu.memory_space<vmem>>, vector<1x1x256xf32>
      %679 = vector.shape_cast %678 : vector<1x1x256xf32> to vector<1x256xf32>
      %680 = vector.broadcast %677 : f32 to vector<1x256xf32>
      %681 = arith.mulf %680, %620 : vector<1x256xf32>
      %682 = arith.mulf %681, %679 : vector<1x256xf32>
      %683 = arith.addf %676, %682 : vector<1x256xf32>
      %c69 = arith.constant 69 : index
      %684 = memref.load %arg3[%c69] : memref<98xf32, #tpu.memory_space<smem>>
      %c1_281 = arith.constant 1 : index
      %c0_282 = arith.constant 0 : index
      %c115_283 = arith.constant 115 : index
      %685 = vector.load %arg8[%c1_281, %c0_282, %c115_283] : memref<2x1x435xf32, #tpu.memory_space<vmem>>, vector<1x1x256xf32>
      %686 = vector.shape_cast %685 : vector<1x1x256xf32> to vector<1x256xf32>
      %687 = vector.broadcast %684 : f32 to vector<1x256xf32>
      %688 = arith.mulf %687, %620 : vector<1x256xf32>
      %689 = arith.mulf %688, %686 : vector<1x256xf32>
      %690 = arith.addf %683, %689 : vector<1x256xf32>
      %c76 = arith.constant 76 : index
      %691 = memref.load %arg3[%c76] : memref<98xf32, #tpu.memory_space<smem>>
      %c1_284 = arith.constant 1 : index
      %c0_285 = arith.constant 0 : index
      %c131_286 = arith.constant 131 : index
      %692 = vector.load %arg8[%c1_284, %c0_285, %c131_286] : memref<2x1x435xf32, #tpu.memory_space<vmem>>, vector<1x1x256xf32>
      %693 = vector.shape_cast %692 : vector<1x1x256xf32> to vector<1x256xf32>
      %694 = vector.broadcast %691 : f32 to vector<1x256xf32>
      %695 = arith.mulf %694, %620 : vector<1x256xf32>
      %696 = arith.mulf %695, %693 : vector<1x256xf32>
      %697 = arith.addf %690, %696 : vector<1x256xf32>
      %c83_287 = arith.constant 83 : index
      %698 = memref.load %arg3[%c83_287] : memref<98xf32, #tpu.memory_space<smem>>
      %c1_288 = arith.constant 1 : index
      %c0_289 = arith.constant 0 : index
      %c147_290 = arith.constant 147 : index
      %699 = vector.load %arg8[%c1_288, %c0_289, %c147_290] : memref<2x1x435xf32, #tpu.memory_space<vmem>>, vector<1x1x256xf32>
      %700 = vector.shape_cast %699 : vector<1x1x256xf32> to vector<1x256xf32>
      %701 = vector.broadcast %698 : f32 to vector<1x256xf32>
      %702 = arith.mulf %701, %620 : vector<1x256xf32>
      %703 = arith.mulf %702, %700 : vector<1x256xf32>
      %704 = arith.addf %697, %703 : vector<1x256xf32>
      %c90 = arith.constant 90 : index
      %705 = memref.load %arg3[%c90] : memref<98xf32, #tpu.memory_space<smem>>
      %c1_291 = arith.constant 1 : index
      %c0_292 = arith.constant 0 : index
      %c163_293 = arith.constant 163 : index
      %706 = vector.load %arg8[%c1_291, %c0_292, %c163_293] : memref<2x1x435xf32, #tpu.memory_space<vmem>>, vector<1x1x256xf32>
      %707 = vector.shape_cast %706 : vector<1x1x256xf32> to vector<1x256xf32>
      %708 = vector.broadcast %705 : f32 to vector<1x256xf32>
      %709 = arith.mulf %708, %620 : vector<1x256xf32>
      %710 = arith.mulf %709, %707 : vector<1x256xf32>
      %711 = arith.addf %704, %710 : vector<1x256xf32>
      %c97_294 = arith.constant 97 : index
      %712 = memref.load %arg3[%c97_294] : memref<98xf32, #tpu.memory_space<smem>>
      %c1_295 = arith.constant 1 : index
      %c0_296 = arith.constant 0 : index
      %c179_297 = arith.constant 179 : index
      %713 = vector.load %arg8[%c1_295, %c0_296, %c179_297] : memref<2x1x435xf32, #tpu.memory_space<vmem>>, vector<1x1x256xf32>
      %714 = vector.shape_cast %713 : vector<1x1x256xf32> to vector<1x256xf32>
      %715 = vector.broadcast %712 : f32 to vector<1x256xf32>
      %716 = arith.mulf %715, %620 : vector<1x256xf32>
      %717 = arith.mulf %716, %714 : vector<1x256xf32>
      %718 = arith.addf %711, %717 : vector<1x256xf32>
      %719 = arith.negf %718 : vector<1x256xf32>
      %720 = math.exp %719 : vector<1x256xf32>
      %cst_298 = arith.constant 1.000000e+00 : f32
      %721 = vector.broadcast %cst_298 : f32 to vector<1x256xf32>
      %722 = arith.addf %721, %720 : vector<1x256xf32>
      %723 = arith.divf %721, %722 : vector<1x256xf32>
      %c0_299 = arith.constant 0 : index
      %c0_300 = arith.constant 0 : index
      %c0_301 = arith.constant 0 : index
      %724 = vector.load %arg5[%c0_299, %c0_300, %c0_301] : memref<1x1x256xf32, #tpu.memory_space<vmem>>, vector<1x1x256xf32>
      %725 = vector.shape_cast %724 : vector<1x1x256xf32> to vector<1x256xf32>
      %726 = vector.shape_cast %723 : vector<1x256xf32> to vector<1x1x256xf32>
      tpu.vector_store %arg5[%c0_299, %c0_300, %c0_301], %726 {strides = array<i32>} : memref<1x1x256xf32, #tpu.memory_space<vmem>>, vector<1x1x256xf32>,
    } else {
    }
    return
  }
  func.func @transform_0(%arg0: i32, %arg1: i32) -> (i32, i32, i32) {
    %c0_i32 = arith.constant 0 : i32
    %c0_i32_0 = arith.constant 0 : i32
    return %arg0, %arg1, %c0_i32 : i32, i32, i32
  }
  func.func @transform_1(%arg0: i32, %arg1: i32) -> i32 {
    %c0_i32 = arith.constant 0 : i32
    %c0_i32_0 = arith.constant 0 : i32
    return %c0_i32 : i32
  }
  func.func @transform_2(%arg0: i32, %arg1: i32) -> (i32, i32) {
    %c0_i32 = arith.constant 0 : i32
    %c0_i32_0 = arith.constant 0 : i32
    %c0_i32_1 = arith.constant 0 : i32
    return %c0_i32, %c0_i32_0 : i32, i32
  }
  func.func @transform_3(%arg0: i32, %arg1: i32) -> (i32, i32, i32) {
    %c0_i32 = arith.constant 0 : i32
    %c0_i32_0 = arith.constant 0 : i32
    %c0_i32_1 = arith.constant 0 : i32
    return %arg0, %c0_i32, %c0_i32_0 : i32, i32, i32
  }
}

</mosaic_0001>

<bundles_post_ra>
// kernel: tpu_custom_call.1
= control target key start
LH: loop header
LB: loop body
LE: loop exit
PB: predicated region body
PF: predicated region fallthrough
CT: control target
= control target key end

     0   :  { %8 = vsyncpa [#allocation6], 0  ;;  %s2840_s0 = inlined_call_operand.hbm [shape: f32[2,4,256], index: 0, kind: input, shape index: {}]   ;;  %s2841_s1 = inlined_call_operand.vmem [shape: f32[98], index: 1, kind: input, shape index: {}]   ;;  %s2842_s2 = inlined_call_operand.hbm [shape: f32[7,256], index: 2, kind: input, shape index: {}]   ;;  %s2843_s3 = inlined_call_operand.hbm [shape: f32[2,1,256], index: 3, kind: output, shape index: {}]  }
   0x1   :  { %10 = vsyncpa [#allocation6 + $0x1], 0 }
   0x2   :  { %11 = vsyncpa [#allocation8], 0 }
   0x3   :  { %12 = vsyncpa [#allocation11], 0 }
   0x4   :  { %13 = vsyncpa [#allocation7], 0 }
   0x5   :  { %15 = vsyncpa [#allocation7 + $0x1], 0  ;;  %s1995_s12 = smov 0   ;;  %s1997_s13 = smov 0  }
   0x6   :  { %s1999_s14 = smov 0   ;;  %s2001_s15 = smov 0  }
   0x7   :  { %s2003_s16 = smov 0   ;;  %s2005_s17 = smov 0  }
   0x8 LB: > { %s1503_s18 = sadd.s32 4294967295, %s1918_s17   ;;  %s1504_s19 = sadd.s32 4294967294, %s1918_s17   ;;  %s1918_s17 = sphi %s2005_s17, %s21_s17   ;;  %s1914_s16 = sphi %s2003_s16, %s2870_s16   ;;  %s1910_s15 = sphi %s2001_s15, %s2869_s15   ;;  %s1906_s14 = sphi %s1999_s14, %s2868_s14   ;;  %s1902_s13 = sphi %s1997_s13, %s2867_s13   ;;  %s1898_s12 = sphi %s1995_s12, %s2866_s12  }
   0x9   : > { %p55_p0 = scmp.ne.s32.totalorder %s1902_s13, %s1898_s12  ;;  %p2029_p1 = scmp.eq.s32.totalorder %s1503_s18, 0 }
   0xa   : > { %p2033_p2 = scmp.eq.s32.totalorder %s1503_s18, 1  ;;  %p127_p3 = scmp.eq.s32.totalorder %s1504_s19, 1 }
   0xb   : > { %s2848_s20 = scalar_select %p2029_p1, 1, 0 }
   0xc   : > { %s2849_s21 = scalar_select %p2033_p2, 1, 0 }
   0xd   : > { %p2039_p4 = por %p2029_p1, %p55_p0  ;;  %p1505_p5 = scmp.ge.s32.totalorder %s1918_s17, 1 }
   0xe   : > { %p2044_p6 = por %p127_p3, %p55_p0  ;;  %p134_p7 = scmp.lt.s32.totalorder %s1918_s17, 3 }
   0xf   : > { %s2850_s22 = scalar_select %p2039_p4, 1, 0 }
  0x10   : > { %s2851_s23 = scalar_select %p2044_p6, 1, 0 }
  0x11   : > { %s147_s26 = sshll.u32 %s2841_s1, 4  ;;  %p2052_p8 = pnand %p1505_p5, %p134_p7  ;;  %s148_s26 = int_to_ptr.vmem [resolvable:$true] %s147_s26 }
  0x12   : > { %s1920_s28 = smov [#allocation10]   ;;  %s1761_s4 = scalar_lea.vmem %s148_s26, 16 }
  0x13   : > { %s2852_s27 = scalar_select %p2052_p8, 1, 0 }
  0x14   : > { %p1634_p10 = pneg %p2052_p8  ;;  %s158_s29 = sshll.u32 %s1920_s28, 4  ;;  %s159_s29 = int_to_ptr.vmem [resolvable:$true] %s158_s29 }
  0x15   : > { %p1762_p12 = scmp.ne.s32.totalorder %s148_s26, %s1761_s4  ;;  %p1769_p5 = scmp.lt.s32.totalorder %s148_s26, %s148_s26 }
  0x16   : > { %p2061_p11 = pnand %p1634_p10, %p2029_p1  ;;  %p1770_p7 = scmp.lt.s32.totalorder %s1761_s4, %s1761_s4 }
  0x18   : > { %p1763_p13 = pneg %p2061_p11  ;;  %p1771_p9 = por %p1770_p7, %p1769_p5 }
  0x1a   : > { %p1764_p0 = pnand %p1763_p13, %p1762_p12 }
  0x1c   : > { %p1765_p3 = pneg %p1764_p0 }
  0x1e   : > { %p1772_p6 = pnand %p1771_p9, %p1765_p3 }
  0x20   : > { %1775 = shalt.err (!%p1772_p6)
}
  0x21   : > { %s1921_s5 = smov [#allocation9]   ;;  %s1787_s6 = scalar_lea.vmem %s159_s29, 256 }
  0x22   : > { %1637 = dma.vmem_to_smem (!%p2061_p11), %s148_s26, 16, %s1921_s5, [#allocation8]  }
  0x23   : > { %p1788_p10 = scmp.ne.s32.totalorder %s159_s29, %s1787_s6  ;;  %p1795_p8 = scmp.lt.s32.totalorder %s159_s29, %s159_s29 }
  0x24   : > { %p1796_p2 = scmp.lt.s32.totalorder %s1787_s6, %s1787_s6 }
  0x25   : > { %p1790_p1 = pnand %p1788_p10, %p1763_p13 }
  0x26   : > { %p1797_p12 = por %p1796_p2, %p1795_p8 }
  0x27   : > { %p1791_p4 = pneg %p1790_p1 }
  0x29   : > { %p1798_p0 = pnand %p1797_p12, %p1791_p4 }
  0x2b   : > { %1801 = shalt.err (!%p1798_p0)
}
  0x2c   : > { %1640 = dma.hbm_to_vmem [thread:$0]  (!%p2061_p11), %s2842_s2, 256, %s159_s29, [#allocation11]  }
  0x2d   : > { %s33_s9 = sadd.s32 1, %s1914_s16  ;;  %s42_s10 = sadd.s32 1, %s1906_s14 }
  0x2e   : > { %p35_p1 = scmp.ge.s32.totalorder %s33_s9, 2  ;;  %p49_p2 = scmp.ne.s32.totalorder %s1906_s14, %s1902_s13 }
  0x2f   : > { %p50_p4 = scmp.eq.s32.totalorder %s1918_s17, 0  ;;  %p1651_p6 = scmp.lt.s32.totalorder %s1918_s17, 2 }
  0x30   : > { %s2872_s9 = smov (%p35_p1, %s33_s9), 0  ;;  %p2854_p9 = scmp.ne.s32.totalorder %s2849_s21, 0 }
  0x31   : > { %p51_p8 = por %p50_p4, %p49_p2  ;;  %s37_s18 = ssub.s32 %s1914_s16, %s2872_s9 }
  0x32   : > { %p2084_p13 = por %p2854_p9, %p49_p2  ;;  %s169_s19 = sand.u32 1, %s1906_s14  }
  0x33   : > { %p40_p3 = scmp.eq.s32.totalorder %s37_s18, 0  ;;  %s1509_s24 = sshll.u32 %s169_s19, 3 }
  0x34   : > { %s1620_s25 = sshll.u32 %s1914_s16, 7  ;;  %s173_s4 = scalar_lea.vmem [#allocation5], %s1509_s24 }
  0x35   : > { %s2093_s26 = scalar_select %p40_p3, %s1906_s14, %s42_s10  }
  0x36   : > { %s181_s30 = scalar_lea.hbm %s2840_s0, %s1620_s25  ;;  %s183_s5 = sshll.u32 %s173_s4, 4  ;;  %s184_s5 = int_to_ptr.vmem [resolvable:$true] %s183_s5 }
  0x37   : > { %p2100_p11 = pnand %p1651_p6, %p51_p8  ;;  %s170_s6 = scalar_lea.sflag [#allocation6], %s169_s19 }
  0x38   : > { %s1815_s7 = scalar_lea.vmem %s184_s5, 128  ;;  %s1922_s8 = smov [#allocation5]  }
  0x39   : > { %p1804_p5 = pneg %p2100_p11  ;;  %p1816_p7 = scmp.ne.s32.totalorder %s184_s5, %s1815_s7 }
  0x3a   : > { %s1820_s10 = sshll.u32 %s1922_s8, 4  ;;  %s1821_s10 = int_to_ptr.vmem [resolvable:$false] %s1820_s10 }
  0x3b   : > { %p1818_p10 = pnand %p1816_p7, %p1804_p5  ;;  %s1822_s18 = scalar_lea.vmem %s1821_s10, 256 }
  0x3c   : > { %p1823_p0 = scmp.lt.s32.totalorder %s184_s5, %s1821_s10  ;;  %p1824_p1 = scmp.lt.s32.totalorder %s1822_s18, %s1815_s7 }
  0x3d   : > { %p1819_p12 = pneg %p1818_p10 }
  0x3e   : > { %p1825_p2 = por %p1824_p1, %p1823_p0 }
  0x40   : > { %p1826_p4 = pnand %p1825_p2, %p1819_p12 }
  0x42   : > { %1829 = shalt.err (!%p1826_p4)
}
  0x43   : > { %1644 = dma.hbm_to_vmem [thread:$0]  (!%p2100_p11), %s181_s30, 128, %s184_s5, %s170_s6  }
  0x44   : > { %p2857_p6 = scmp.ne.s32.totalorder %s2852_s27, 0 }
  0x45   : > { %s2111_s19 = sand.u32 (!%p2857_p6), 1, %s1902_s13   ;;  %p2858_p8 = scmp.ne.s32.totalorder (!%p2857_p6), %s2850_s22, 0 }
  0x46   : > { %192 = sbr.rel (%p2857_p6) target bundleno = 488 (0x1e8), region = 32  ;;  %s1513_s24 = sshll.u32 (!%p2857_p6), %s2111_s19, 3 }
  0x47   : > { %s195_s25 = scalar_lea.sflag (!%p2857_p6), [#allocation6], %s2111_s19  ;;  %s198_s28 = scalar_lea.vmem (!%p2857_p6), [#allocation5], %s1513_s24 }
  0x4b   : > { %1881 = dma.done.wait (%p2858_p8), %s195_s25, 128  }
  0x4c   : > { %1883 = vsyncadd (%p2858_p8), %s195_s25, 4294967168  ;;  %p2859_p9 = scmp.ne.s32.totalorder %s2848_s20, 0 }
  0x4e   : > { %1885 = dma.done.wait (%p2859_p9), [#allocation8], 16  }
  0x4f   : > { %1887 = vsyncadd (%p2859_p9), [#allocation8], 4294967280 }
  0x50   : > { %1889 = dma.done.wait (%p2859_p9), [#allocation11], 256  }
  0x51   : > { %1891 = vsyncadd (%p2859_p9), [#allocation11], 4294967040 }
  0x52   : > { %211 = sfence }
  0x53   : > { %v234_v0 = vlaneseq  ;;  %v249_v1 = vld [vmem:[%s198_s28] sm:$0xff]  ;;  %vm253_vm0 = vcmask 1043456   ;;  %v1923_v8 = vmov 0.0   ;;  %v1924_v9 = vmov -inf   ;;  %s1926_s20 = smov 51   ;;  %s1927_s22 = smov 19  }
  0x54   : > { %v251_v2 = vcombine.high %v249_v1, %v249_v1  ;;  %v254_v3 = vsel %vm253_vm0, %v249_v1, 0.0  ;;  %v268_v4 = vsel %vm253_vm0, %v249_v1, -inf  ;;  %v1925_v20 = vmov 1966171168   ;;  %s1928_s27 = smov 35   ;;  %s1929_s29 = smov 3  }
  0x55   : > { %vm2127_vm1 = vcmp.lt.s32.totalorder %v234_v0, 256  ;;  %vm2131_vm2 = vcmp.ge.s32.totalorder %v234_v0, 77  ;;  %vm241_vm3 = vcmp.lt.s32.totalorder %v234_v0, 128  ;;  %v255_v7 = vrot.slane %v254_v3, 4  ;;  %s1930_s30 = smov 115   ;;  %s1931_s4 = smov 99  }
  0x56   : > { %238 = vst.msk [vmem:[#allocation2] sm:$0x3] %vm2127_vm1, %v1923_v8  ;;  %239 = vst.msk [vmem:[#allocation3] sm:$0x3] %vm2127_vm1, %v1924_v9  ;;  %v261_v10 = vsel %vm253_vm0, %v251_v2, 0.0  ;;  %v269_v11 = vrot.slane %v268_v4, 4  ;;  %v287_v21 = vunpack.c.l.s4 %v1925_v20 }
  0x57   : > { %vm242_vm4 = vmand %vm2131_vm2, %vm241_vm3  ;;  %v275_v12 = vsel %vm253_vm0, %v251_v2, -inf  ;;  %v256_v13 = vadd.f32 %v255_v7, %v254_v3  ;;  %v262_v14 = vrot.slane %v261_v10, 4  ;;  %vm245_vm5 = vcmp.lt.s32.totalorder %v234_v0, 51  ;;  %s1932_s5 = smov 83   ;;  %s1933_s21 = smov 50  }
  0x58   : > { %243 = vst.msk [vmem:[#allocation4] sm:$0x1] %vm242_vm4, %v1923_v8  ;;  %v276_v15 = vrot.slane %v275_v12, 4  ;;  %244 = vst.msk [vmem:[#allocation4 + $0x4] sm:$0x1] %vm242_vm4, %v1923_v8  ;;  %v270_v16 = vmax.f32 %v268_v4, %v269_v11  ;;  %v290_v27 = vshrl.u32 %v234_v0, 7  ;;  %v288_v31 = vunpack.c.0.s8 %v287_v21 }
  0x59   : > { %v257_v17 = vrot.slane %v256_v13, 2  ;;  %v263_v18 = vadd.f32 %v262_v14, %v261_v10  ;;  %247 = vst.msk [vmem:[#allocation4 + $0x3] sm:$0x1] %vm245_vm5, %v1923_v8  ;;  %248 = vst.msk [vmem:[#allocation4 + $0x7] sm:$0x1] %vm245_vm5, %v1923_v8  ;;  %s1934_s6 = smov 34  }
  0x5a   : > { %v277_v19 = vmax.f32 %v275_v12, %v276_v15  ;;  %v271_v22 = vrot.slane %v270_v16, 2  ;;  %v291_v39 = vsub.s32 %v288_v31, %v290_v27  ;;  %s1935_s7 = smov 18   ;;  %s1936_s8 = smov 2   ;;  %v2225_v59 = vld [vmem:[#allocation10] ss:$8 sm:$0x3] }
  0x5b   : > { %v258_v23 = vadd.f32 %v257_v17, %v256_v13  ;;  %v264_v24 = vrot.slane %v263_v18, 2  ;;  %s1937_s10 = smov 114   ;;  %s1938_s18 = smov 98   ;;  %vm346_vm6 = vcmask 416768   ;;  %vm368_vm7 = vcmask 154624  }
  0x5c   : > { %v278_v25 = vrot.slane %v277_v19, 2  ;;  %v272_v26 = vmax.f32 %v270_v16, %v271_v22  ;;  %s1939_s24 = smov 82   ;;  %s1940_s25 = smov 49   ;;  %vm357_vm8 = vcmask 285696   ;;  %vm379_vm9 = vcmask 23552  }
  0x5d   : > { %v259_v28 = vrot.slane %v258_v23, 1  ;;  %v265_v29 = vadd.f32 %v264_v24, %v263_v18  ;;  %v282_v44 = vld [vmem:[#allocation2] sm:$0x3]  ;;  %v307_v45 = vld [vmem:[#allocation3] sm:$0x3]  ;;  %s1941_s28 = smov 33  }
  0x5e   : > { %v279_v30 = vmax.f32 %v277_v19, %v278_v25  ;;  %v273_v32 = vrot.slane %v272_v26, 1  ;;  %vm392_vm10 = vcmask 941056   ;;  %vm403_vm11 = vcmask 809984  }
  0x5f   : > { %v260_v33 = vadd.f32 %v259_v28, %v258_v23  ;;  %v266_v34 = vrot.slane %v265_v29, 1  ;;  %vm414_vm12 = vcmask 678912   ;;  %vm501_vm13 = vcmask 408576  }
  0x60   : > { %v280_v35 = vrot.slane %v279_v30, 1  ;;  %v274_v36 = vmax.f32 %v272_v26, %v273_v32  ;;  %vm512_vm14 = vcmask 277504   ;;  %vm523_vm15 = vcmask 146432  }
  0x61   : > { %v267_v37 = vadd.f32 %v266_v34, %v265_v29  ;;  %vm534_vm0 = vcmask 15360   ;;  %vm545_vm2 = vcmask 932864   ;;  %vm556_vm3 = vcmask 801792  }
  0x62   : > { %v281_v38 = vmax.f32 %v279_v30, %v280_v35  ;;  %vm567_vm4 = vcmask 670720   ;;  %vm650_vm5 = vcmask 400384  }
  0x63   : > { %v285_v40 = vcombine.low %v260_v33, %v267_v37 }
  0x64   : > { %v310_v41 = vcombine.low %v274_v36, %v281_v38 }
  0x65   : > { %v292_v42 = vrot.slane %v285_v40, %v291_v39 }
  0x66   : > { %v317_v43 = vrot.slane %v310_v41, %v291_v39 }
  0x67   : > { %v299_v46 = vrot.slane %v292_v42, %v291_v39 }
  0x68   : > { %v324_v47 = vrot.slane %v317_v43, %v291_v39 }
  0x69   : > { %v301_v48 = vadd.f32 %v299_v46, %v282_v44 }
  0x6a   : > { %v326_v49 = vmax.f32 %v307_v45, %v324_v47 }
  0x6b   : > { %306 = vst.msk [vmem:[#allocation2] sm:$0x3] %vm2127_vm1, %v301_v48 }
  0x6c   : > { %327 = vst.msk [vmem:[#allocation3] sm:$0x3] %vm2127_vm1, %v326_v49 }
  0x72   : > { %v331_v50 = vld [vmem:[#allocation2] sm:$0x3] }
  0x73   : > { %v334_v51 = vld [vmem:[#allocation3] sm:$0x3]  ;;  %v332_v52 = vmul.f32 0.25, %v331_v50 }
  0x74   : > { %336 = vst.msk [vmem:[#allocation4 + $0x5] sm:$0x3] %vm2127_vm1, %v334_v51 }
  0x75   : > { %333 = vst.msk [vmem:[#allocation4 + $0x1] sm:$0x3] %vm2127_vm1, %v332_v52 }
  0x7b   : > { %v2159_v55 = vld [vmem:[#allocation4 + $0x4] sm:$0x7] }
  0x7c   : > { %v2149_v53 = vld [vmem:[#allocation4] sm:$0x7]  ;;  %v2165_v56 = vld [vmem:[#allocation4 + $0x5] sm:$0x7] }
  0x7d   : > { %343 = vrot.lane.b32.xlu0 %v2149_v53, %s1926_s20  ;;  %365 = vrot.lane.b32.xlu1 %v2149_v53, %s1927_s22  ;;  %v2155_v54 = vld [vmem:[#allocation4 + $0x1] sm:$0x7] }
  0x81   : > { %354 = vrot.lane.b32.xlu0 %v2149_v53, %s1928_s27  ;;  %376 = vrot.lane.b32.xlu1 %v2149_v53, %s1929_s29 }
  0x85   : > { %389 = vrot.lane.b32.xlu0 %v2155_v54, %s1930_s30  ;;  %400 = vrot.lane.b32.xlu1 %v2155_v54, %s1931_s4 }
  0x89   : > { %411 = vrot.lane.b32.xlu0 %v2155_v54, %s1932_s5  ;;  %424 = vrot.lane.b32.xlu1 %v2159_v55, %s1926_s20  ;;  %s1942_s20 = smov 17  }
  0x8d   : > { %434 = vrot.lane.b32.xlu0 %v2159_v55, %s1928_s27  ;;  %444 = vrot.lane.b32.xlu1 %v2159_v55, %s1927_s22  ;;  %s1943_s22 = smov 1   ;;  %s1944_s27 = smov 113  }
  0x91   : > { %454 = vrot.lane.b32.xlu0 %v2159_v55, %s1929_s29  ;;  %466 = vrot.lane.b32.xlu1 %v2165_v56, %s1930_s30  ;;  %s1945_s29 = smov 97   ;;  %s1946_s30 = smov 81  }
  0x95   : > { %476 = vrot.lane.b32.xlu0 %v2165_v56, %s1931_s4  ;;  %486 = vrot.lane.b32.xlu1 %v2165_v56, %s1932_s5  ;;  %s1947_s4 = smov 48   ;;  %s1948_s5 = smov 32  }
  0x99   : > { %498 = vrot.lane.b32.xlu0 %v2149_v53, %s1933_s21  ;;  %509 = vrot.lane.b32.xlu1 %v2149_v53, %s1934_s6 }
  0x9d   : > { %520 = vrot.lane.b32.xlu0 %v2149_v53, %s1935_s7  ;;  %531 = vrot.lane.b32.xlu1 %v2149_v53, %s1936_s8 }
  0xa1   : > { %542 = vrot.lane.b32.xlu0 %v2155_v54, %s1937_s10  ;;  %553 = vrot.lane.b32.xlu1 %v2155_v54, %s1938_s18 }
  0xa5   : > { %564 = vrot.lane.b32.xlu0 %v2155_v54, %s1939_s24  ;;  %575 = vrot.lane.b32.xlu1 %v2159_v55, %s1933_s21  ;;  %s1949_s21 = smov 16  }
  0xa9   : > { %585 = vrot.lane.b32.xlu0 %v2159_v55, %s1934_s6  ;;  %595 = vrot.lane.b32.xlu1 %v2159_v55, %s1935_s7  ;;  %s1950_s6 = smov 112   ;;  %s1951_s7 = smov 96  }
  0xad   : > { %605 = vrot.lane.b32.xlu0 %v2159_v55, %s1936_s8  ;;  %615 = vrot.lane.b32.xlu1 %v2165_v56, %s1937_s10  ;;  %s1952_s8 = smov 80   ;;  %s338_s10 = sld [smem:[#allocation9]] }
  0xb1   : > { %625 = vrot.lane.b32.xlu0 %v2165_v56, %s1938_s18  ;;  %635 = vrot.lane.b32.xlu1 %v2165_v56, %s1939_s24  ;;  %s1517_s18 = sld [smem:[#allocation9 + $0x7]]  ;;  %s1953_s24 = smov 47  }
  0xb3   : > { %v340_v60 = vstv %s338_s10  ;;  %s2255_s10 = sld [smem:[#allocation9 + $0x3f]] }
  0xb4   : > { %v341_v1 = vmul.f32 %v340_v60, %v2225_v59 }
  0xb5   : > { %647 = vrot.lane.b32.xlu0 %v2149_v53, %s1940_s25  ;;  %658 = vrot.lane.b32.xlu1 %v2149_v53, %s1941_s28 }
  0xb7   : > { %v352_v62 = vstv %s1517_s18  ;;  %s2264_s18 = sld [smem:[#allocation9 + $0x46]] }
  0xb8   : > { %v353_v2 = vmul.f32 %v352_v62, %v2225_v59 }
  0xb9   : > { %669 = vrot.lane.b32.xlu0 %v2149_v53, %s1942_s20  ;;  %680 = vrot.lane.b32.xlu1 %v2149_v53, %s1943_s22  ;;  %v442_v49 = vstv %s2255_s10  ;;  %s1965_s10 = smov 94  }
  0xbd   : > { %691 = vrot.lane.b32.xlu0 %v2155_v54, %s1944_s27  ;;  %702 = vrot.lane.b32.xlu1 %v2155_v54, %s1945_s29  ;;  %v452_v60 = vstv %s2264_s18  ;;  %s2336_s18 = sld [smem:[#allocation9 + $0x2b]] }
  0xc1   : > { %713 = vrot.lane.b32.xlu0 %v2155_v54, %s1946_s30  ;;  %724 = vrot.lane.b32.xlu1 %v2159_v55, %s1940_s25  ;;  %s1954_s25 = smov 31  }
  0xc5   : > { %734 = vrot.lane.b32.xlu0 %v2159_v55, %s1941_s28  ;;  %744 = vrot.lane.b32.xlu1 %v2159_v55, %s1942_s20  ;;  %s2215_s28 = sld [smem:[#allocation9 + $0xe]] }
  0xc6   : > { %s2217_s20 = sld [smem:[#allocation9 + $0x15]] }
  0xc9   : > { %754 = vrot.lane.b32.xlu0 %v2159_v55, %s1943_s22  ;;  %764 = vrot.lane.b32.xlu1 %v2165_v56, %s1944_s27  ;;  %s1955_s22 = smov 15   ;;  %s1956_s27 = smov 127  }
  0xcb   : > { %v363_v63 = vstv %s2215_s28  ;;  %s2283_s28 = sld [smem:[#allocation9 + $0x5b]] }
  0xcc   : > { %v374_v8 = vstv %s2217_s20  ;;  %v364_v10 = vmul.f32 %v363_v63, %v2225_v59  ;;  %s2290_s20 = sld [smem:[#allocation9 + $0x1]]  ;;  %v443_v63 = vmul.f32 %v442_v49, %v2225_v59 }
  0xcd   : > { %774 = vrot.lane.b32.xlu0 %v2165_v56, %s1945_s29  ;;  %784 = vrot.lane.b32.xlu1 %v2165_v56, %s1946_s30  ;;  %s2223_s29 = sld [smem:[#allocation9 + $0x1c]]  ;;  %v375_v16 = vmul.f32 %v374_v8, %v2225_v59 }
  0xce   : > { %s2227_s30 = sld [smem:[#allocation9 + $0x23]] }
  0xd1   : > { %796 = vrot.lane.b32.xlu0 %v2149_v53, %s1947_s4  ;;  %807 = vrot.lane.b32.xlu1 %v2149_v53, %s1948_s5 }
  0xd3   : > { %v386_v13 = vstv %s2223_s29  ;;  %s1961_s29 = smov 30  }
  0xd4   : > { %v398_v21 = vstv %s2227_s30  ;;  %v387_v25 = vmul.f32 %v386_v13, %v2225_v59  ;;  %s2304_s30 = sld [smem:[#allocation9 + $0xf]] }
  0xd5   : > { %818 = vrot.lane.b32.xlu0 %v2149_v53, %s1949_s21  ;;  %835 = vrot.lane.b32.xlu1 %v2155_v54, %s1950_s6  ;;  %v399_v30 = vmul.f32 %v398_v21, %v2225_v59 }
  0xd9   : > { %846 = vrot.lane.b32.xlu0 %v2155_v54, %s1951_s7  ;;  %857 = vrot.lane.b32.xlu1 %v2155_v54, %s1952_s8 }
  0xdd   : > { %868 = vrot.lane.b32.xlu0 %v2159_v55, %s1947_s4  ;;  %878 = vrot.lane.b32.xlu1 %v2159_v55, %s1948_s5  ;;  %s1957_s4 = smov 111   ;;  %s1958_s5 = smov 95  }
  0xe1   : > { %888 = vrot.lane.b32.xlu0 %v2159_v55, %s1949_s21  ;;  %904 = vrot.lane.b32.xlu1 %v2165_v56, %s1950_s6  ;;  %s2234_s21 = sld [smem:[#allocation9 + $0x2a]] }
  0xe2   : > { %s2240_s6 = sld [smem:[#allocation9 + $0x31]] }
  0xe5   : > { %914 = vrot.lane.b32.xlu0 %v2165_v56, %s1951_s7  ;;  %924 = vrot.lane.b32.xlu1 %v2165_v56, %s1952_s8  ;;  %s1959_s7 = smov 79   ;;  %s2250_s8 = sld [smem:[#allocation9 + $0x38]] }
  0xe7   : > { %v409_v27 = vstv %s2234_s21  ;;  %s1963_s21 = smov 126  }
  0xe8   : > { %v421_v35 = vstv %s2240_s6  ;;  %v410_v39 = vmul.f32 %v409_v27, %v2225_v59  ;;  %s2318_s6 = sld [smem:[#allocation9 + $0x1d]] }
  0xe9   : > { %936 = vrot.lane.b32.xlu0 %v2149_v53, %s1953_s24  ;;  %947 = vrot.lane.b32.xlu1 %v2149_v53, %s1954_s25  ;;  %v422_v44 = vmul.f32 %v421_v35, %v2225_v59 }
  0xeb   : > { %v432_v41 = vstv %s2250_s8  ;;  %s1964_s8 = smov 110  }
  0xed   : > { %958 = vrot.lane.b32.xlu0 %v2149_v53, %s1955_s22  ;;  %969 = vrot.lane.b32.xlu1 %v2155_v54, %s1956_s27 }
  0xef   : > { %v344_v57 = vpop.permute.xlu0 %343  ;;  %v366_v58 = vpop.permute.xlu1 %365 }
  0xf0   : > { %v345_v61 = vrot.slane %v344_v57, 1  ;;  %v367_v0 = vrot.slane %v366_v58, 1 }
  0xf1   : > { %980 = vrot.lane.b32.xlu0 %v2155_v54, %s1957_s4  ;;  %991 = vrot.lane.b32.xlu1 %v2155_v54, %s1958_s5 }
  0xf2   : > { %v347_v6 = vsel %vm346_vm6, %v344_v57, %v345_v61  ;;  %v369_v11 = vsel %vm368_vm7, %v366_v58, %v367_v0  ;;  %v433_v57 = vmul.f32 %v432_v41, %v2225_v59 }
  0xf3   : > { %v355_v3 = vpop.permute.xlu0 %354  ;;  %v377_v4 = vpop.permute.xlu1 %376  ;;  %v349_v14 = vmul.f32 %v347_v6, %v341_v1  ;;  %v371_v23 = vmul.f32 %v369_v11, %v364_v10 }
  0xf4   : > { %v356_v7 = vrot.slane %v355_v3, 1  ;;  %v378_v9 = vrot.slane %v377_v4, 1 }
  0xf5   : > { %1002 = vrot.lane.b32.xlu0 %v2155_v54, %s1959_s7  ;;  %1013 = vrot.lane.b32.xlu1 %v2159_v55, %s1953_s24  ;;  %s2269_s24 = sld [smem:[#allocation9 + $0x4d]] }
  0xf6   : > { %v358_v12 = vsel %vm357_vm8, %v355_v3, %v356_v7  ;;  %v380_v19 = vsel %vm379_vm9, %v377_v4, %v378_v9  ;;  %v453_v9 = vmul.f32 %v452_v60, %v2225_v59 }
  0xf7   : > { %v360_v15 = vmul.f32 %v358_v12, %v353_v2  ;;  %v390_v17 = vpop.permute.xlu0 %389  ;;  %v401_v18 = vpop.permute.xlu1 %400  ;;  %v382_v29 = vmul.f32 %v380_v19, %v375_v16  ;;  %v484_v19 = vstv %s2283_s28  ;;  %s2350_s28 = sld [smem:[#allocation9 + $0x39]] }
  0xf8   : > { %v391_v20 = vrot.slane %v390_v17, 1  ;;  %v402_v22 = vrot.slane %v401_v18, 1 }
  0xf9   : > { %v361_v24 = vadd.f32 %v360_v15, %v349_v14  ;;  %1023 = vrot.lane.b32.xlu0 %v2159_v55, %s1954_s25  ;;  %1033 = vrot.lane.b32.xlu1 %v2159_v55, %s1955_s22  ;;  %s2278_s25 = sld [smem:[#allocation9 + $0x54]] }
  0xfa   : > { %v393_v26 = vsel %vm392_vm10, %v390_v17, %v391_v20  ;;  %v404_v33 = vsel %vm403_vm11, %v401_v18, %v402_v22  ;;  %s2297_s22 = sld [smem:[#allocation9 + $0x8]] }
  0xfb   : > { %v372_v28 = vadd.f32 %v371_v23, %v361_v24  ;;  %v412_v31 = vpop.permute.xlu0 %411  ;;  %v425_v32 = vpop.permute.xlu1 %424  ;;  %v395_v38 = vmul.f32 %v393_v26, %v387_v25  ;;  %v406_v43 = vmul.f32 %v404_v33, %v399_v30  ;;  %v463_v4 = vstv %s2269_s24  ;;  %v2321_v25 = vld [vmem:[#allocation10 + $0x1] ss:$8 sm:$0x3]  ;;  %s2341_s24 = sld [smem:[#allocation9 + $0x32]] }
  0xfc   : > { %v413_v34 = vrot.slane %v412_v31, 1  ;;  %v426_v36 = vrot.slane %v425_v32, 1  ;;  %v464_v14 = vmul.f32 %v463_v4, %v2225_v59  ;;  %v496_v26 = vstv %s2290_s20  ;;  %s2355_s20 = sld [smem:[#allocation9 + $0x40]] }
  0xfd   : > { %v383_v37 = vadd.f32 %v382_v29, %v372_v28  ;;  %1043 = vrot.lane.b32.xlu0 %v2165_v56, %s1956_s27  ;;  %1053 = vrot.lane.b32.xlu1 %v2165_v56, %s1957_s4  ;;  %s1960_s27 = smov 46   ;;  %s2311_s4 = sld [smem:[#allocation9 + $0x16]]  ;;  %v485_v29 = vmul.f32 %v484_v19, %v2225_v59 }
  0xfe   : > { %v415_v40 = vsel %vm414_vm12, %v412_v31, %v413_v34  ;;  %v427_v47 = vsel %vm346_vm6, %v425_v32, %v426_v36  ;;  %vm661_vm6 = vcmask 269312  }
  0xff   : > { %v396_v42 = vadd.f32 %v395_v38, %v383_v37  ;;  %v435_v45 = vpop.permute.xlu0 %434  ;;  %v445_v46 = vpop.permute.xlu1 %444  ;;  %v417_v52 = vmul.f32 %v415_v40, %v410_v39  ;;  %v429_v62 = vmul.f32 %v427_v47, %v422_v44  ;;  %v474_v11 = vstv %s2278_s25  ;;  %s1966_s25 = smov 78  }
 0x100   : > { %v436_v48 = vrot.slane %v435_v45, 1  ;;  %v446_v50 = vrot.slane %v445_v46, 1  ;;  %v475_v23 = vmul.f32 %v474_v11, %v2225_v59  ;;  %v507_v34 = vstv %s2297_s22  ;;  %s2364_s22 = sld [smem:[#allocation9 + $0x47]] }
 0x101   : > { %v407_v51 = vadd.f32 %v406_v43, %v396_v42  ;;  %1063 = vrot.lane.b32.xlu0 %v2165_v56, %s1958_s5  ;;  %1073 = vrot.lane.b32.xlu1 %v2165_v56, %s1959_s7  ;;  %s1962_s5 = smov 14   ;;  %s2327_s7 = sld [smem:[#allocation9 + $0x24]]  ;;  %v497_v38 = vmul.f32 %v496_v26, %v2321_v25  ;;  %v518_v39 = vstv %s2304_s30  ;;  %v508_v42 = vmul.f32 %v507_v34, %v2321_v25 }
 0x102   : > { %v437_v58 = vsel %vm357_vm8, %v435_v45, %v436_v48  ;;  %v447_v2 = vsel %vm368_vm7, %v445_v46, %v446_v50  ;;  %s2383_s30 = sld [smem:[#allocation9 + $0x5c]]  ;;  %vm672_vm7 = vcmask 138240   ;;  %vm683_vm8 = vcmask 7168  }
 0x103   : > { %v418_v61 = vadd.f32 %v417_v52, %v407_v51  ;;  %v455_v0 = vpop.permute.xlu0 %454  ;;  %v467_v1 = vpop.permute.xlu1 %466  ;;  %v439_v8 = vmul.f32 %v437_v58, %v433_v57  ;;  %v449_v13 = vmul.f32 %v447_v2, %v443_v63  ;;  %v529_v47 = vstv %s2311_s4  ;;  %s2390_s4 = sld [smem:[#allocation9 + $0x2]] }
 0x104   : > { %v456_v3 = vrot.slane %v455_v0, 1  ;;  %v468_v6 = vrot.slane %v467_v1, 1  ;;  %v519_v51 = vmul.f32 %v518_v39, %v2321_v25  ;;  %v540_v57 = vstv %s2318_s6  ;;  %s1968_s6 = smov 29  }
 0x105   : > { %v430_v7 = vadd.f32 %v429_v62, %v418_v61  ;;  %1085 = vrot.lane.b32.xlu0 %v2149_v53, %s1960_s27  ;;  %1096 = vrot.lane.b32.xlu1 %v2149_v53, %s1961_s29  ;;  %v530_v61 = vmul.f32 %v529_v47, %v2321_v25 }
 0x106   : > { %v457_v10 = vsel %vm379_vm9, %v455_v0, %v456_v3  ;;  %v469_v17 = vsel %vm392_vm10, %v467_v1, %v468_v6  ;;  %vm694_vm9 = vcmask 924672   ;;  %vm705_vm10 = vcmask 793600  }
 0x107   : > { %v440_v12 = vadd.f32 %v439_v8, %v430_v7  ;;  %v477_v15 = vpop.permute.xlu0 %476  ;;  %v487_v16 = vpop.permute.xlu1 %486  ;;  %v459_v22 = vmul.f32 %v457_v10, %v453_v9  ;;  %v471_v28 = vmul.f32 %v469_v17, %v464_v14  ;;  %v551_v2 = vstv %s2327_s7  ;;  %s2404_s7 = sld [smem:[#allocation9 + $0x10]] }
 0x108   : > { %v478_v18 = vrot.slane %v477_v15, 1  ;;  %v488_v20 = vrot.slane %v487_v16, 1  ;;  %v541_v7 = vmul.f32 %v540_v57, %v2321_v25  ;;  %v562_v9 = vstv %s2336_s18  ;;  %s1970_s18 = smov 125  }
 0x109   : > { %v450_v21 = vadd.f32 %v449_v13, %v440_v12  ;;  %1107 = vrot.lane.b32.xlu0 %v2149_v53, %s1962_s5  ;;  %1118 = vrot.lane.b32.xlu1 %v2155_v54, %s1963_s21  ;;  %v552_v12 = vmul.f32 %v551_v2, %v2321_v25  ;;  %v573_v17 = vstv %s2341_s24  ;;  %s2418_s24 = sld [smem:[#allocation9 + $0x1e]] }
 0x10a   : > { %v479_v24 = vsel %vm403_vm11, %v477_v15, %v478_v18  ;;  %v489_v32 = vsel %vm414_vm12, %v487_v16, %v488_v20  ;;  %vm716_vm11 = vcmask 662528   ;;  %vm799_vm12 = vcmask 392192  }
 0x10b   : > { %v460_v27 = vadd.f32 %v459_v22, %v450_v21  ;;  %v499_v30 = vpop.permute.xlu0 %498  ;;  %v510_v31 = vpop.permute.xlu1 %509  ;;  %v481_v37 = vmul.f32 %v479_v24, %v475_v23  ;;  %v491_v41 = vmul.f32 %v489_v32, %v485_v29  ;;  %v563_v21 = vmul.f32 %v562_v9, %v2321_v25 }
 0x10c   : > { %v500_v33 = vrot.slane %v499_v30, 1  ;;  %v511_v35 = vrot.slane %v510_v31, 1  ;;  %v583_v23 = vstv %s2350_s28  ;;  %v593_v32 = vstv %s2355_s20  ;;  %s1971_s28 = smov 109   ;;  %s1972_s20 = smov 93  }
 0x10d   : > { %v472_v36 = vadd.f32 %v471_v28, %v460_v27  ;;  %1129 = vrot.lane.b32.xlu0 %v2155_v54, %s1964_s8  ;;  %1140 = vrot.lane.b32.xlu1 %v2155_v54, %s1965_s10  ;;  %v574_v27 = vmul.f32 %v573_v17, %v2321_v25 }
 0x10e   : > { %v502_v59 = vsel %vm501_vm13, %v499_v30, %v500_v33  ;;  %v513_v45 = vsel %vm512_vm14, %v510_v31, %v511_v35 }
 0x10f   : > { %v482_v40 = vadd.f32 %v481_v37, %v472_v36  ;;  %v521_v43 = vpop.permute.xlu0 %520  ;;  %v532_v44 = vpop.permute.xlu1 %531  ;;  %v504_v50 = vmul.f32 %v502_v59, %v497_v38  ;;  %v515_v60 = vmul.f32 %v513_v45, %v508_v42  ;;  %v584_v36 = vmul.f32 %v583_v23, %v2321_v25 }
 0x110   : > { %v522_v46 = vrot.slane %v521_v43, 1  ;;  %v533_v48 = vrot.slane %v532_v44, 1  ;;  %v603_v38 = vstv %s2364_s22  ;;  %s2436_s22 = sld [smem:[#allocation9 + $0x2c]] }
 0x111   : > { %v492_v49 = vadd.f32 %v491_v41, %v482_v40  ;;  %1151 = vrot.lane.b32.xlu0 %v2155_v54, %s1966_s25  ;;  %1162 = vrot.lane.b32.xlu1 %v2159_v55, %s1960_s27  ;;  %s2369_s27 = sld [smem:[#allocation9 + $0x4e]]  ;;  %v594_v40 = vmul.f32 %v593_v32, %v2321_v25 }
 0x112   : > { %v524_v52 = vsel %vm523_vm15, %v521_v43, %v522_v46  ;;  %v535_v0 = vsel %vm534_vm0, %v532_v44, %v533_v48 }
 0x113   : > { %v505_v58 = vadd.f32 %v504_v50, %v492_v49  ;;  %v543_v62 = vpop.permute.xlu0 %542  ;;  %v554_v63 = vpop.permute.xlu1 %553  ;;  %v526_v6 = vmul.f32 %v524_v52, %v519_v51  ;;  %v537_v11 = vmul.f32 %v535_v0, %v530_v61  ;;  %v604_v49 = vmul.f32 %v603_v38, %v2321_v25 }
 0x114   : > { %v544_v1 = vrot.slane %v543_v62, 1  ;;  %v555_v3 = vrot.slane %v554_v63, 1  ;;  %v633_v0 = vstv %s2383_s30  ;;  %s2450_s30 = sld [smem:[#allocation9 + $0x3a]] }
 0x115   : > { %v516_v4 = vadd.f32 %v515_v60, %v505_v58  ;;  %1172 = vrot.lane.b32.xlu0 %v2159_v55, %s1961_s29  ;;  %1182 = vrot.lane.b32.xlu1 %v2159_v55, %s1962_s5  ;;  %s2378_s29 = sld [smem:[#allocation9 + $0x55]] }
 0x116   : > { %v546_v8 = vsel %vm545_vm2, %v543_v62, %v544_v1  ;;  %v557_v15 = vsel %vm556_vm3, %v554_v63, %v555_v3  ;;  %s2397_s5 = sld [smem:[#allocation9 + $0x9]] }
 0x117   : > { %v527_v10 = vadd.f32 %v526_v6, %v516_v4  ;;  %v565_v13 = vpop.permute.xlu0 %564  ;;  %v576_v14 = vpop.permute.xlu1 %575  ;;  %v548_v20 = vmul.f32 %v546_v8, %v541_v7  ;;  %v559_v26 = vmul.f32 %v557_v15, %v552_v12  ;;  %v613_v45 = vstv %s2369_s27  ;;  %v2421_v7 = vld [vmem:[#allocation10 + $0x2] ss:$8 sm:$0x3]  ;;  %s2441_s27 = sld [smem:[#allocation9 + $0x33]] }
 0x118   : > { %v566_v16 = vrot.slane %v565_v13, 1  ;;  %v577_v18 = vrot.slane %v576_v14, 1  ;;  %v614_v58 = vmul.f32 %v613_v45, %v2321_v25  ;;  %v645_v8 = vstv %s2390_s4  ;;  %s2455_s4 = sld [smem:[#allocation9 + $0x41]] }
 0x119   : > { %v538_v19 = vadd.f32 %v537_v11, %v527_v10  ;;  %1192 = vrot.lane.b32.xlu0 %v2165_v56, %s1963_s21  ;;  %1202 = vrot.lane.b32.xlu1 %v2165_v56, %s1964_s8  ;;  %s1967_s21 = smov 45   ;;  %s2411_s8 = sld [smem:[#allocation9 + $0x17]]  ;;  %v634_v11 = vmul.f32 %v633_v0, %v2321_v25 }
 0x11a   : > { %v568_v22 = vsel %vm567_vm4, %v565_v13, %v566_v16  ;;  %v578_v30 = vsel %vm501_vm13, %v576_v14, %v577_v18  ;;  %vm810_vm13 = vcmask 261120  }
 0x11b   : > { %v549_v24 = vadd.f32 %v548_v20, %v538_v19  ;;  %v586_v28 = vpop.permute.xlu0 %585  ;;  %v596_v29 = vpop.permute.xlu1 %595  ;;  %v570_v35 = vmul.f32 %v568_v22, %v563_v21  ;;  %v580_v39 = vmul.f32 %v578_v30, %v574_v27  ;;  %v623_v51 = vstv %s2378_s29  ;;  %s1973_s29 = smov 77  }
 0x11c   : > { %v587_v31 = vrot.slane %v586_v28, 1  ;;  %v597_v33 = vrot.slane %v596_v29, 1  ;;  %v624_v4 = vmul.f32 %v623_v51, %v2321_v25  ;;  %v656_v15 = vstv %s2397_s5  ;;  %s2464_s5 = sld [smem:[#allocation9 + $0x48]] }
 0x11d   : > { %v560_v34 = vadd.f32 %v559_v26, %v549_v24  ;;  %1212 = vrot.lane.b32.xlu0 %v2165_v56, %s1965_s10  ;;  %1222 = vrot.lane.b32.xlu1 %v2165_v56, %s1966_s25  ;;  %s1969_s10 = smov 13   ;;  %s2427_s25 = sld [smem:[#allocation9 + $0x25]]  ;;  %v646_v19 = vmul.f32 %v645_v8, %v2421_v7  ;;  %v667_v20 = vstv %s2404_s7  ;;  %v657_v23 = vmul.f32 %v656_v15, %v2421_v7 }
 0x11e   : > { %v588_v37 = vsel %vm512_vm14, %v586_v28, %v587_v31  ;;  %v598_v43 = vsel %vm523_vm15, %v596_v29, %v597_v33  ;;  %v668_v33 = vmul.f32 %v667_v20, %v2421_v7  ;;  %s2481_s7 = sld [smem:[#allocation9 + $0x5d]]  ;;  %vm821_vm14 = vcmask 130048  }
 0x11f   : > { %v571_v59 = vadd.f32 %v570_v35, %v560_v34  ;;  %v606_v41 = vpop.permute.xlu0 %605  ;;  %v616_v42 = vpop.permute.xlu1 %615  ;;  %v590_v48 = vmul.f32 %v588_v37, %v584_v36  ;;  %v600_v57 = vmul.f32 %v598_v43, %v594_v40  ;;  %v678_v29 = vstv %s2411_s8  ;;  %s2485_s8 = sld [smem:[#allocation9 + $0x3]] }
 0x120   : > { %v607_v44 = vrot.slane %v606_v41, 1  ;;  %v617_v46 = vrot.slane %v616_v42, 1  ;;  %v689_v35 = vstv %s2418_s24  ;;  %v679_v38 = vmul.f32 %v678_v29, %v2421_v7  ;;  %s2504_s24 = sld [smem:[#allocation9 + $0x18]] }
 0x121   : > { %v581_v47 = vadd.f32 %v580_v39, %v571_v59  ;;  %1234 = vrot.lane.b32.xlu0 %v2149_v53, %s1967_s21  ;;  %1245 = vrot.lane.b32.xlu1 %v2149_v53, %s1968_s6  ;;  %v690_v45 = vmul.f32 %v689_v35, %v2421_v7  ;;  %vm838_vm15 = vcmask 916480  }
 0x122   : > { %v608_v50 = vsel %vm534_vm0, %v606_v41, %v607_v44  ;;  %v618_v62 = vsel %vm545_vm2, %v616_v42, %v617_v46  ;;  %vm849_vm0 = vcmask 785408   ;;  %vm860_vm2 = vcmask 654336  }
 0x123   : > { %v591_v52 = vadd.f32 %v590_v48, %v581_v47  ;;  %v626_v60 = vpop.permute.xlu0 %625  ;;  %v636_v61 = vpop.permute.xlu1 %635  ;;  %v610_v3 = vmul.f32 %v608_v50, %v604_v49  ;;  %v620_v10 = vmul.f32 %v618_v62, %v614_v58  ;;  %v711_v47 = vstv %s2436_s22  ;;  %s2530_s22 = sld [smem:[#allocation9 + $0x34]] }
 0x124   : > { %v627_v63 = vrot.slane %v626_v60, 1  ;;  %v637_v1 = vrot.slane %v636_v61, 1 }
 0x125   : > { %v601_v2 = vadd.f32 %v600_v57, %v591_v52  ;;  %1256 = vrot.lane.b32.xlu0 %v2149_v53, %s1969_s10  ;;  %1267 = vrot.lane.b32.xlu1 %v2155_v54, %s1970_s18 }
 0x126   : > { %v628_v6 = vsel %vm556_vm3, %v626_v60, %v627_v63  ;;  %v638_v53 = vsel %vm567_vm4, %v636_v61, %v637_v1  ;;  %v722_v60 = vstv %s2441_s27  ;;  %v712_v63 = vmul.f32 %v711_v47, %v2421_v7  ;;  %s2535_s27 = sld [smem:[#allocation9 + $0x3b]] }
 0x127   : > { %v611_v9 = vadd.f32 %v610_v3, %v601_v2  ;;  %v648_v12 = vpop.permute.xlu0 %647  ;;  %v659_v13 = vpop.permute.xlu1 %658  ;;  %v630_v18 = vmul.f32 %v628_v6, %v624_v4  ;;  %v640_v22 = vmul.f32 %v638_v53, %v634_v11  ;;  %v732_v1 = vstv %s2450_s30  ;;  %s2541_s30 = sld [smem:[#allocation9 + $0x49]] }
 0x128   : > { %v649_v14 = vrot.slane %v648_v12, 1  ;;  %v660_v16 = vrot.slane %v659_v13, 1  ;;  %v723_v4 = vmul.f32 %v722_v60, %v2421_v7  ;;  %v742_v11 = vstv %s2455_s4  ;;  %s2548_s4 = sld [smem:[#allocation9 + $0x50]] }
 0x129   : > { %v621_v17 = vadd.f32 %v620_v10, %v611_v9  ;;  %1278 = vrot.lane.b32.xlu0 %v2155_v54, %s1971_s28  ;;  %1289 = vrot.lane.b32.xlu1 %v2155_v54, %s1972_s20  ;;  %vm939_vm3 = vcmask 384000   ;;  %vm950_vm4 = vcmask 252928  }
 0x12a   : > { %v651_v25 = vsel %vm650_vm5, %v648_v12, %v649_v14  ;;  %v662_v27 = vsel %vm661_vm6, %v659_v13, %v660_v16  ;;  %v733_v14 = vmul.f32 %v732_v1, %v2421_v7  ;;  %v752_v16 = vstv %s2464_s5  ;;  %s2553_s5 = sld [smem:[#allocation9 + $0x57]] }
 0x12b   : > { %v631_v21 = vadd.f32 %v630_v18, %v621_v17  ;;  %v670_v24 = vpop.permute.xlu0 %669  ;;  %v681_v26 = vpop.permute.xlu1 %680  ;;  %v653_v32 = vmul.f32 %v651_v25, %v646_v19  ;;  %v664_v37 = vmul.f32 %v662_v27, %v657_v23  ;;  %v743_v19 = vmul.f32 %v742_v11, %v2421_v7  ;;  %v827_v11 = vld [vmem:[#allocation4 + $0x1] sm:$0x3] }
 0x12c   : > { %v671_v28 = vrot.slane %v670_v24, 1  ;;  %v682_v30 = vrot.slane %v681_v26, 1  ;;  %v753_v27 = vmul.f32 %v752_v16, %v2421_v7 }
 0x12d   : > { %v641_v31 = vadd.f32 %v640_v22, %v631_v21  ;;  %1300 = vrot.lane.b32.xlu0 %v2155_v54, %s1973_s29  ;;  %1311 = vrot.lane.b32.xlu1 %v2159_v55, %s1967_s21  ;;  %v700_v54 = vstv %s2427_s25  ;;  %s2469_s21 = sld [smem:[#allocation9 + $0x4f]] }
 0x12e   : > { %v673_v34 = vsel %vm672_vm7, %v670_v24, %v671_v28  ;;  %v684_v40 = vsel %vm683_vm8, %v681_v26, %v682_v30  ;;  %v701_v50 = vmul.f32 %v700_v54, %v2421_v7  ;;  %s2513_s25 = sld [smem:[#allocation9 + $0x1f]] }
 0x12f   : > { %v654_v36 = vadd.f32 %v653_v32, %v641_v31  ;;  %v692_v59 = vpop.permute.xlu0 %691  ;;  %v703_v39 = vpop.permute.xlu1 %702  ;;  %v675_v44 = vmul.f32 %v673_v34, %v668_v33  ;;  %v686_v49 = vmul.f32 %v684_v40, %v679_v38  ;;  %v782_v34 = vstv %s2481_s7  ;;  %s2569_s7 = sld [smem:[#allocation9 + $0xb]] }
 0x130   : > { %v693_v41 = vrot.slane %v692_v59, 1  ;;  %v704_v42 = vrot.slane %v703_v39, 1 }
 0x131   : > { %v665_v43 = vadd.f32 %v664_v37, %v654_v36  ;;  %1321 = vrot.lane.b32.xlu0 %v2159_v55, %s1968_s6  ;;  %1331 = vrot.lane.b32.xlu1 %v2159_v55, %s1969_s10  ;;  %s2478_s6 = sld [smem:[#allocation9 + $0x56]] }
 0x132   : > { %v695_v46 = vsel %vm694_vm9, %v692_v59, %v693_v41  ;;  %v706_v57 = vsel %vm705_vm10, %v703_v39, %v704_v42  ;;  %s2497_s10 = sld [smem:[#allocation9 + $0xa]]  ;;  %v2509_v59 = vld [vmem:[#allocation10 + $0x3] ss:$8 sm:$0x3]  ;;  %v794_v39 = vstv %s2485_s8 }
 0x133   : > { %v676_v48 = vadd.f32 %v675_v44, %v665_v43  ;;  %v714_v51 = vpop.permute.xlu0 %713  ;;  %v725_v52 = vpop.permute.xlu1 %724  ;;  %v697_v62 = vmul.f32 %v695_v46, %v690_v45  ;;  %v708_v3 = vmul.f32 %v706_v57, %v701_v50  ;;  %v762_v23 = vstv %s2469_s21  ;;  %s2559_s21 = sld [smem:[#allocation9 + $0x5e]] }
 0x134   : > { %v715_v58 = vrot.slane %v714_v51, 1  ;;  %v726_v61 = vrot.slane %v725_v52, 1  ;;  %v763_v32 = vmul.f32 %v762_v23, %v2421_v7  ;;  %v783_v43 = vmul.f32 %v782_v34, %v2421_v7  ;;  %s2572_s8 = sld [smem:[#allocation9 + $0x12]] }
 0x135   : > { %v687_v55 = vadd.f32 %v686_v49, %v676_v48  ;;  %1341 = vrot.lane.b32.xlu0 %v2165_v56, %s1970_s18  ;;  %1351 = vrot.lane.b32.xlu1 %v2165_v56, %s1971_s28  ;;  %s2500_s18 = sld [smem:[#allocation9 + $0x11]]  ;;  %v795_v46 = vmul.f32 %v794_v39, %v2509_v59 }
 0x136   : > { %v717_v0 = vsel %vm716_vm11, %v714_v51, %v715_v58  ;;  %v727_v9 = vsel %vm650_vm5, %v725_v52, %v726_v61  ;;  %s2520_s28 = sld [smem:[#allocation9 + $0x26]]  ;;  %v828_v61 = vstv %s2504_s24  ;;  %vm961_vm5 = vcmask 121856  }
 0x137   : > { %v698_v2 = vadd.f32 %v697_v62, %v687_v55  ;;  %v735_v6 = vpop.permute.xlu0 %734  ;;  %v745_v8 = vpop.permute.xlu1 %744  ;;  %v719_v53 = vmul.f32 %v717_v0, %v712_v63  ;;  %v729_v18 = vmul.f32 %v727_v9, %v723_v4  ;;  %v772_v29 = vstv %s2478_s6  ;;  %s2563_s6 = sld [smem:[#allocation9 + $0x4]] }
 0x138   : > { %v736_v10 = vrot.slane %v735_v6, 1  ;;  %v746_v12 = vrot.slane %v745_v8, 1  ;;  %v773_v54 = vmul.f32 %v772_v29, %v2421_v7  ;;  %v805_v51 = vstv %s2497_s10  ;;  %s2577_s10 = sld [smem:[#allocation9 + $0x19]] }
 0x139   : > { %v709_v13 = vadd.f32 %v708_v3, %v698_v2  ;;  %1361 = vrot.lane.b32.xlu0 %v2165_v56, %s1972_s20  ;;  %1371 = vrot.lane.b32.xlu1 %v2165_v56, %s1973_s29  ;;  %s2525_s20 = sld [smem:[#allocation9 + $0x2d]]  ;;  %v806_v63 = vmul.f32 %v805_v51, %v2509_v59  ;;  %v829_v9 = vmul.f32 %v828_v61, %v2509_v59 }
 0x13a   : > { %v737_v15 = vsel %vm661_vm6, %v735_v6, %v736_v10  ;;  %v747_v21 = vsel %vm672_vm7, %v745_v8, %v746_v12  ;;  %v833_v10 = vstv %s2513_s25  ;;  %s2537_s29 = sld [smem:[#allocation9 + $0x42]]  ;;  %vm972_vm6 = vcmask 1039360  }
 0x13b   : > { %v720_v17 = vadd.f32 %v719_v53, %v709_v13  ;;  %v755_v25 = vpop.permute.xlu0 %754  ;;  %v765_v20 = vpop.permute.xlu1 %764  ;;  %v739_v56 = vmul.f32 %v737_v15, %v733_v14  ;;  %v749_v31 = vmul.f32 %v747_v21, %v743_v19  ;;  %v816_v60 = vstv %s2500_s18  ;;  %s2584_s18 = sld [smem:[#allocation9 + $0x20]] }
 0x13c   : > { %v756_v22 = vrot.slane %v755_v25, 1  ;;  %v766_v24 = vrot.slane %v765_v20, 1  ;;  %v817_v3 = vmul.f32 %v816_v60, %v2509_v59  ;;  %s2589_s24 = sld [smem:[#allocation9 + $0x27]]  ;;  %vm983_vm7 = vcmask 908288  }
 0x13d   : > { %v730_v26 = vadd.f32 %v729_v18, %v720_v17  ;;  %v834_v17 = vmul.f32 %v833_v10, %v2509_v59  ;;  %v844_v18 = vstv %s2520_s28  ;;  %s2594_s25 = sld [smem:[#allocation9 + $0x2e]] }
 0x13e   : > { %v757_v28 = vsel %vm683_vm8, %v755_v25, %v756_v22  ;;  %v767_v36 = vsel %vm694_vm9, %v765_v20, %v766_v24  ;;  %v830_v20 = vmul.f32 %v829_v9, %v827_v11  ;;  %s2599_s28 = sld [smem:[#allocation9 + $0x35]]  ;;  %vm994_vm8 = vcmask 777216  }
 0x13f   : > { %v740_v30 = vadd.f32 %v739_v56, %v730_v26  ;;  %v775_v33 = vpop.permute.xlu0 %774  ;;  %v785_v35 = vpop.permute.xlu1 %784  ;;  %v759_v41 = vmul.f32 %v757_v28, %v753_v27  ;;  %v769_v45 = vmul.f32 %v767_v36, %v763_v32  ;;  %v855_v23 = vstv %s2525_s20  ;;  %s2604_s20 = sld [smem:[#allocation9 + $0x3c]] }
 0x140   : > { %v776_v37 = vrot.slane %v775_v33, 1  ;;  %v786_v38 = vrot.slane %v785_v35, 1  ;;  %v845_v56 = vmul.f32 %v844_v18, %v2509_v59  ;;  %v856_v34 = vmul.f32 %v855_v23, %v2509_v59 }
 0x141   : > { %v750_v40 = vadd.f32 %v749_v31, %v740_v30  ;;  %v866_v30 = vstv %s2530_s22  ;;  %v876_v36 = vstv %s2535_s27  ;;  %s2609_s22 = sld [smem:[#allocation9 + $0x43]]  ;;  %vm1005_vm9 = vcmask 646144  }
 0x142   : > { %v777_v42 = vsel %vm705_vm10, %v775_v33, %v776_v37  ;;  %v787_v49 = vsel %vm716_vm11, %v785_v35, %v786_v38  ;;  %s2614_s27 = sld [smem:[#allocation9 + $0x4a]]  ;;  %vm1088_vm10 = vcmask 375808   ;;  %vm1099_vm11 = vcmask 244736  }
 0x143   : > { %v760_v44 = vadd.f32 %v759_v41, %v750_v40  ;;  %v797_v47 = vpop.permute.xlu0 %796  ;;  %v808_v48 = vpop.permute.xlu1 %807  ;;  %v779_v58 = vmul.f32 %v777_v42, %v773_v54  ;;  %v789_v62 = vmul.f32 %v787_v49, %v783_v43  ;;  %v867_v40 = vmul.f32 %v866_v30, %v2509_v59 }
 0x144   : > { %v798_v50 = vrot.slane %v797_v47, 1  ;;  %v809_v52 = vrot.slane %v808_v48, 1  ;;  %v886_v43 = vstv %s2537_s29  ;;  %v956_v30 = vstv %s2572_s8  ;;  %s2619_s29 = sld [smem:[#allocation9 + $0x51]] }
 0x145   : > { %v770_v57 = vadd.f32 %v769_v45, %v760_v44  ;;  %v897_v44 = vstv %s2541_s30  ;;  %s2624_s30 = sld [smem:[#allocation9 + $0x58]] }
 0x146   : > { %v800_v7 = vsel %vm799_vm12, %v797_v47, %v798_v50  ;;  %v811_v2 = vsel %vm810_vm13, %v808_v48, %v809_v52  ;;  %v877_v48 = vmul.f32 %v876_v36, %v2509_v59  ;;  %v887_v52 = vmul.f32 %v886_v43, %v2509_v59  ;;  %s2656_s8 = sld [smem:[#allocation9 + $0x21]] }
 0x147   : > { %v780_v55 = vadd.f32 %v779_v58, %v770_v57  ;;  %v819_v0 = vpop.permute.xlu0 %818  ;;  %v836_v1 = vpop.permute.xlu1 %835  ;;  %v802_v8 = vmul.f32 %v800_v7, %v795_v46  ;;  %v813_v14 = vmul.f32 %v811_v2, %v806_v63  ;;  %v898_v57 = vmul.f32 %v897_v44, %v2509_v59  ;;  %v896_v7 = vld [vmem:[#allocation4 + $0x5] sm:$0x3] }
 0x148   : > { %v820_v4 = vrot.slane %v819_v0, 1  ;;  %v837_v13 = vrot.slane %v836_v1, 1 }
 0x149   : > { %v790_v6 = vadd.f32 %v789_v62, %v780_v55  ;;  %v902_v55 = vstv %s2548_s4  ;;  %s2629_s4 = sld [smem:[#allocation9 + $0x5f]] }
 0x14a   : > { %v822_v12 = vsel %vm821_vm14, %v819_v0, %v820_v4  ;;  %v839_v22 = vsel %vm838_vm15, %v836_v1, %v837_v13  ;;  %v912_v1 = vstv %s2553_s5  ;;  %v899_v4 = vmul.f32 %v898_v57, %v896_v7  ;;  %s2634_s5 = sld [smem:[#allocation9 + $0x5]] }
 0x14b   : > { %v803_v53 = vadd.f32 %v802_v8, %v790_v6  ;;  %v847_v15 = vpop.permute.xlu0 %846  ;;  %v858_v16 = vpop.permute.xlu1 %857  ;;  %v824_v21 = vmul.f32 %v822_v12, %v817_v3  ;;  %v841_v33 = vmul.f32 %v839_v22, %v834_v17  ;;  %v903_v8 = vmul.f32 %v902_v55, %v2509_v59 }
 0x14c   : > { %v848_v19 = vrot.slane %v847_v15, 1  ;;  %v859_v24 = vrot.slane %v858_v16, 1  ;;  %v922_v12 = vstv %s2559_s21  ;;  %v934_v17 = vstv %s2563_s6  ;;  %s2639_s21 = sld [smem:[#allocation9 + $0xc]] }
 0x14d   : > { %v814_v25 = vadd.f32 %v813_v14, %v803_v53  ;;  %v913_v14 = vmul.f32 %v912_v1, %v2509_v59  ;;  %v1000_v7 = vstv %s2594_s25  ;;  %s2644_s6 = sld [smem:[#allocation9 + $0x13]] }
 0x14e   : > { %v850_v29 = vsel %vm849_vm0, %v847_v15, %v848_v19  ;;  %v861_v35 = vsel %vm860_vm2, %v858_v16, %v859_v24  ;;  %v2581_v16 = vld [vmem:[#allocation10 + $0x4] ss:$8 sm:$0x3]  ;;  %v945_v24 = vstv %s2569_s7  ;;  %s2649_s7 = sld [smem:[#allocation9 + $0x1a]] }
 0x14f   : > { %v825_v26 = vadd.f32 %v824_v21, %v814_v25  ;;  %v869_v27 = vpop.permute.xlu0 %868  ;;  %v879_v28 = vpop.permute.xlu1 %878  ;;  %v852_v39 = vmul.f32 %v850_v29, %v845_v56  ;;  %v863_v47 = vmul.f32 %v861_v35, %v856_v34  ;;  %s2676_s25 = sld [smem:[#allocation9 + $0x3d]] }
 0x150   : > { %v870_v31 = vrot.slane %v869_v27, 1  ;;  %v880_v37 = vrot.slane %v879_v28, 1 }
 0x151   : > { %v831_v32 = vadd.f32 %v830_v20, %v825_v26  ;;  %v923_v20 = vmul.f32 %v922_v12, %v2509_v59 }
 0x152   : > { %v871_v42 = vsel %vm799_vm12, %v869_v27, %v870_v31  ;;  %v881_v49 = vsel %vm810_vm13, %v879_v28, %v880_v37  ;;  %v935_v28 = vmul.f32 %v934_v17, %v2581_v16  ;;  %v967_v37 = vstv %s2577_s10  ;;  %s2661_s10 = sld [smem:[#allocation9 + $0x28]] }
 0x153   : > { %v842_v38 = vadd.f32 %v841_v33, %v831_v32  ;;  %v889_v41 = vpop.permute.xlu0 %888  ;;  %v905_v54 = vpop.permute.xlu1 %904  ;;  %v873_v51 = vmul.f32 %v871_v42, %v867_v40  ;;  %v883_v0 = vmul.f32 %v881_v49, %v877_v48  ;;  %v946_v33 = vmul.f32 %v945_v24, %v2581_v16 }
 0x154   : > { %v890_v45 = vrot.slane %v889_v41, 1  ;;  %v906_v62 = vrot.slane %v905_v54, 1  ;;  %v978_v42 = vstv %s2584_s18  ;;  %v1041_v24 = vstv %s2614_s27  ;;  %s2666_s18 = sld [smem:[#allocation9 + $0x2f]] }
 0x155   : > { %v853_v46 = vadd.f32 %v852_v39, %v842_v38  ;;  %vm1110_vm12 = vcmask 113664   ;;  %vm1121_vm13 = vcmask 1031168   ;;  %s2696_s27 = sld [smem:[#allocation9 + $0x59]] }
 0x156   : > { %v891_v61 = vsel %vm821_vm14, %v889_v41, %v890_v45  ;;  %v907_v11 = vsel %vm838_vm15, %v905_v54, %v906_v62  ;;  %v957_v41 = vmul.f32 %v956_v30, %v2581_v16  ;;  %vm1132_vm14 = vcmask 900096  }
 0x157   : > { %v864_v50 = vadd.f32 %v863_v47, %v853_v46  ;;  %v915_v58 = vpop.permute.xlu0 %914  ;;  %v925_v60 = vpop.permute.xlu1 %924  ;;  %v893_v6 = vmul.f32 %v891_v61, %v887_v52  ;;  %v909_v25 = vmul.f32 %v907_v11, %v903_v8  ;;  %v968_v46 = vmul.f32 %v967_v37, %v2581_v16 }
 0x158   : > { %v916_v2 = vrot.slane %v915_v58, 1  ;;  %v926_v13 = vrot.slane %v925_v60, 1  ;;  %v1021_v11 = vstv %s2604_s20  ;;  %v1061_v37 = vstv %s2624_s30  ;;  %s2686_s20 = sld [smem:[#allocation9 + $0x4b]] }
 0x159   : > { %v874_v63 = vadd.f32 %v873_v51, %v864_v50  ;;  %v989_v50 = vstv %s2589_s24  ;;  %s2671_s24 = sld [smem:[#allocation9 + $0x36]]  ;;  %vm1143_vm15 = vcmask 769024  }
 0x15a   : > { %v917_v15 = vsel %vm849_vm0, %v915_v58, %v916_v2  ;;  %v927_v23 = vsel %vm860_vm2, %v925_v60, %v926_v13  ;;  %v979_v58 = vmul.f32 %v978_v42, %v2581_v16  ;;  %vm1154_vm0 = vcmask 637952   ;;  %s2706_s30 = sld [smem:[#allocation9 + $0x6]] }
 0x15b   : > { %v884_v3 = vadd.f32 %v883_v0, %v874_v63  ;;  %v937_v9 = vpop.permute.xlu0 %936  ;;  %v948_v10 = vpop.permute.xlu1 %947  ;;  %v919_v27 = vmul.f32 %v917_v15, %v913_v14  ;;  %v929_v32 = vmul.f32 %v927_v23, %v923_v20  ;;  %v990_v63 = vmul.f32 %v989_v50, %v2581_v16  ;;  %v2653_v50 = vld [vmem:[#allocation10 + $0x5] ss:$8 sm:$0x3] }
 0x15c   : > { %v938_v18 = vrot.slane %v937_v9, 1  ;;  %v949_v26 = vrot.slane %v948_v10, 1  ;;  %vm1237_vm2 = vcmask 367616  }
 0x15d   : > { %v894_v53 = vadd.f32 %v893_v6, %v884_v3  ;;  %v1011_v3 = vstv %s2599_s28  ;;  %s2681_s28 = sld [smem:[#allocation9 + $0x44]] }
 0x15e   : > { %v940_v29 = vsel %vm939_vm3, %v937_v9, %v938_v18  ;;  %v951_v36 = vsel %vm950_vm4, %v948_v10, %v949_v26  ;;  %v1001_v9 = vmul.f32 %v1000_v7, %v2581_v16  ;;  %v1012_v14 = vmul.f32 %v1011_v3, %v2581_v16 }
 0x15f   : > { %v900_v19 = vadd.f32 %v899_v4, %v894_v53  ;;  %v959_v21 = vpop.permute.xlu0 %958  ;;  %v970_v22 = vpop.permute.xlu1 %969  ;;  %v942_v40 = vmul.f32 %v940_v29, %v935_v28  ;;  %v953_v45 = vmul.f32 %v951_v36, %v946_v33 }
 0x160   : > { %v960_v31 = vrot.slane %v959_v21, 1  ;;  %v971_v38 = vrot.slane %v970_v22, 1 }
 0x161   : > { %v910_v56 = vadd.f32 %v909_v25, %v900_v19  ;;  %v1031_v19 = vstv %s2609_s22  ;;  %s2691_s22 = sld [smem:[#allocation9 + $0x52]] }
 0x162   : > { %v962_v54 = vsel %vm961_vm5, %v959_v21, %v960_v31  ;;  %v973_v49 = vsel %vm972_vm6, %v970_v22, %v971_v38  ;;  %v1022_v22 = vmul.f32 %v1021_v11, %v2581_v16  ;;  %v1032_v28 = vmul.f32 %v1031_v19, %v2581_v16 }
 0x163   : > { %v920_v59 = vadd.f32 %v919_v27, %v910_v56  ;;  %v981_v34 = vpop.permute.xlu0 %980  ;;  %v992_v35 = vpop.permute.xlu1 %991  ;;  %v964_v57 = vmul.f32 %v962_v54, %v957_v41  ;;  %v975_v62 = vmul.f32 %v973_v49, %v968_v46  ;;  %v1127_v19 = vstv %s2656_s8  ;;  %s2738_s8 = sld [smem:[#allocation9 + $0x30]] }
 0x164   : > { %v982_v43 = vrot.slane %v981_v34, 1  ;;  %v993_v51 = vrot.slane %v992_v35, 1 }
 0x165   : > { %v930_v39 = vadd.f32 %v929_v32, %v920_v59  ;;  %v1051_v59 = vstv %s2619_s29  ;;  %s2701_s29 = sld [smem:[#allocation9 + $0x60]] }
 0x166   : > { %v984_v60 = vsel %vm983_vm7, %v981_v34, %v982_v43  ;;  %v995_v2 = vsel %vm994_vm8, %v992_v35, %v993_v51  ;;  %v1042_v35 = vmul.f32 %v1041_v24, %v2581_v16  ;;  %v1052_v41 = vmul.f32 %v1051_v59, %v2581_v16 }
 0x167   : > { %v943_v44 = vadd.f32 %v942_v40, %v930_v39  ;;  %v1003_v47 = vpop.permute.xlu0 %1002  ;;  %v1014_v48 = vpop.permute.xlu1 %1013  ;;  %v986_v8 = vmul.f32 %v984_v60, %v979_v58  ;;  %v997_v53 = vmul.f32 %v995_v2, %v990_v63  ;;  %v1083_v51 = vstv %s2634_s5  ;;  %s2716_s5 = sld [smem:[#allocation9 + $0x14]] }
 0x168   : > { %v1004_v61 = vrot.slane %v1003_v47, 1  ;;  %v1015_v4 = vrot.slane %v1014_v48, 1  ;;  %v1084_v2 = vmul.f32 %v1083_v51, %v2653_v50  ;;  %v1149_v59 = vstv %s2666_s18  ;;  %s2748_s18 = sld [smem:[#allocation9 + $0x3e]] }
 0x169   : > { %v954_v52 = vadd.f32 %v953_v45, %v943_v44  ;;  %v1071_v44 = vstv %s2629_s4  ;;  %s2711_s4 = sld [smem:[#allocation9 + $0xd]] }
 0x16a   : > { %v1006_v10 = vsel %vm1005_vm9, %v1003_v47, %v1004_v61  ;;  %v1016_v18 = vsel %vm939_vm3, %v1014_v48, %v1015_v4  ;;  %v1062_v48 = vmul.f32 %v1061_v37, %v2581_v16  ;;  %v1072_v60 = vmul.f32 %v1071_v44, %v2581_v16 }
 0x16b   : > { %v965_v55 = vadd.f32 %v964_v57, %v954_v52  ;;  %v1024_v0 = vpop.permute.xlu0 %1023  ;;  %v1034_v1 = vpop.permute.xlu1 %1033  ;;  %v1008_v21 = vmul.f32 %v1006_v10, %v1001_v9  ;;  %v1018_v27 = vmul.f32 %v1016_v18, %v1012_v14  ;;  %v1105_v4 = vstv %s2644_s6  ;;  %s2728_s6 = sld [smem:[#allocation9 + $0x22]] }
 0x16c   : > { %v1025_v12 = vrot.slane %v1024_v0, 1  ;;  %v1035_v25 = vrot.slane %v1034_v1, 1  ;;  %v1170_v44 = vstv %s2676_s25  ;;  %vm1248_vm3 = vcmask 236544   ;;  %s2758_s25 = sld [smem:[#allocation9 + $0x4c]] }
 0x16d   : > { %v976_v6 = vadd.f32 %v975_v62, %v965_v55  ;;  %v1094_v62 = vstv %s2639_s21  ;;  %s2721_s21 = sld [smem:[#allocation9 + $0x1b]] }
 0x16e   : > { %v1026_v23 = vsel %vm950_vm4, %v1024_v0, %v1025_v12  ;;  %v1036_v31 = vsel %vm961_vm5, %v1034_v1, %v1035_v25  ;;  %v1095_v9 = vmul.f32 %v1094_v62, %v2653_v50  ;;  %v1190_v62 = vstv %s2686_s20  ;;  %s2768_s20 = sld [smem:[#allocation9 + $0x5a]] }
 0x16f   : > { %v987_v13 = vadd.f32 %v986_v8, %v976_v6  ;;  %v1044_v15 = vpop.permute.xlu0 %1043  ;;  %v1054_v17 = vpop.permute.xlu1 %1053  ;;  %v1028_v34 = vmul.f32 %v1026_v23, %v1022_v22  ;;  %v1038_v40 = vmul.f32 %v1036_v31, %v1032_v28  ;;  %vm1259_vm4 = vcmask 105472  }
 0x170   : > { %v1045_v26 = vrot.slane %v1044_v15, 1  ;;  %v1055_v32 = vrot.slane %v1054_v17, 1  ;;  %vm1270_vm5 = vcmask 1022976  }
 0x171   : > { %v998_v20 = vadd.f32 %v997_v53, %v987_v13  ;;  %v1116_v13 = vstv %s2649_s7  ;;  %s2733_s7 = sld [smem:[#allocation9 + $0x29]] }
 0x172   : > { %v1046_v36 = vsel %vm972_vm6, %v1044_v15, %v1045_v26  ;;  %v1056_v43 = vsel %vm983_vm7, %v1054_v17, %v1055_v32  ;;  %v1106_v17 = vmul.f32 %v1105_v4, %v2653_v50  ;;  %v1117_v22 = vmul.f32 %v1116_v13, %v2653_v50 }
 0x173   : > { %v1009_v56 = vadd.f32 %v1008_v21, %v998_v20  ;;  %v1064_v29 = vpop.permute.xlu0 %1063  ;;  %v1074_v30 = vpop.permute.xlu1 %1073  ;;  %v1048_v47 = vmul.f32 %v1046_v36, %v1042_v35  ;;  %v1058_v58 = vmul.f32 %v1056_v43, %v1052_v41  ;;  %v1210_v13 = vstv %s2696_s27  ;;  %s1516_s27 = sshll.u32 %s2111_s19, 1 }
 0x174   : > { %v1065_v38 = vrot.slane %v1064_v29, 1  ;;  %v1075_v45 = vrot.slane %v1074_v30, 1  ;;  %vm1281_vm6 = vcmask 891904   ;;  %vm1292_vm7 = vcmask 760832  }
 0x175   : > { %v1019_v33 = vadd.f32 %v1018_v27, %v1009_v56  ;;  %v1138_v56 = vstv %s2661_s10  ;;  %s2743_s10 = sld [smem:[#allocation9 + $0x37]] }
 0x176   : > { %v1066_v49 = vsel %vm994_vm8, %v1064_v29, %v1065_v38  ;;  %v1076_v55 = vsel %vm1005_vm9, %v1074_v30, %v1075_v45  ;;  %v1128_v30 = vmul.f32 %v1127_v19, %v2653_v50  ;;  %v1139_v35 = vmul.f32 %v1138_v56, %v2653_v50  ;;  %v2725_v56 = vld [vmem:[#allocation10 + $0x6] ss:$8 sm:$0x3] }
 0x177   : > { %v1029_v39 = vadd.f32 %v1028_v34, %v1019_v33  ;;  %v1086_v54 = vpop.permute.xlu0 %1085  ;;  %v1097_v42 = vpop.permute.xlu1 %1096  ;;  %v1068_v1 = vmul.f32 %v1066_v49, %v1062_v48  ;;  %v1078_v8 = vmul.f32 %v1076_v55, %v1072_v60  ;;  %vm1303_vm8 = vcmask 629760  }
 0x178   : > { %v1087_v52 = vrot.slane %v1086_v54, 1  ;;  %v1098_v63 = vrot.slane %v1097_v42, 1 }
 0x179   : > { %v1039_v46 = vadd.f32 %v1038_v40, %v1029_v39  ;;  %v1160_v39 = vstv %s2671_s24  ;;  %s2753_s24 = sld [smem:[#allocation9 + $0x45]] }
 0x17a   : > { %v1089_v3 = vsel %vm1088_vm10, %v1086_v54, %v1087_v52  ;;  %v1100_v12 = vsel %vm1099_vm11, %v1097_v42, %v1098_v63  ;;  %v1150_v42 = vmul.f32 %v1149_v59, %v2653_v50  ;;  %v1161_v48 = vmul.f32 %v1160_v39, %v2653_v50 }
 0x17b   : > { %v1049_v57 = vadd.f32 %v1048_v47, %v1039_v46  ;;  %v1108_v7 = vpop.permute.xlu0 %1107  ;;  %v1119_v61 = vpop.permute.xlu1 %1118  ;;  %v1091_v15 = vmul.f32 %v1089_v3, %v1084_v2  ;;  %v1102_v21 = vmul.f32 %v1100_v12, %v1095_v9 }
 0x17c   : > { %v1109_v6 = vrot.slane %v1108_v7, 1  ;;  %v1120_v53 = vrot.slane %v1119_v61, 1 }
 0x17d   : > { %v1059_v0 = vadd.f32 %v1058_v58, %v1049_v57  ;;  %v1180_v57 = vstv %s2681_s28  ;;  %s2763_s28 = sld [smem:[#allocation9 + $0x53]] }
 0x17e   : > { %v1111_v18 = vsel %vm1110_vm12, %v1108_v7, %v1109_v6  ;;  %v1122_v26 = vsel %vm1121_vm13, %v1119_v61, %v1120_v53  ;;  %v1171_v61 = vmul.f32 %v1170_v44, %v2653_v50  ;;  %v1181_v2 = vmul.f32 %v1180_v57, %v2653_v50 }
 0x17f   : > { %v1069_v16 = vadd.f32 %v1068_v1, %v1059_v0  ;;  %v1130_v10 = vpop.permute.xlu0 %1129  ;;  %v1141_v11 = vpop.permute.xlu1 %1140  ;;  %v1113_v29 = vmul.f32 %v1111_v18, %v1106_v17  ;;  %v1124_v34 = vmul.f32 %v1122_v26, %v1117_v22  ;;  %v1276_v57 = vstv %s2728_s6 }
 0x180   : > { %v1131_v25 = vrot.slane %v1130_v10, 1  ;;  %v1142_v27 = vrot.slane %v1141_v11, 1 }
 0x181   : > { %v1079_v14 = vadd.f32 %v1078_v8, %v1069_v16  ;;  %v1200_v16 = vstv %s2691_s22  ;;  %s2773_s22 = sld [smem:[#allocation9 + $0x61]] }
 0x182   : > { %v1133_v31 = vsel %vm1132_vm14, %v1130_v10, %v1131_v25  ;;  %v1144_v38 = vsel %vm1143_vm15, %v1141_v11, %v1142_v27  ;;  %v1191_v11 = vmul.f32 %v1190_v62, %v2653_v50  ;;  %v1201_v17 = vmul.f32 %v1200_v16, %v2653_v50 }
 0x183   : > { %v1092_v20 = vadd.f32 %v1091_v15, %v1079_v14  ;;  %v1152_v23 = vpop.permute.xlu0 %1151  ;;  %v1163_v24 = vpop.permute.xlu1 %1162  ;;  %v1135_v54 = vmul.f32 %v1133_v31, %v1128_v30  ;;  %v1146_v47 = vmul.f32 %v1144_v38, %v1139_v35  ;;  %v1232_v27 = vstv %s2706_s30  ;;  %s229_s30 = scalar_lea.vmem [#allocation12], %s1516_s27 }
 0x184   : > { %v1153_v32 = vrot.slane %v1152_v23, 1  ;;  %v1164_v40 = vrot.slane %v1163_v24, 1  ;;  %v1233_v38 = vmul.f32 %v1232_v27, %v2725_v56  ;;  %v1298_v16 = vstv %s2738_s8 }
 0x185   : > { %v1103_v28 = vadd.f32 %v1102_v21, %v1092_v20  ;;  %v1220_v20 = vstv %s2701_s29  ;;  %s1621_s29 = sshll.u32 %s1910_s15, 5 }
 0x186   : > { %v1155_v43 = vsel %vm1154_vm0, %v1152_v23, %v1153_v32  ;;  %v1165_v52 = vsel %vm1088_vm10, %v1163_v24, %v1164_v40  ;;  %v1211_v24 = vmul.f32 %v1210_v13, %v2653_v50  ;;  %v1221_v31 = vmul.f32 %v1220_v20, %v2653_v50  ;;  %s2796_s6 = scalar_lea.hbm %s2843_s3, %s1621_s29 }
 0x187   : > { %v1114_v33 = vadd.f32 %v1113_v29, %v1103_v28  ;;  %v1173_v36 = vpop.permute.xlu0 %1172  ;;  %v1183_v37 = vpop.permute.xlu1 %1182  ;;  %v1157_v7 = vmul.f32 %v1155_v43, %v1150_v42  ;;  %v1167_v1 = vmul.f32 %v1165_v52, %v1161_v48  ;;  %v1254_v40 = vstv %s2716_s5 }
 0x188   : > { %v1174_v45 = vrot.slane %v1173_v36, 1  ;;  %v1184_v58 = vrot.slane %v1183_v37, 1  ;;  %v1319_v20 = vstv %s2748_s18 }
 0x189   : > { %v1125_v41 = vadd.f32 %v1124_v34, %v1114_v33  ;;  %v1243_v34 = vstv %s2711_s4  ;;  %s1400_s4 = sshll.u32 %s229_s30, 4  ;;  %s1401_s4 = int_to_ptr.vmem [resolvable:$true] %s1400_s4 }
 0x18a   : > { %v1175_v55 = vsel %vm1099_vm11, %v1173_v36, %v1174_v45  ;;  %v1185_v6 = vsel %vm1110_vm12, %v1183_v37, %v1184_v58  ;;  %v1244_v42 = vmul.f32 %v1243_v34, %v2725_v56  ;;  %v1339_v34 = vstv %s2758_s25  ;;  %s1830_s8 = scalar_lea.vmem %s1401_s4, 32 }
 0x18b   : > { %v1136_v46 = vadd.f32 %v1135_v54, %v1125_v41  ;;  %v1193_v49 = vpop.permute.xlu0 %1192  ;;  %v1203_v51 = vpop.permute.xlu1 %1202  ;;  %v1177_v10 = vmul.f32 %v1175_v55, %v1171_v61  ;;  %v1187_v15 = vmul.f32 %v1185_v6, %v1181_v2  ;;  %p1831_p3 = scmp.ne.s32.totalorder %s1401_s4, %s1830_s8 }
 0x18c   : > { %v1194_v63 = vrot.slane %v1193_v49, 1  ;;  %v1204_v8 = vrot.slane %v1203_v51, 1 }
 0x18d   : > { %v1147_v60 = vadd.f32 %v1146_v47, %v1136_v46  ;;  %v1265_v46 = vstv %s2721_s21  ;;  %p1832_p11 = pnand %p1831_p3, %p2084_p13 }
 0x18e   : > { %v1195_v12 = vsel %vm1121_vm13, %v1193_v49, %v1194_v63  ;;  %v1205_v25 = vsel %vm1132_vm14, %v1203_v51, %v1204_v8  ;;  %v1255_v51 = vmul.f32 %v1254_v40, %v2725_v56  ;;  %v1266_v61 = vmul.f32 %v1265_v46, %v2725_v56 }
 0x18f   : > { %v1158_v0 = vadd.f32 %v1157_v7, %v1147_v60  ;;  %v1213_v3 = vpop.permute.xlu0 %1212  ;;  %v1223_v4 = vpop.permute.xlu1 %1222  ;;  %v1197_v23 = vmul.f32 %v1195_v12, %v1191_v11  ;;  %v1207_v30 = vmul.f32 %v1205_v25, %v1201_v17  ;;  %v1359_v46 = vstv %s2768_s20  ;;  %p1833_p5 = pneg %p1832_p11 }
 0x190   : > { %v1214_v53 = vrot.slane %v1213_v3, 1  ;;  %v1224_v21 = vrot.slane %v1223_v4, 1 }
 0x191   : > { %v1168_v9 = vadd.f32 %v1167_v1, %v1158_v0  ;;  %v1287_v0 = vstv %s2733_s7  ;;  %s1386_s7 = scalar_lea.sflag [#allocation7], %s2111_s19 }
 0x192   : > { %v1215_v26 = vsel %vm1143_vm15, %v1213_v3, %v1214_v53  ;;  %v1225_v33 = vsel %vm1154_vm0, %v1223_v4, %v1224_v21  ;;  %v1277_v4 = vmul.f32 %v1276_v57, %v2725_v56  ;;  %v1288_v11 = vmul.f32 %v1287_v0, %v2725_v56 }
 0x193   : > { %v1178_v14 = vadd.f32 %v1177_v10, %v1168_v9  ;;  %v1235_v18 = vpop.permute.xlu0 %1234  ;;  %v1246_v19 = vpop.permute.xlu1 %1245  ;;  %v1217_v37 = vmul.f32 %v1215_v26, %v1211_v24  ;;  %v1227_v54 = vmul.f32 %v1225_v33, %v1221_v31  ;;  %v1369_v57 = vstv %s2773_s22 }
 0x194   : > { %v1236_v28 = vrot.slane %v1235_v18, 1  ;;  %v1247_v35 = vrot.slane %v1246_v19, 1  ;;  %v1370_v0 = vmul.f32 %v1369_v57, %v2725_v56 }
 0x195   : > { %v1188_v22 = vadd.f32 %v1187_v15, %v1178_v14  ;;  %v1309_v14 = vstv %s2743_s10  ;;  %s1974_s10 = smov [#allocation12]  }
 0x196   : > { %v1238_v39 = vsel %vm1237_vm2, %v1235_v18, %v1236_v28  ;;  %v1249_v45 = vsel %vm1248_vm3, %v1246_v19, %v1247_v35  ;;  %v1299_v19 = vmul.f32 %v1298_v16, %v2725_v56  ;;  %v1310_v24 = vmul.f32 %v1309_v14, %v2725_v56  ;;  %s1834_s15 = sshll.u32 %s1974_s10, 4  ;;  %s1835_s15 = int_to_ptr.vmem [resolvable:$false] %s1834_s15 }
 0x197   : > { %v1198_v29 = vadd.f32 %v1197_v23, %v1188_v22  ;;  %v1257_v59 = vpop.permute.xlu0 %1256  ;;  %v1268_v32 = vpop.permute.xlu1 %1267  ;;  %v1240_v49 = vmul.f32 %v1238_v39, %v1233_v38  ;;  %v1251_v7 = vmul.f32 %v1249_v45, %v1244_v42  ;;  %s1836_s18 = scalar_lea.vmem %s1835_s15, 64  ;;  %p1837_p7 = scmp.lt.s32.totalorder %s1401_s4, %s1835_s15 }
 0x198   : > { %v1258_v41 = vrot.slane %v1257_v59, 1  ;;  %v1269_v47 = vrot.slane %v1268_v32, 1  ;;  %p1838_p10 = scmp.lt.s32.totalorder %s1836_s18, %s1830_s8 }
 0x199   : > { %v1208_v36 = vadd.f32 %v1207_v30, %v1198_v29  ;;  %v1329_v29 = vstv %s2753_s24 }
 0x19a   : > { %v1260_v52 = vsel %vm1259_vm4, %v1257_v59, %v1258_v41  ;;  %v1271_v63 = vsel %vm1270_vm5, %v1268_v32, %v1269_v47  ;;  %v1320_v32 = vmul.f32 %v1319_v20, %v2725_v56  ;;  %v1330_v38 = vmul.f32 %v1329_v29, %v2725_v56  ;;  %p1839_p12 = por %p1838_p10, %p1837_p7 }
 0x19b   : > { %v1218_v50 = vadd.f32 %v1217_v37, %v1208_v36  ;;  %v1279_v43 = vpop.permute.xlu0 %1278  ;;  %v1290_v44 = vpop.permute.xlu1 %1289  ;;  %v1262_v3 = vmul.f32 %v1260_v52, %v1255_v51  ;;  %v1273_v10 = vmul.f32 %v1271_v63, %v1266_v61  ;;  %v1349_v41 = vstv %s2763_s28 }
 0x19c   : > { %v1280_v58 = vrot.slane %v1279_v43, 1  ;;  %v1291_v1 = vrot.slane %v1290_v44, 1  ;;  %v1350_v51 = vmul.f32 %v1349_v41, %v2725_v56  ;;  %v1360_v61 = vmul.f32 %v1359_v46, %v2725_v56  ;;  %p1840_p0 = pnand %p1839_p12, %p1833_p5 }
 0x19d   : > { %v1228_v48 = vadd.f32 %v1227_v54, %v1218_v50 }
 0x19e   : > { %v1282_v6 = vsel %vm1281_vm6, %v1279_v43, %v1280_v58  ;;  %v1293_v53 = vsel %vm1292_vm7, %v1290_v44, %v1291_v1  ;;  %v1340_v43 = vmul.f32 %v1339_v34, %v2725_v56 }
 0x19f   : > { %v1241_v60 = vadd.f32 %v1240_v49, %v1228_v48  ;;  %v1301_v55 = vpop.permute.xlu0 %1300  ;;  %v1312_v62 = vpop.permute.xlu1 %1311  ;;  %v1284_v18 = vmul.f32 %v1282_v6, %v1277_v4  ;;  %v1295_v23 = vmul.f32 %v1293_v53, %v1288_v11 }
 0x1a0   : > { %v1302_v8 = vrot.slane %v1301_v55, 1  ;;  %v1313_v15 = vrot.slane %v1312_v62, 1 }
 0x1a1   : > { %v1252_v2 = vadd.f32 %v1251_v7, %v1241_v60 }
 0x1a2   : > { %v1304_v25 = vsel %vm1303_vm8, %v1301_v55, %v1302_v8  ;;  %v1314_v28 = vsel %vm1237_vm2, %v1312_v62, %v1313_v15 }
 0x1a3   : > { %v1263_v9 = vadd.f32 %v1262_v3, %v1252_v2  ;;  %v1322_v12 = vpop.permute.xlu0 %1321  ;;  %v1332_v13 = vpop.permute.xlu1 %1331  ;;  %v1306_v59 = vmul.f32 %v1304_v25, %v1299_v19  ;;  %v1316_v37 = vmul.f32 %v1314_v28, %v1310_v24 }
 0x1a4   : > { %v1323_v21 = vrot.slane %v1322_v12, 1  ;;  %v1333_v30 = vrot.slane %v1332_v13, 1 }
 0x1a5   : > { %v1274_v17 = vadd.f32 %v1273_v10, %v1263_v9 }
 0x1a6   : > { %v1324_v33 = vsel %vm1248_vm3, %v1322_v12, %v1323_v21  ;;  %v1334_v40 = vsel %vm1259_vm4, %v1332_v13, %v1333_v30 }
 0x1a7   : > { %v1285_v22 = vadd.f32 %v1284_v18, %v1274_v17  ;;  %v1342_v26 = vpop.permute.xlu0 %1341  ;;  %v1352_v27 = vpop.permute.xlu1 %1351  ;;  %v1326_v42 = vmul.f32 %v1324_v33, %v1320_v32  ;;  %v1336_v49 = vmul.f32 %v1334_v40, %v1330_v38 }
 0x1a8   : > { %v1343_v35 = vrot.slane %v1342_v26, 1  ;;  %v1353_v50 = vrot.slane %v1352_v27, 1 }
 0x1a9   : > { %v1296_v31 = vadd.f32 %v1295_v23, %v1285_v22 }
 0x1aa   : > { %v1344_v45 = vsel %vm1270_vm5, %v1342_v26, %v1343_v35  ;;  %v1354_v52 = vsel %vm1281_vm6, %v1352_v27, %v1353_v50 }
 0x1ab   : > { %v1307_v36 = vadd.f32 %v1306_v59, %v1296_v31  ;;  %v1362_v39 = vpop.permute.xlu0 %1361  ;;  %v1372_v44 = vpop.permute.xlu1 %1371  ;;  %v1346_v7 = vmul.f32 %v1344_v45, %v1340_v43  ;;  %v1356_v63 = vmul.f32 %v1354_v52, %v1350_v51 }
 0x1ac   : > { %v1363_v47 = vrot.slane %v1362_v39, 1  ;;  %v1373_v58 = vrot.slane %v1372_v44, 1 }
 0x1ad   : > { %v1317_v54 = vadd.f32 %v1316_v37, %v1307_v36 }
 0x1ae   : > { %v1364_v55 = vsel %vm1292_vm7, %v1362_v39, %v1363_v47  ;;  %v1374_v1 = vsel %vm1303_vm8, %v1372_v44, %v1373_v58 }
 0x1af   : > { %v1327_v48 = vadd.f32 %v1326_v42, %v1317_v54  ;;  %v1366_v3 = vmul.f32 %v1364_v55, %v1360_v61  ;;  %v1376_v6 = vmul.f32 %v1374_v1, %v1370_v0 }
 0x1b1   : > { %v1337_v60 = vadd.f32 %v1336_v49, %v1327_v48 }
 0x1b3   : > { %v1347_v62 = vadd.f32 %v1346_v7, %v1337_v60 }
 0x1b5   : > { %v1357_v2 = vadd.f32 %v1356_v63, %v1347_v62 }
 0x1b7   : > { %v1367_v4 = vadd.f32 %v1366_v3, %v1357_v2 }
 0x1b9   : > { %v1377_v16 = vadd.f32 %v1376_v6, %v1367_v4 }
 0x1bb   : > { %v1614_v8 = vmul.f32 -1.442695, %v1377_v16 }
 0x1bd   : > { %1757 = vpow2.f32 %v1614_v8 }
 0x1ca   : > { %v1758_v9 = vpop.eup %1757 }
 0x1cb   : > { %v1381_v10 = vadd.f32 1.0, %v1758_v9 }
 0x1cd   : > { %1759 = vrcp.f32 %v1381_v10 }
 0x1da   : > { %v1760_v56 = vpop.eup %1759 }
 0x1db   : > { %1384 = vst.msk [vmem:[%s229_s30] sm:$0x3] %vm2127_vm1, %v1760_v56 }
 0x1dc   : > { %1843 = shalt.err (!%p1840_p0)
}
 0x1dd   : > { %s1844_s24 = scalar_lea.hbm %s2796_s6, 32  ;;  %s1848_s28 = scalar_lea.hbm %s2843_s3, 64 }
 0x1de   : > { %p1845_p1 = scmp.ne.s32.totalorder %s2796_s6, %s1844_s24  ;;  %p1849_p6 = scmp.lt.s32.totalorder %s2796_s6, %s2843_s3 }
 0x1df   : > { %p1850_p8 = scmp.lt.s32.totalorder %s1848_s28, %s1844_s24 }
 0x1e0   : > { %p1846_p2 = pnand %p1845_p1, %p2084_p13 }
 0x1e1   : > { %p1851_p9 = por %p1850_p8, %p1849_p6 }
 0x1e2   : > { %p1847_p4 = pneg %p1846_p2 }
 0x1e4   : > { %p1852_p3 = pnand %p1851_p9, %p1847_p4 }
 0x1e6   : > { %1855 = shalt.err (!%p1852_p3)
}
 0x1e7   : > { %1632 = dma.vmem_to_hbm [thread:$0]  (%p2084_p13), %s1401_s4, 32, %s2796_s6, %s1386_s7  }
 0x1e8 PF: > { %s1412_s27 = sand.u32 1, %s1898_s12   ;;  %p2864_p11 = scmp.ne.s32.totalorder %s2851_s23, 0 }
 0x1e9   : > { %p2865_p5 = scmp.ge.s32.totalorder %s1918_s17, 2  ;;  %s1413_s29 = scalar_lea.sflag [#allocation7], %s1412_s27 }
 0x1eb   : > { %p1646_p7 = pnand %p2865_p5, %p2864_p11 }
 0x1ed   : > { %p1647_p10 = pneg %p1646_p7 }
 0x1ef   : > { %1893 = dma.done.wait (%p1647_p10), %s1413_s29, 32  }
 0x1f0   : > { %1895 = vsyncadd (%p1647_p10), %s1413_s29, 4294967264  ;;  %s21_s17 = sadd.s32 1, %s1918_s17   ;;  %s2866_s12 = smov %s1902_s13 }
 0x1f1   : > { %p18_p12 = scmp.ge.s32.totalorder %s21_s17, 4   ;;  %s2867_s13 = smov %s1906_s14 }
 0x1f2   : > { %s2868_s14 = smov %s2093_s26  ;;  %s2869_s15 = smov %s1914_s16 }
 0x1f3   : > { %s2870_s16 = smov %s2872_s9  ;;  %20 = sbr.rel (!%p18_p12) target bundleno = 8 (0x8), region = 101 }
 0x1f8   :  { %1418 = vsyncpa [#allocation6], 1 }
 0x1f9   :  { %1420 = vsyncpa [#allocation6 + $0x1], 1 }
 0x1fa   :  { %1421 = vsyncpa [#allocation11], 1 }
 0x1fb   :  { %1422 = vsyncpa [#allocation7], 1 }
 0x1fc   :  { %1424 = vsyncpa [#allocation7 + $0x1], 1 }
 0x1fd   :  { %1425 = vsyncpa [#allocation8], 1 }
 0x1fe   :  { %1427 = vsyncpa [#allocation8 + $0x1], 1 }

</bundles_post_ra>
